<compile_context>
chip_gen: v7x
topology: tpu7x:2x2x1
jax: 0.10.0
libtpu: 0.0.40
codegen_flags: <defaults>
</compile_context>

<pallas_src>
import jax
import jax.numpy as jnp
from jax import lax
from jax.experimental import pallas as pl
from jax.experimental.pallas import tpu as pltpu


def sda_kernel(x_ref, wihf_ref, whhf_ref, bf_ref,
               wihb_ref, whhb_ref, bb_ref,
               wfcf_ref, wfcb_ref, bfc_ref,
               out_ref,
               gxf_ref, gxb_ref, hf_ref, hb_ref):
    """Bidirectional LSTM + FC + sigmoid.

    x_ref:    (T, Bp, D)   time-major, batch padded to sublane multiple.
    wih*_ref: (D, 4Hp)     input weights, gate-aware lane-padded, transposed.
    whh*_ref: (Hp, 4Hp)    recurrent weights, padded, transposed.
    b*_ref:   (1, 4Hp)     b_ih + b_hh, padded.
    wfc*_ref: (1, Hp)      per-direction half of the FC weight, padded.
    bfc_ref:  (1, 1)       FC bias.
    out_ref:  (T, Bp)      sigmoid(logits), lane-dense (no width-1 last dim).
    gx*_ref:  (T, Bp, 4Hp) precomputed input-projection gates (scratch).
    h*_ref:   (T, Bp, Hp)  per-timestep hidden states (scratch).
    Gate order along 4Hp follows PyTorch: i, f, g, o.
    """
    T, Bp, D = x_ref.shape
    Hp = whhf_ref.shape[0]
    G = 4 * Hp

    # ---- 1) Hoisted input projection: one big MXU matmul per direction -----
    x2 = x_ref[...].reshape(T * Bp, D)
    gxf_ref[...] = (jnp.dot(x2, wihf_ref[...], preferred_element_type=jnp.float32)
                    + bf_ref[...]).reshape(T, Bp, G)
    gxb_ref[...] = (jnp.dot(x2, wihb_ref[...], preferred_element_type=jnp.float32)
                    + bb_ref[...]).reshape(T, Bp, G)

    whh_f = whhf_ref[...]          # hoisted loads (loop constants)
    whh_b = whhb_ref[...]

    def lstm_update(gates, c):
        i_g = jax.nn.sigmoid(gates[:, 0:Hp])
        f_g = jax.nn.sigmoid(gates[:, Hp:2 * Hp])
        g_g = jnp.tanh(gates[:, 2 * Hp:3 * Hp])
        o_g = jax.nn.sigmoid(gates[:, 3 * Hp:4 * Hp])
        c_new = f_g * c + i_g * g_g
        h_new = o_g * jnp.tanh(c_new)
        return h_new, c_new

    # ---- 2) Fused fwd+bwd recurrence: only h @ Whh on the serial path ------
    def step(s, carry):
        h_f, c_f, h_b, c_b = carry
        t_b = T - 1 - s

        g_f = (gxf_ref[pl.ds(s, 1), :, :][0]
               + jnp.dot(h_f, whh_f, preferred_element_type=jnp.float32))
        g_b = (gxb_ref[pl.ds(t_b, 1), :, :][0]
               + jnp.dot(h_b, whh_b, preferred_element_type=jnp.float32))

        h_f_new, c_f_new = lstm_update(g_f, c_f)
        h_b_new, c_b_new = lstm_update(g_b, c_b)

        hf_ref[pl.ds(s, 1), :, :] = h_f_new.reshape(1, Bp, Hp)
        hb_ref[pl.ds(t_b, 1), :, :] = h_b_new.reshape(1, Bp, Hp)
        return (h_f_new, c_f_new, h_b_new, c_b_new)

    zeros = jnp.zeros((Bp, Hp), jnp.float32)
    lax.fori_loop(0, T, step, (zeros, zeros, zeros, zeros), unroll=True)

    # ---- 3) Epilogue: FC as VPU mul + lane reduce, bias, sigmoid -----------
    hf = hf_ref[...]                                   # (T, Bp, Hp)
    hb = hb_ref[...]
    logits = (jnp.sum(hf * wfcf_ref[...].reshape(1, 1, Hp), axis=-1)
              + jnp.sum(hb * wfcb_ref[...].reshape(1, 1, Hp), axis=-1)
              + bfc_ref[...])                          # (T, Bp)
    out_ref[...] = jax.nn.sigmoid(logits)


# ----------------------------- wrapper ---------------------------------------

def _pad_gate_rows(w, H, Hp):
    """(4H, K) -> (4Hp, K): pad each of the 4 gate blocks from H to Hp rows."""
    K = w.shape[1]
    return jnp.pad(w.reshape(4, H, K), ((0, 0), (0, Hp - H), (0, 0))).reshape(4 * Hp, K)


def _pad_gate_bias(b, H, Hp):
    return jnp.pad(b.reshape(4, H), ((0, 0), (0, Hp - H))).reshape(4 * Hp)


def sda_net_pallas(x, params):
    """x: (B, T, D) float32, batch_first like PyTorch. Returns (B, T, 1)."""
    B, T, D = x.shape
    H = params["whh_f"].shape[1]           # whh_f: (4H, H)
    SUB, LANE = 8, 128
    Bp = ((B + SUB - 1) // SUB) * SUB       # sublane-align batch
    Hp = ((H + LANE - 1) // LANE) * LANE    # lane-align hidden (gate-aware)

    def prep_dir(wih, whh, bih, bhh):
        wih_p = _pad_gate_rows(wih, H, Hp)                       # (4Hp, D)
        whh_p = _pad_gate_rows(whh, H, Hp)                       # (4Hp, H)
        whh_p = jnp.pad(whh_p, ((0, 0), (0, Hp - H)))            # (4Hp, Hp)
        b_p = _pad_gate_bias(bih + bhh, H, Hp)                   # (4Hp,)
        return wih_p.T, whh_p.T, b_p.reshape(1, 4 * Hp)

    wih_f, whh_f, b_f = prep_dir(params["wih_f"], params["whh_f"],
                                 params["bih_f"], params["bhh_f"])
    wih_b, whh_b, b_b = prep_dir(params["wih_b"], params["whh_b"],
                                 params["bih_b"], params["bhh_b"])

    fc_w = params["fc_w"].reshape(2 * H)
    wfc_f = jnp.pad(fc_w[:H], (0, Hp - H)).reshape(1, Hp)
    wfc_b = jnp.pad(fc_w[H:], (0, Hp - H)).reshape(1, Hp)
    bfc = params["fc_b"].reshape(1, 1)

    x_tm = jnp.transpose(x, (1, 0, 2))                           # (T, B, D)
    x_tm = jnp.pad(x_tm, ((0, 0), (0, Bp - B), (0, 0)))          # (T, Bp, D)

    vmem = pl.BlockSpec(memory_space=pltpu.MemorySpace.VMEM)
    out_tb = pl.pallas_call(
        sda_kernel,
        out_shape=jax.ShapeDtypeStruct((T, Bp), jnp.float32),
        in_specs=[vmem] * 10,
        out_specs=vmem,
        scratch_shapes=[
            pltpu.VMEM((T, Bp, 4 * Hp), jnp.float32),   # gxf (precomputed gates, fwd)
            pltpu.VMEM((T, Bp, 4 * Hp), jnp.float32),   # gxb (precomputed gates, bwd)
            pltpu.VMEM((T, Bp, Hp), jnp.float32),       # hf
            pltpu.VMEM((T, Bp, Hp), jnp.float32),       # hb
        ],
        compiler_params=pltpu.CompilerParams(vmem_limit_bytes=16 * 1024 * 1024),
    )(x_tm, wih_f, whh_f, b_f, wih_b, whh_b, b_b, wfc_f, wfc_b, bfc)

    # Glue only: (T, Bp) -> (B, T, 1), dropping batch padding.
    return jnp.transpose(out_tb, (1, 0))[:B].reshape(B, T, 1)


# ------------------------- pure-JAX reference -------------------------------

def _lstm_dir_ref(x, wih_t, whh_t, b, reverse):
    B, T, D = x.shape
    H = whh_t.shape[0]
    xs = jnp.transpose(x, (1, 0, 2))
    if reverse:
        xs = xs[::-1]

    def step(carry, x_t):
        h, c = carry
        gates = x_t @ wih_t + h @ whh_t + b
        i_g = jax.nn.sigmoid(gates[:, 0:H])
        f_g = jax.nn.sigmoid(gates[:, H:2 * H])
        g_g = jnp.tanh(gates[:, 2 * H:3 * H])
        o_g = jax.nn.sigmoid(gates[:, 3 * H:4 * H])
        c_new = f_g * c + i_g * g_g
        h_new = o_g * jnp.tanh(c_new)
        return (h_new, c_new), h_new

    h0 = jnp.zeros((B, H), jnp.float32)
    (_, _), hs = lax.scan(step, (h0, h0), xs)
    if reverse:
        hs = hs[::-1]
    return jnp.transpose(hs, (1, 0, 2))


def sda_net_ref(x, params):
    hf = _lstm_dir_ref(x, params["wih_f"].T, params["whh_f"].T,
                       (params["bih_f"] + params["bhh_f"])[None, :], False)
    hb = _lstm_dir_ref(x, params["wih_b"].T, params["whh_b"].T,
                       (params["bih_b"] + params["bhh_b"])[None, :], True)
    hcat = jnp.concatenate([hf, hb], axis=-1)
    return jax.nn.sigmoid(hcat @ params["fc_w"].T + params["fc_b"])


# ----------------------------- main ------------------------------------------

def init_params(key, input_size, hidden_size):
    """Deterministic init mimicking PyTorch's U(-1/sqrt(H), 1/sqrt(H))."""
    H, D = hidden_size, input_size
    k = 1.0 / jnp.sqrt(jnp.float32(H))
    keys = jax.random.split(key, 10)
    u = lambda kk, shp: jax.random.uniform(kk, shp, jnp.float32, -k, k)
    return {
        "wih_f": u(keys[0], (4 * H, D)), "whh_f": u(keys[1], (4 * H, H)),
        "bih_f": u(keys[2], (4 * H,)),   "bhh_f": u(keys[3], (4 * H,)),
        "wih_b": u(keys[4], (4 * H, D)), "whh_b": u(keys[5], (4 * H, H)),
        "bih_b": u(keys[6], (4 * H,)),   "bhh_b": u(keys[7], (4 * H,)),
        "fc_w": u(keys[8], (1, 2 * H)),  "fc_b": u(keys[9], (1,)),
    }


if __name__ == "__main__":
    B, T, D, H = 2, 8, 16, 32
    key = jax.random.PRNGKey(0)
    kx, kp = jax.random.split(key)
    x = jax.random.normal(kx, (B, T, D), jnp.float32)
    params = init_params(kp, D, H)

    out = jax.block_until_ready(sda_net_pallas(x, params))
    ref = jax.block_until_ready(sda_net_ref(x, params))

    assert out.shape == (B, T, 1)
    max_err = float(jnp.max(jnp.abs(out - ref)))
    assert max_err < 1e-4, f"mismatch vs reference: {max_err}"
    print("KERNEL_OK")
</pallas_src>

<mosaic_0001>
module attributes {stable_mosaic.version = 11 : i64} {
  func.func @sda_kernel(%arg0: memref<8x8x16xf32, #tpu.memory_space<vmem>>, %arg1: memref<16x512xf32, #tpu.memory_space<vmem>>, %arg2: memref<128x512xf32, #tpu.memory_space<vmem>>, %arg3: memref<1x512xf32, #tpu.memory_space<vmem>>, %arg4: memref<16x512xf32, #tpu.memory_space<vmem>>, %arg5: memref<128x512xf32, #tpu.memory_space<vmem>>, %arg6: memref<1x512xf32, #tpu.memory_space<vmem>>, %arg7: memref<1x128xf32, #tpu.memory_space<vmem>>, %arg8: memref<1x128xf32, #tpu.memory_space<vmem>>, %arg9: memref<1x1xf32, #tpu.memory_space<vmem>>, %arg10: memref<8x8xf32, #tpu.memory_space<vmem>>, %arg11: memref<8x8x512xf32, #tpu.memory_space<vmem>>, %arg12: memref<8x8x512xf32, #tpu.memory_space<vmem>>, %arg13: memref<8x8x128xf32, #tpu.memory_space<vmem>>, %arg14: memref<8x8x128xf32, #tpu.memory_space<vmem>>) attributes {dimension_semantics = [], scalar_prefetch = 0 : i64, scratch_operands = 4 : i64, tpu.core_type = #tpu.core_type<tc>} {
    %c0 = arith.constant 0 : index
    %c0_0 = arith.constant 0 : index
    %c0_1 = arith.constant 0 : index
    %0 = vector.load %arg0[%c0, %c0_0, %c0_1] : memref<8x8x16xf32, #tpu.memory_space<vmem>>, vector<8x8x16xf32>
    %1 = vector.shape_cast %0 : vector<8x8x16xf32> to vector<64x16xf32>
    %c0_2 = arith.constant 0 : index
    %c0_3 = arith.constant 0 : index
    %2 = vector.load %arg1[%c0_2, %c0_3] : memref<16x512xf32, #tpu.memory_space<vmem>>, vector<16x512xf32>
    %cst = arith.constant dense<0.000000e+00> : vector<64x512xf32>
    %3 = tpu.matmul %1, %2, %cst {dimension_numbers = #tpu.dot_dimension_numbers<[1], [0], [0], [1], [0, 0, 1, 1], [], []>} : vector<64x16xf32>, vector<16x512xf32>, vector<64x512xf32> -> vector<64x512xf32>
    %c0_4 = arith.constant 0 : index
    %c0_5 = arith.constant 0 : index
    %4 = vector.load %arg3[%c0_4, %c0_5] : memref<1x512xf32, #tpu.memory_space<vmem>>, vector<1x512xf32>
    %5 = vector.broadcast %4 : vector<1x512xf32> to vector<64x512xf32>
    %6 = arith.addf %3, %5 : vector<64x512xf32>
    %7 = vector.shape_cast %6 : vector<64x512xf32> to vector<8x8x512xf32>
    %c0_6 = arith.constant 0 : index
    %c0_7 = arith.constant 0 : index
    %c0_8 = arith.constant 0 : index
    %8 = vector.load %arg11[%c0_6, %c0_7, %c0_8] : memref<8x8x512xf32, #tpu.memory_space<vmem>>, vector<8x8x512xf32>
    tpu.vector_store %arg11[%c0_6, %c0_7, %c0_8], %7 {strides = array<i32>} : memref<8x8x512xf32, #tpu.memory_space<vmem>>, vector<8x8x512xf32>,
    %c0_9 = arith.constant 0 : index
    %c0_10 = arith.constant 0 : index
    %9 = vector.load %arg4[%c0_9, %c0_10] : memref<16x512xf32, #tpu.memory_space<vmem>>, vector<16x512xf32>
    %cst_11 = arith.constant dense<0.000000e+00> : vector<64x512xf32>
    %10 = tpu.matmul %1, %9, %cst_11 {dimension_numbers = #tpu.dot_dimension_numbers<[1], [0], [0], [1], [0, 0, 1, 1], [], []>} : vector<64x16xf32>, vector<16x512xf32>, vector<64x512xf32> -> vector<64x512xf32>
    %c0_12 = arith.constant 0 : index
    %c0_13 = arith.constant 0 : index
    %11 = vector.load %arg6[%c0_12, %c0_13] : memref<1x512xf32, #tpu.memory_space<vmem>>, vector<1x512xf32>
    %12 = vector.broadcast %11 : vector<1x512xf32> to vector<64x512xf32>
    %13 = arith.addf %10, %12 : vector<64x512xf32>
    %14 = vector.shape_cast %13 : vector<64x512xf32> to vector<8x8x512xf32>
    %c0_14 = arith.constant 0 : index
    %c0_15 = arith.constant 0 : index
    %c0_16 = arith.constant 0 : index
    %15 = vector.load %arg12[%c0_14, %c0_15, %c0_16] : memref<8x8x512xf32, #tpu.memory_space<vmem>>, vector<8x8x512xf32>
    tpu.vector_store %arg12[%c0_14, %c0_15, %c0_16], %14 {strides = array<i32>} : memref<8x8x512xf32, #tpu.memory_space<vmem>>, vector<8x8x512xf32>,
    %c0_17 = arith.constant 0 : index
    %c0_18 = arith.constant 0 : index
    %16 = vector.load %arg2[%c0_17, %c0_18] : memref<128x512xf32, #tpu.memory_space<vmem>>, vector<128x512xf32>
    %c0_19 = arith.constant 0 : index
    %c0_20 = arith.constant 0 : index
    %17 = vector.load %arg5[%c0_19, %c0_20] : memref<128x512xf32, #tpu.memory_space<vmem>>, vector<128x512xf32>
    %cst_21 = arith.constant 0.000000e+00 : f32
    %18 = vector.broadcast %cst_21 : f32 to vector<8x128xf32>
    %c0_i32 = arith.constant 0 : i32
    %c7_i32 = arith.constant 7 : i32
    %19 = arith.subi %c7_i32, %c0_i32 : i32
    %20 = arith.index_cast %c0_i32 : i32 to index
    %c0_22 = arith.constant 0 : index
    %c0_23 = arith.constant 0 : index
    %21 = vector.load %arg11[%20, %c0_22, %c0_23] : memref<8x8x512xf32, #tpu.memory_space<vmem>>, vector<1x8x512xf32>
    %22 = vector.shape_cast %21 : vector<1x8x512xf32> to vector<8x512xf32>
    %cst_24 = arith.constant dense<0.000000e+00> : vector<8x512xf32>
    %23 = tpu.matmul %18, %16, %cst_24 {dimension_numbers = #tpu.dot_dimension_numbers<[1], [0], [0], [1], [0, 0, 1, 1], [], []>} : vector<8x128xf32>, vector<128x512xf32>, vector<8x512xf32> -> vector<8x512xf32>
    %24 = arith.addf %22, %23 : vector<8x512xf32>
    %25 = arith.index_cast %19 : i32 to index
    %c0_25 = arith.constant 0 : index
    %c0_26 = arith.constant 0 : index
    %26 = vector.load %arg12[%25, %c0_25, %c0_26] : memref<8x8x512xf32, #tpu.memory_space<vmem>>, vector<1x8x512xf32>
    %27 = vector.shape_cast %26 : vector<1x8x512xf32> to vector<8x512xf32>
    %cst_27 = arith.constant dense<0.000000e+00> : vector<8x512xf32>
    %28 = tpu.matmul %18, %17, %cst_27 {dimension_numbers = #tpu.dot_dimension_numbers<[1], [0], [0], [1], [0, 0, 1, 1], [], []>} : vector<8x128xf32>, vector<128x512xf32>, vector<8x512xf32> -> vector<8x512xf32>
    %29 = arith.addf %27, %28 : vector<8x512xf32>
    %30 = vector.extract_strided_slice %24 {offsets = [0, 0], sizes = [8, 128], strides = [1, 1]} : vector<8x512xf32> to vector<8x128xf32>
    %31 = arith.negf %30 : vector<8x128xf32>
    %32 = math.exp %31 : vector<8x128xf32>
    %cst_28 = arith.constant 1.000000e+00 : f32
    %33 = vector.broadcast %cst_28 : f32 to vector<8x128xf32>
    %34 = arith.addf %33, %32 : vector<8x128xf32>
    %35 = arith.divf %33, %34 : vector<8x128xf32>
    %36 = vector.extract_strided_slice %24 {offsets = [0, 128], sizes = [8, 128], strides = [1, 1]} : vector<8x512xf32> to vector<8x128xf32>
    %37 = arith.negf %36 : vector<8x128xf32>
    %38 = math.exp %37 : vector<8x128xf32>
    %cst_29 = arith.constant 1.000000e+00 : f32
    %39 = vector.broadcast %cst_29 : f32 to vector<8x128xf32>
    %40 = arith.addf %39, %38 : vector<8x128xf32>
    %41 = arith.divf %39, %40 : vector<8x128xf32>
    %42 = vector.extract_strided_slice %24 {offsets = [0, 256], sizes = [8, 128], strides = [1, 1]} : vector<8x512xf32> to vector<8x128xf32>
    %43 = math.tanh %42 : vector<8x128xf32>
    %44 = vector.extract_strided_slice %24 {offsets = [0, 384], sizes = [8, 128], strides = [1, 1]} : vector<8x512xf32> to vector<8x128xf32>
    %45 = arith.negf %44 : vector<8x128xf32>
    %46 = math.exp %45 : vector<8x128xf32>
    %cst_30 = arith.constant 1.000000e+00 : f32
    %47 = vector.broadcast %cst_30 : f32 to vector<8x128xf32>
    %48 = arith.addf %47, %46 : vector<8x128xf32>
    %49 = arith.divf %47, %48 : vector<8x128xf32>
    %50 = arith.mulf %41, %18 : vector<8x128xf32>
    %51 = arith.mulf %35, %43 : vector<8x128xf32>
    %52 = arith.addf %50, %51 : vector<8x128xf32>
    %53 = math.tanh %52 : vector<8x128xf32>
    %54 = arith.mulf %49, %53 : vector<8x128xf32>
    %55 = vector.extract_strided_slice %29 {offsets = [0, 0], sizes = [8, 128], strides = [1, 1]} : vector<8x512xf32> to vector<8x128xf32>
    %56 = arith.negf %55 : vector<8x128xf32>
    %57 = math.exp %56 : vector<8x128xf32>
    %cst_31 = arith.constant 1.000000e+00 : f32
    %58 = vector.broadcast %cst_31 : f32 to vector<8x128xf32>
    %59 = arith.addf %58, %57 : vector<8x128xf32>
    %60 = arith.divf %58, %59 : vector<8x128xf32>
    %61 = vector.extract_strided_slice %29 {offsets = [0, 128], sizes = [8, 128], strides = [1, 1]} : vector<8x512xf32> to vector<8x128xf32>
    %62 = arith.negf %61 : vector<8x128xf32>
    %63 = math.exp %62 : vector<8x128xf32>
    %cst_32 = arith.constant 1.000000e+00 : f32
    %64 = vector.broadcast %cst_32 : f32 to vector<8x128xf32>
    %65 = arith.addf %64, %63 : vector<8x128xf32>
    %66 = arith.divf %64, %65 : vector<8x128xf32>
    %67 = vector.extract_strided_slice %29 {offsets = [0, 256], sizes = [8, 128], strides = [1, 1]} : vector<8x512xf32> to vector<8x128xf32>
    %68 = math.tanh %67 : vector<8x128xf32>
    %69 = vector.extract_strided_slice %29 {offsets = [0, 384], sizes = [8, 128], strides = [1, 1]} : vector<8x512xf32> to vector<8x128xf32>
    %70 = arith.negf %69 : vector<8x128xf32>
    %71 = math.exp %70 : vector<8x128xf32>
    %cst_33 = arith.constant 1.000000e+00 : f32
    %72 = vector.broadcast %cst_33 : f32 to vector<8x128xf32>
    %73 = arith.addf %72, %71 : vector<8x128xf32>
    %74 = arith.divf %72, %73 : vector<8x128xf32>
    %75 = arith.mulf %66, %18 : vector<8x128xf32>
    %76 = arith.mulf %60, %68 : vector<8x128xf32>
    %77 = arith.addf %75, %76 : vector<8x128xf32>
    %78 = math.tanh %77 : vector<8x128xf32>
    %79 = arith.mulf %74, %78 : vector<8x128xf32>
    %80 = vector.shape_cast %54 : vector<8x128xf32> to vector<1x8x128xf32>
    %81 = arith.index_cast %c0_i32 : i32 to index
    %c0_34 = arith.constant 0 : index
    %c0_35 = arith.constant 0 : index
    %82 = vector.load %arg13[%81, %c0_34, %c0_35] : memref<8x8x128xf32, #tpu.memory_space<vmem>>, vector<1x8x128xf32>
    tpu.vector_store %arg13[%81, %c0_34, %c0_35], %80 {strides = array<i32>} : memref<8x8x128xf32, #tpu.memory_space<vmem>>, vector<1x8x128xf32>,
    %83 = vector.shape_cast %79 : vector<8x128xf32> to vector<1x8x128xf32>
    %84 = arith.index_cast %19 : i32 to index
    %c0_36 = arith.constant 0 : index
    %c0_37 = arith.constant 0 : index
    %85 = vector.load %arg14[%84, %c0_36, %c0_37] : memref<8x8x128xf32, #tpu.memory_space<vmem>>, vector<1x8x128xf32>
    tpu.vector_store %arg14[%84, %c0_36, %c0_37], %83 {strides = array<i32>} : memref<8x8x128xf32, #tpu.memory_space<vmem>>, vector<1x8x128xf32>,
    %c1_i32 = arith.constant 1 : i32
    %c7_i32_38 = arith.constant 7 : i32
    %86 = arith.subi %c7_i32_38, %c1_i32 : i32
    %87 = arith.index_cast %c1_i32 : i32 to index
    %c0_39 = arith.constant 0 : index
    %c0_40 = arith.constant 0 : index
    %88 = vector.load %arg11[%87, %c0_39, %c0_40] : memref<8x8x512xf32, #tpu.memory_space<vmem>>, vector<1x8x512xf32>
    %89 = vector.shape_cast %88 : vector<1x8x512xf32> to vector<8x512xf32>
    %cst_41 = arith.constant dense<0.000000e+00> : vector<8x512xf32>
    %90 = tpu.matmul %54, %16, %cst_41 {dimension_numbers = #tpu.dot_dimension_numbers<[1], [0], [0], [1], [0, 0, 1, 1], [], []>} : vector<8x128xf32>, vector<128x512xf32>, vector<8x512xf32> -> vector<8x512xf32>
    %91 = arith.addf %89, %90 : vector<8x512xf32>
    %92 = arith.index_cast %86 : i32 to index
    %c0_42 = arith.constant 0 : index
    %c0_43 = arith.constant 0 : index
    %93 = vector.load %arg12[%92, %c0_42, %c0_43] : memref<8x8x512xf32, #tpu.memory_space<vmem>>, vector<1x8x512xf32>
    %94 = vector.shape_cast %93 : vector<1x8x512xf32> to vector<8x512xf32>
    %cst_44 = arith.constant dense<0.000000e+00> : vector<8x512xf32>
    %95 = tpu.matmul %79, %17, %cst_44 {dimension_numbers = #tpu.dot_dimension_numbers<[1], [0], [0], [1], [0, 0, 1, 1], [], []>} : vector<8x128xf32>, vector<128x512xf32>, vector<8x512xf32> -> vector<8x512xf32>
    %96 = arith.addf %94, %95 : vector<8x512xf32>
    %97 = vector.extract_strided_slice %91 {offsets = [0, 0], sizes = [8, 128], strides = [1, 1]} : vector<8x512xf32> to vector<8x128xf32>
    %98 = arith.negf %97 : vector<8x128xf32>
    %99 = math.exp %98 : vector<8x128xf32>
    %cst_45 = arith.constant 1.000000e+00 : f32
    %100 = vector.broadcast %cst_45 : f32 to vector<8x128xf32>
    %101 = arith.addf %100, %99 : vector<8x128xf32>
    %102 = arith.divf %100, %101 : vector<8x128xf32>
    %103 = vector.extract_strided_slice %91 {offsets = [0, 128], sizes = [8, 128], strides = [1, 1]} : vector<8x512xf32> to vector<8x128xf32>
    %104 = arith.negf %103 : vector<8x128xf32>
    %105 = math.exp %104 : vector<8x128xf32>
    %cst_46 = arith.constant 1.000000e+00 : f32
    %106 = vector.broadcast %cst_46 : f32 to vector<8x128xf32>
    %107 = arith.addf %106, %105 : vector<8x128xf32>
    %108 = arith.divf %106, %107 : vector<8x128xf32>
    %109 = vector.extract_strided_slice %91 {offsets = [0, 256], sizes = [8, 128], strides = [1, 1]} : vector<8x512xf32> to vector<8x128xf32>
    %110 = math.tanh %109 : vector<8x128xf32>
    %111 = vector.extract_strided_slice %91 {offsets = [0, 384], sizes = [8, 128], strides = [1, 1]} : vector<8x512xf32> to vector<8x128xf32>
    %112 = arith.negf %111 : vector<8x128xf32>
    %113 = math.exp %112 : vector<8x128xf32>
    %cst_47 = arith.constant 1.000000e+00 : f32
    %114 = vector.broadcast %cst_47 : f32 to vector<8x128xf32>
    %115 = arith.addf %114, %113 : vector<8x128xf32>
    %116 = arith.divf %114, %115 : vector<8x128xf32>
    %117 = arith.mulf %108, %52 : vector<8x128xf32>
    %118 = arith.mulf %102, %110 : vector<8x128xf32>
    %119 = arith.addf %117, %118 : vector<8x128xf32>
    %120 = math.tanh %119 : vector<8x128xf32>
    %121 = arith.mulf %116, %120 : vector<8x128xf32>
    %122 = vector.extract_strided_slice %96 {offsets = [0, 0], sizes = [8, 128], strides = [1, 1]} : vector<8x512xf32> to vector<8x128xf32>
    %123 = arith.negf %122 : vector<8x128xf32>
    %124 = math.exp %123 : vector<8x128xf32>
    %cst_48 = arith.constant 1.000000e+00 : f32
    %125 = vector.broadcast %cst_48 : f32 to vector<8x128xf32>
    %126 = arith.addf %125, %124 : vector<8x128xf32>
    %127 = arith.divf %125, %126 : vector<8x128xf32>
    %128 = vector.extract_strided_slice %96 {offsets = [0, 128], sizes = [8, 128], strides = [1, 1]} : vector<8x512xf32> to vector<8x128xf32>
    %129 = arith.negf %128 : vector<8x128xf32>
    %130 = math.exp %129 : vector<8x128xf32>
    %cst_49 = arith.constant 1.000000e+00 : f32
    %131 = vector.broadcast %cst_49 : f32 to vector<8x128xf32>
    %132 = arith.addf %131, %130 : vector<8x128xf32>
    %133 = arith.divf %131, %132 : vector<8x128xf32>
    %134 = vector.extract_strided_slice %96 {offsets = [0, 256], sizes = [8, 128], strides = [1, 1]} : vector<8x512xf32> to vector<8x128xf32>
    %135 = math.tanh %134 : vector<8x128xf32>
    %136 = vector.extract_strided_slice %96 {offsets = [0, 384], sizes = [8, 128], strides = [1, 1]} : vector<8x512xf32> to vector<8x128xf32>
    %137 = arith.negf %136 : vector<8x128xf32>
    %138 = math.exp %137 : vector<8x128xf32>
    %cst_50 = arith.constant 1.000000e+00 : f32
    %139 = vector.broadcast %cst_50 : f32 to vector<8x128xf32>
    %140 = arith.addf %139, %138 : vector<8x128xf32>
    %141 = arith.divf %139, %140 : vector<8x128xf32>
    %142 = arith.mulf %133, %77 : vector<8x128xf32>
    %143 = arith.mulf %127, %135 : vector<8x128xf32>
    %144 = arith.addf %142, %143 : vector<8x128xf32>
    %145 = math.tanh %144 : vector<8x128xf32>
    %146 = arith.mulf %141, %145 : vector<8x128xf32>
    %147 = vector.shape_cast %121 : vector<8x128xf32> to vector<1x8x128xf32>
    %148 = arith.index_cast %c1_i32 : i32 to index
    %c0_51 = arith.constant 0 : index
    %c0_52 = arith.constant 0 : index
    %149 = vector.load %arg13[%148, %c0_51, %c0_52] : memref<8x8x128xf32, #tpu.memory_space<vmem>>, vector<1x8x128xf32>
    tpu.vector_store %arg13[%148, %c0_51, %c0_52], %147 {strides = array<i32>} : memref<8x8x128xf32, #tpu.memory_space<vmem>>, vector<1x8x128xf32>,
    %150 = vector.shape_cast %146 : vector<8x128xf32> to vector<1x8x128xf32>
    %151 = arith.index_cast %86 : i32 to index
    %c0_53 = arith.constant 0 : index
    %c0_54 = arith.constant 0 : index
    %152 = vector.load %arg14[%151, %c0_53, %c0_54] : memref<8x8x128xf32, #tpu.memory_space<vmem>>, vector<1x8x128xf32>
    tpu.vector_store %arg14[%151, %c0_53, %c0_54], %150 {strides = array<i32>} : memref<8x8x128xf32, #tpu.memory_space<vmem>>, vector<1x8x128xf32>,
    %c2_i32 = arith.constant 2 : i32
    %c7_i32_55 = arith.constant 7 : i32
    %153 = arith.subi %c7_i32_55, %c2_i32 : i32
    %154 = arith.index_cast %c2_i32 : i32 to index
    %c0_56 = arith.constant 0 : index
    %c0_57 = arith.constant 0 : index
    %155 = vector.load %arg11[%154, %c0_56, %c0_57] : memref<8x8x512xf32, #tpu.memory_space<vmem>>, vector<1x8x512xf32>
    %156 = vector.shape_cast %155 : vector<1x8x512xf32> to vector<8x512xf32>
    %cst_58 = arith.constant dense<0.000000e+00> : vector<8x512xf32>
    %157 = tpu.matmul %121, %16, %cst_58 {dimension_numbers = #tpu.dot_dimension_numbers<[1], [0], [0], [1], [0, 0, 1, 1], [], []>} : vector<8x128xf32>, vector<128x512xf32>, vector<8x512xf32> -> vector<8x512xf32>
    %158 = arith.addf %156, %157 : vector<8x512xf32>
    %159 = arith.index_cast %153 : i32 to index
    %c0_59 = arith.constant 0 : index
    %c0_60 = arith.constant 0 : index
    %160 = vector.load %arg12[%159, %c0_59, %c0_60] : memref<8x8x512xf32, #tpu.memory_space<vmem>>, vector<1x8x512xf32>
    %161 = vector.shape_cast %160 : vector<1x8x512xf32> to vector<8x512xf32>
    %cst_61 = arith.constant dense<0.000000e+00> : vector<8x512xf32>
    %162 = tpu.matmul %146, %17, %cst_61 {dimension_numbers = #tpu.dot_dimension_numbers<[1], [0], [0], [1], [0, 0, 1, 1], [], []>} : vector<8x128xf32>, vector<128x512xf32>, vector<8x512xf32> -> vector<8x512xf32>
    %163 = arith.addf %161, %162 : vector<8x512xf32>
    %164 = vector.extract_strided_slice %158 {offsets = [0, 0], sizes = [8, 128], strides = [1, 1]} : vector<8x512xf32> to vector<8x128xf32>
    %165 = arith.negf %164 : vector<8x128xf32>
    %166 = math.exp %165 : vector<8x128xf32>
    %cst_62 = arith.constant 1.000000e+00 : f32
    %167 = vector.broadcast %cst_62 : f32 to vector<8x128xf32>
    %168 = arith.addf %167, %166 : vector<8x128xf32>
    %169 = arith.divf %167, %168 : vector<8x128xf32>
    %170 = vector.extract_strided_slice %158 {offsets = [0, 128], sizes = [8, 128], strides = [1, 1]} : vector<8x512xf32> to vector<8x128xf32>
    %171 = arith.negf %170 : vector<8x128xf32>
    %172 = math.exp %171 : vector<8x128xf32>
    %cst_63 = arith.constant 1.000000e+00 : f32
    %173 = vector.broadcast %cst_63 : f32 to vector<8x128xf32>
    %174 = arith.addf %173, %172 : vector<8x128xf32>
    %175 = arith.divf %173, %174 : vector<8x128xf32>
    %176 = vector.extract_strided_slice %158 {offsets = [0, 256], sizes = [8, 128], strides = [1, 1]} : vector<8x512xf32> to vector<8x128xf32>
    %177 = math.tanh %176 : vector<8x128xf32>
    %178 = vector.extract_strided_slice %158 {offsets = [0, 384], sizes = [8, 128], strides = [1, 1]} : vector<8x512xf32> to vector<8x128xf32>
    %179 = arith.negf %178 : vector<8x128xf32>
    %180 = math.exp %179 : vector<8x128xf32>
    %cst_64 = arith.constant 1.000000e+00 : f32
    %181 = vector.broadcast %cst_64 : f32 to vector<8x128xf32>
    %182 = arith.addf %181, %180 : vector<8x128xf32>
    %183 = arith.divf %181, %182 : vector<8x128xf32>
    %184 = arith.mulf %175, %119 : vector<8x128xf32>
    %185 = arith.mulf %169, %177 : vector<8x128xf32>
    %186 = arith.addf %184, %185 : vector<8x128xf32>
    %187 = math.tanh %186 : vector<8x128xf32>
    %188 = arith.mulf %183, %187 : vector<8x128xf32>
    %189 = vector.extract_strided_slice %163 {offsets = [0, 0], sizes = [8, 128], strides = [1, 1]} : vector<8x512xf32> to vector<8x128xf32>
    %190 = arith.negf %189 : vector<8x128xf32>
    %191 = math.exp %190 : vector<8x128xf32>
    %cst_65 = arith.constant 1.000000e+00 : f32
    %192 = vector.broadcast %cst_65 : f32 to vector<8x128xf32>
    %193 = arith.addf %192, %191 : vector<8x128xf32>
    %194 = arith.divf %192, %193 : vector<8x128xf32>
    %195 = vector.extract_strided_slice %163 {offsets = [0, 128], sizes = [8, 128], strides = [1, 1]} : vector<8x512xf32> to vector<8x128xf32>
    %196 = arith.negf %195 : vector<8x128xf32>
    %197 = math.exp %196 : vector<8x128xf32>
    %cst_66 = arith.constant 1.000000e+00 : f32
    %198 = vector.broadcast %cst_66 : f32 to vector<8x128xf32>
    %199 = arith.addf %198, %197 : vector<8x128xf32>
    %200 = arith.divf %198, %199 : vector<8x128xf32>
    %201 = vector.extract_strided_slice %163 {offsets = [0, 256], sizes = [8, 128], strides = [1, 1]} : vector<8x512xf32> to vector<8x128xf32>
    %202 = math.tanh %201 : vector<8x128xf32>
    %203 = vector.extract_strided_slice %163 {offsets = [0, 384], sizes = [8, 128], strides = [1, 1]} : vector<8x512xf32> to vector<8x128xf32>
    %204 = arith.negf %203 : vector<8x128xf32>
    %205 = math.exp %204 : vector<8x128xf32>
    %cst_67 = arith.constant 1.000000e+00 : f32
    %206 = vector.broadcast %cst_67 : f32 to vector<8x128xf32>
    %207 = arith.addf %206, %205 : vector<8x128xf32>
    %208 = arith.divf %206, %207 : vector<8x128xf32>
    %209 = arith.mulf %200, %144 : vector<8x128xf32>
    %210 = arith.mulf %194, %202 : vector<8x128xf32>
    %211 = arith.addf %209, %210 : vector<8x128xf32>
    %212 = math.tanh %211 : vector<8x128xf32>
    %213 = arith.mulf %208, %212 : vector<8x128xf32>
    %214 = vector.shape_cast %188 : vector<8x128xf32> to vector<1x8x128xf32>
    %215 = arith.index_cast %c2_i32 : i32 to index
    %c0_68 = arith.constant 0 : index
    %c0_69 = arith.constant 0 : index
    %216 = vector.load %arg13[%215, %c0_68, %c0_69] : memref<8x8x128xf32, #tpu.memory_space<vmem>>, vector<1x8x128xf32>
    tpu.vector_store %arg13[%215, %c0_68, %c0_69], %214 {strides = array<i32>} : memref<8x8x128xf32, #tpu.memory_space<vmem>>, vector<1x8x128xf32>,
    %217 = vector.shape_cast %213 : vector<8x128xf32> to vector<1x8x128xf32>
    %218 = arith.index_cast %153 : i32 to index
    %c0_70 = arith.constant 0 : index
    %c0_71 = arith.constant 0 : index
    %219 = vector.load %arg14[%218, %c0_70, %c0_71] : memref<8x8x128xf32, #tpu.memory_space<vmem>>, vector<1x8x128xf32>
    tpu.vector_store %arg14[%218, %c0_70, %c0_71], %217 {strides = array<i32>} : memref<8x8x128xf32, #tpu.memory_space<vmem>>, vector<1x8x128xf32>,
    %c3_i32 = arith.constant 3 : i32
    %c7_i32_72 = arith.constant 7 : i32
    %220 = arith.subi %c7_i32_72, %c3_i32 : i32
    %221 = arith.index_cast %c3_i32 : i32 to index
    %c0_73 = arith.constant 0 : index
    %c0_74 = arith.constant 0 : index
    %222 = vector.load %arg11[%221, %c0_73, %c0_74] : memref<8x8x512xf32, #tpu.memory_space<vmem>>, vector<1x8x512xf32>
    %223 = vector.shape_cast %222 : vector<1x8x512xf32> to vector<8x512xf32>
    %cst_75 = arith.constant dense<0.000000e+00> : vector<8x512xf32>
    %224 = tpu.matmul %188, %16, %cst_75 {dimension_numbers = #tpu.dot_dimension_numbers<[1], [0], [0], [1], [0, 0, 1, 1], [], []>} : vector<8x128xf32>, vector<128x512xf32>, vector<8x512xf32> -> vector<8x512xf32>
    %225 = arith.addf %223, %224 : vector<8x512xf32>
    %226 = arith.index_cast %220 : i32 to index
    %c0_76 = arith.constant 0 : index
    %c0_77 = arith.constant 0 : index
    %227 = vector.load %arg12[%226, %c0_76, %c0_77] : memref<8x8x512xf32, #tpu.memory_space<vmem>>, vector<1x8x512xf32>
    %228 = vector.shape_cast %227 : vector<1x8x512xf32> to vector<8x512xf32>
    %cst_78 = arith.constant dense<0.000000e+00> : vector<8x512xf32>
    %229 = tpu.matmul %213, %17, %cst_78 {dimension_numbers = #tpu.dot_dimension_numbers<[1], [0], [0], [1], [0, 0, 1, 1], [], []>} : vector<8x128xf32>, vector<128x512xf32>, vector<8x512xf32> -> vector<8x512xf32>
    %230 = arith.addf %228, %229 : vector<8x512xf32>
    %231 = vector.extract_strided_slice %225 {offsets = [0, 0], sizes = [8, 128], strides = [1, 1]} : vector<8x512xf32> to vector<8x128xf32>
    %232 = arith.negf %231 : vector<8x128xf32>
    %233 = math.exp %232 : vector<8x128xf32>
    %cst_79 = arith.constant 1.000000e+00 : f32
    %234 = vector.broadcast %cst_79 : f32 to vector<8x128xf32>
    %235 = arith.addf %234, %233 : vector<8x128xf32>
    %236 = arith.divf %234, %235 : vector<8x128xf32>
    %237 = vector.extract_strided_slice %225 {offsets = [0, 128], sizes = [8, 128], strides = [1, 1]} : vector<8x512xf32> to vector<8x128xf32>
    %238 = arith.negf %237 : vector<8x128xf32>
    %239 = math.exp %238 : vector<8x128xf32>
    %cst_80 = arith.constant 1.000000e+00 : f32
    %240 = vector.broadcast %cst_80 : f32 to vector<8x128xf32>
    %241 = arith.addf %240, %239 : vector<8x128xf32>
    %242 = arith.divf %240, %241 : vector<8x128xf32>
    %243 = vector.extract_strided_slice %225 {offsets = [0, 256], sizes = [8, 128], strides = [1, 1]} : vector<8x512xf32> to vector<8x128xf32>
    %244 = math.tanh %243 : vector<8x128xf32>
    %245 = vector.extract_strided_slice %225 {offsets = [0, 384], sizes = [8, 128], strides = [1, 1]} : vector<8x512xf32> to vector<8x128xf32>
    %246 = arith.negf %245 : vector<8x128xf32>
    %247 = math.exp %246 : vector<8x128xf32>
    %cst_81 = arith.constant 1.000000e+00 : f32
    %248 = vector.broadcast %cst_81 : f32 to vector<8x128xf32>
    %249 = arith.addf %248, %247 : vector<8x128xf32>
    %250 = arith.divf %248, %249 : vector<8x128xf32>
    %251 = arith.mulf %242, %186 : vector<8x128xf32>
    %252 = arith.mulf %236, %244 : vector<8x128xf32>
    %253 = arith.addf %251, %252 : vector<8x128xf32>
    %254 = math.tanh %253 : vector<8x128xf32>
    %255 = arith.mulf %250, %254 : vector<8x128xf32>
    %256 = vector.extract_strided_slice %230 {offsets = [0, 0], sizes = [8, 128], strides = [1, 1]} : vector<8x512xf32> to vector<8x128xf32>
    %257 = arith.negf %256 : vector<8x128xf32>
    %258 = math.exp %257 : vector<8x128xf32>
    %cst_82 = arith.constant 1.000000e+00 : f32
    %259 = vector.broadcast %cst_82 : f32 to vector<8x128xf32>
    %260 = arith.addf %259, %258 : vector<8x128xf32>
    %261 = arith.divf %259, %260 : vector<8x128xf32>
    %262 = vector.extract_strided_slice %230 {offsets = [0, 128], sizes = [8, 128], strides = [1, 1]} : vector<8x512xf32> to vector<8x128xf32>
    %263 = arith.negf %262 : vector<8x128xf32>
    %264 = math.exp %263 : vector<8x128xf32>
    %cst_83 = arith.constant 1.000000e+00 : f32
    %265 = vector.broadcast %cst_83 : f32 to vector<8x128xf32>
    %266 = arith.addf %265, %264 : vector<8x128xf32>
    %267 = arith.divf %265, %266 : vector<8x128xf32>
    %268 = vector.extract_strided_slice %230 {offsets = [0, 256], sizes = [8, 128], strides = [1, 1]} : vector<8x512xf32> to vector<8x128xf32>
    %269 = math.tanh %268 : vector<8x128xf32>
    %270 = vector.extract_strided_slice %230 {offsets = [0, 384], sizes = [8, 128], strides = [1, 1]} : vector<8x512xf32> to vector<8x128xf32>
    %271 = arith.negf %270 : vector<8x128xf32>
    %272 = math.exp %271 : vector<8x128xf32>
    %cst_84 = arith.constant 1.000000e+00 : f32
    %273 = vector.broadcast %cst_84 : f32 to vector<8x128xf32>
    %274 = arith.addf %273, %272 : vector<8x128xf32>
    %275 = arith.divf %273, %274 : vector<8x128xf32>
    %276 = arith.mulf %267, %211 : vector<8x128xf32>
    %277 = arith.mulf %261, %269 : vector<8x128xf32>
    %278 = arith.addf %276, %277 : vector<8x128xf32>
    %279 = math.tanh %278 : vector<8x128xf32>
    %280 = arith.mulf %275, %279 : vector<8x128xf32>
    %281 = vector.shape_cast %255 : vector<8x128xf32> to vector<1x8x128xf32>
    %282 = arith.index_cast %c3_i32 : i32 to index
    %c0_85 = arith.constant 0 : index
    %c0_86 = arith.constant 0 : index
    %283 = vector.load %arg13[%282, %c0_85, %c0_86] : memref<8x8x128xf32, #tpu.memory_space<vmem>>, vector<1x8x128xf32>
    tpu.vector_store %arg13[%282, %c0_85, %c0_86], %281 {strides = array<i32>} : memref<8x8x128xf32, #tpu.memory_space<vmem>>, vector<1x8x128xf32>,
    %284 = vector.shape_cast %280 : vector<8x128xf32> to vector<1x8x128xf32>
    %285 = arith.index_cast %220 : i32 to index
    %c0_87 = arith.constant 0 : index
    %c0_88 = arith.constant 0 : index
    %286 = vector.load %arg14[%285, %c0_87, %c0_88] : memref<8x8x128xf32, #tpu.memory_space<vmem>>, vector<1x8x128xf32>
    tpu.vector_store %arg14[%285, %c0_87, %c0_88], %284 {strides = array<i32>} : memref<8x8x128xf32, #tpu.memory_space<vmem>>, vector<1x8x128xf32>,
    %c4_i32 = arith.constant 4 : i32
    %c7_i32_89 = arith.constant 7 : i32
    %287 = arith.subi %c7_i32_89, %c4_i32 : i32
    %288 = arith.index_cast %c4_i32 : i32 to index
    %c0_90 = arith.constant 0 : index
    %c0_91 = arith.constant 0 : index
    %289 = vector.load %arg11[%288, %c0_90, %c0_91] : memref<8x8x512xf32, #tpu.memory_space<vmem>>, vector<1x8x512xf32>
    %290 = vector.shape_cast %289 : vector<1x8x512xf32> to vector<8x512xf32>
    %cst_92 = arith.constant dense<0.000000e+00> : vector<8x512xf32>
    %291 = tpu.matmul %255, %16, %cst_92 {dimension_numbers = #tpu.dot_dimension_numbers<[1], [0], [0], [1], [0, 0, 1, 1], [], []>} : vector<8x128xf32>, vector<128x512xf32>, vector<8x512xf32> -> vector<8x512xf32>
    %292 = arith.addf %290, %291 : vector<8x512xf32>
    %293 = arith.index_cast %287 : i32 to index
    %c0_93 = arith.constant 0 : index
    %c0_94 = arith.constant 0 : index
    %294 = vector.load %arg12[%293, %c0_93, %c0_94] : memref<8x8x512xf32, #tpu.memory_space<vmem>>, vector<1x8x512xf32>
    %295 = vector.shape_cast %294 : vector<1x8x512xf32> to vector<8x512xf32>
    %cst_95 = arith.constant dense<0.000000e+00> : vector<8x512xf32>
    %296 = tpu.matmul %280, %17, %cst_95 {dimension_numbers = #tpu.dot_dimension_numbers<[1], [0], [0], [1], [0, 0, 1, 1], [], []>} : vector<8x128xf32>, vector<128x512xf32>, vector<8x512xf32> -> vector<8x512xf32>
    %297 = arith.addf %295, %296 : vector<8x512xf32>
    %298 = vector.extract_strided_slice %292 {offsets = [0, 0], sizes = [8, 128], strides = [1, 1]} : vector<8x512xf32> to vector<8x128xf32>
    %299 = arith.negf %298 : vector<8x128xf32>
    %300 = math.exp %299 : vector<8x128xf32>
    %cst_96 = arith.constant 1.000000e+00 : f32
    %301 = vector.broadcast %cst_96 : f32 to vector<8x128xf32>
    %302 = arith.addf %301, %300 : vector<8x128xf32>
    %303 = arith.divf %301, %302 : vector<8x128xf32>
    %304 = vector.extract_strided_slice %292 {offsets = [0, 128], sizes = [8, 128], strides = [1, 1]} : vector<8x512xf32> to vector<8x128xf32>
    %305 = arith.negf %304 : vector<8x128xf32>
    %306 = math.exp %305 : vector<8x128xf32>
    %cst_97 = arith.constant 1.000000e+00 : f32
    %307 = vector.broadcast %cst_97 : f32 to vector<8x128xf32>
    %308 = arith.addf %307, %306 : vector<8x128xf32>
    %309 = arith.divf %307, %308 : vector<8x128xf32>
    %310 = vector.extract_strided_slice %292 {offsets = [0, 256], sizes = [8, 128], strides = [1, 1]} : vector<8x512xf32> to vector<8x128xf32>
    %311 = math.tanh %310 : vector<8x128xf32>
    %312 = vector.extract_strided_slice %292 {offsets = [0, 384], sizes = [8, 128], strides = [1, 1]} : vector<8x512xf32> to vector<8x128xf32>
    %313 = arith.negf %312 : vector<8x128xf32>
    %314 = math.exp %313 : vector<8x128xf32>
    %cst_98 = arith.constant 1.000000e+00 : f32
    %315 = vector.broadcast %cst_98 : f32 to vector<8x128xf32>
    %316 = arith.addf %315, %314 : vector<8x128xf32>
    %317 = arith.divf %315, %316 : vector<8x128xf32>
    %318 = arith.mulf %309, %253 : vector<8x128xf32>
    %319 = arith.mulf %303, %311 : vector<8x128xf32>
    %320 = arith.addf %318, %319 : vector<8x128xf32>
    %321 = math.tanh %320 : vector<8x128xf32>
    %322 = arith.mulf %317, %321 : vector<8x128xf32>
    %323 = vector.extract_strided_slice %297 {offsets = [0, 0], sizes = [8, 128], strides = [1, 1]} : vector<8x512xf32> to vector<8x128xf32>
    %324 = arith.negf %323 : vector<8x128xf32>
    %325 = math.exp %324 : vector<8x128xf32>
    %cst_99 = arith.constant 1.000000e+00 : f32
    %326 = vector.broadcast %cst_99 : f32 to vector<8x128xf32>
    %327 = arith.addf %326, %325 : vector<8x128xf32>
    %328 = arith.divf %326, %327 : vector<8x128xf32>
    %329 = vector.extract_strided_slice %297 {offsets = [0, 128], sizes = [8, 128], strides = [1, 1]} : vector<8x512xf32> to vector<8x128xf32>
    %330 = arith.negf %329 : vector<8x128xf32>
    %331 = math.exp %330 : vector<8x128xf32>
    %cst_100 = arith.constant 1.000000e+00 : f32
    %332 = vector.broadcast %cst_100 : f32 to vector<8x128xf32>
    %333 = arith.addf %332, %331 : vector<8x128xf32>
    %334 = arith.divf %332, %333 : vector<8x128xf32>
    %335 = vector.extract_strided_slice %297 {offsets = [0, 256], sizes = [8, 128], strides = [1, 1]} : vector<8x512xf32> to vector<8x128xf32>
    %336 = math.tanh %335 : vector<8x128xf32>
    %337 = vector.extract_strided_slice %297 {offsets = [0, 384], sizes = [8, 128], strides = [1, 1]} : vector<8x512xf32> to vector<8x128xf32>
    %338 = arith.negf %337 : vector<8x128xf32>
    %339 = math.exp %338 : vector<8x128xf32>
    %cst_101 = arith.constant 1.000000e+00 : f32
    %340 = vector.broadcast %cst_101 : f32 to vector<8x128xf32>
    %341 = arith.addf %340, %339 : vector<8x128xf32>
    %342 = arith.divf %340, %341 : vector<8x128xf32>
    %343 = arith.mulf %334, %278 : vector<8x128xf32>
    %344 = arith.mulf %328, %336 : vector<8x128xf32>
    %345 = arith.addf %343, %344 : vector<8x128xf32>
    %346 = math.tanh %345 : vector<8x128xf32>
    %347 = arith.mulf %342, %346 : vector<8x128xf32>
    %348 = vector.shape_cast %322 : vector<8x128xf32> to vector<1x8x128xf32>
    %349 = arith.index_cast %c4_i32 : i32 to index
    %c0_102 = arith.constant 0 : index
    %c0_103 = arith.constant 0 : index
    %350 = vector.load %arg13[%349, %c0_102, %c0_103] : memref<8x8x128xf32, #tpu.memory_space<vmem>>, vector<1x8x128xf32>
    tpu.vector_store %arg13[%349, %c0_102, %c0_103], %348 {strides = array<i32>} : memref<8x8x128xf32, #tpu.memory_space<vmem>>, vector<1x8x128xf32>,
    %351 = vector.shape_cast %347 : vector<8x128xf32> to vector<1x8x128xf32>
    %352 = arith.index_cast %287 : i32 to index
    %c0_104 = arith.constant 0 : index
    %c0_105 = arith.constant 0 : index
    %353 = vector.load %arg14[%352, %c0_104, %c0_105] : memref<8x8x128xf32, #tpu.memory_space<vmem>>, vector<1x8x128xf32>
    tpu.vector_store %arg14[%352, %c0_104, %c0_105], %351 {strides = array<i32>} : memref<8x8x128xf32, #tpu.memory_space<vmem>>, vector<1x8x128xf32>,
    %c5_i32 = arith.constant 5 : i32
    %c7_i32_106 = arith.constant 7 : i32
    %354 = arith.subi %c7_i32_106, %c5_i32 : i32
    %355 = arith.index_cast %c5_i32 : i32 to index
    %c0_107 = arith.constant 0 : index
    %c0_108 = arith.constant 0 : index
    %356 = vector.load %arg11[%355, %c0_107, %c0_108] : memref<8x8x512xf32, #tpu.memory_space<vmem>>, vector<1x8x512xf32>
    %357 = vector.shape_cast %356 : vector<1x8x512xf32> to vector<8x512xf32>
    %cst_109 = arith.constant dense<0.000000e+00> : vector<8x512xf32>
    %358 = tpu.matmul %322, %16, %cst_109 {dimension_numbers = #tpu.dot_dimension_numbers<[1], [0], [0], [1], [0, 0, 1, 1], [], []>} : vector<8x128xf32>, vector<128x512xf32>, vector<8x512xf32> -> vector<8x512xf32>
    %359 = arith.addf %357, %358 : vector<8x512xf32>
    %360 = arith.index_cast %354 : i32 to index
    %c0_110 = arith.constant 0 : index
    %c0_111 = arith.constant 0 : index
    %361 = vector.load %arg12[%360, %c0_110, %c0_111] : memref<8x8x512xf32, #tpu.memory_space<vmem>>, vector<1x8x512xf32>
    %362 = vector.shape_cast %361 : vector<1x8x512xf32> to vector<8x512xf32>
    %cst_112 = arith.constant dense<0.000000e+00> : vector<8x512xf32>
    %363 = tpu.matmul %347, %17, %cst_112 {dimension_numbers = #tpu.dot_dimension_numbers<[1], [0], [0], [1], [0, 0, 1, 1], [], []>} : vector<8x128xf32>, vector<128x512xf32>, vector<8x512xf32> -> vector<8x512xf32>
    %364 = arith.addf %362, %363 : vector<8x512xf32>
    %365 = vector.extract_strided_slice %359 {offsets = [0, 0], sizes = [8, 128], strides = [1, 1]} : vector<8x512xf32> to vector<8x128xf32>
    %366 = arith.negf %365 : vector<8x128xf32>
    %367 = math.exp %366 : vector<8x128xf32>
    %cst_113 = arith.constant 1.000000e+00 : f32
    %368 = vector.broadcast %cst_113 : f32 to vector<8x128xf32>
    %369 = arith.addf %368, %367 : vector<8x128xf32>
    %370 = arith.divf %368, %369 : vector<8x128xf32>
    %371 = vector.extract_strided_slice %359 {offsets = [0, 128], sizes = [8, 128], strides = [1, 1]} : vector<8x512xf32> to vector<8x128xf32>
    %372 = arith.negf %371 : vector<8x128xf32>
    %373 = math.exp %372 : vector<8x128xf32>
    %cst_114 = arith.constant 1.000000e+00 : f32
    %374 = vector.broadcast %cst_114 : f32 to vector<8x128xf32>
    %375 = arith.addf %374, %373 : vector<8x128xf32>
    %376 = arith.divf %374, %375 : vector<8x128xf32>
    %377 = vector.extract_strided_slice %359 {offsets = [0, 256], sizes = [8, 128], strides = [1, 1]} : vector<8x512xf32> to vector<8x128xf32>
    %378 = math.tanh %377 : vector<8x128xf32>
    %379 = vector.extract_strided_slice %359 {offsets = [0, 384], sizes = [8, 128], strides = [1, 1]} : vector<8x512xf32> to vector<8x128xf32>
    %380 = arith.negf %379 : vector<8x128xf32>
    %381 = math.exp %380 : vector<8x128xf32>
    %cst_115 = arith.constant 1.000000e+00 : f32
    %382 = vector.broadcast %cst_115 : f32 to vector<8x128xf32>
    %383 = arith.addf %382, %381 : vector<8x128xf32>
    %384 = arith.divf %382, %383 : vector<8x128xf32>
    %385 = arith.mulf %376, %320 : vector<8x128xf32>
    %386 = arith.mulf %370, %378 : vector<8x128xf32>
    %387 = arith.addf %385, %386 : vector<8x128xf32>
    %388 = math.tanh %387 : vector<8x128xf32>
    %389 = arith.mulf %384, %388 : vector<8x128xf32>
    %390 = vector.extract_strided_slice %364 {offsets = [0, 0], sizes = [8, 128], strides = [1, 1]} : vector<8x512xf32> to vector<8x128xf32>
    %391 = arith.negf %390 : vector<8x128xf32>
    %392 = math.exp %391 : vector<8x128xf32>
    %cst_116 = arith.constant 1.000000e+00 : f32
    %393 = vector.broadcast %cst_116 : f32 to vector<8x128xf32>
    %394 = arith.addf %393, %392 : vector<8x128xf32>
    %395 = arith.divf %393, %394 : vector<8x128xf32>
    %396 = vector.extract_strided_slice %364 {offsets = [0, 128], sizes = [8, 128], strides = [1, 1]} : vector<8x512xf32> to vector<8x128xf32>
    %397 = arith.negf %396 : vector<8x128xf32>
    %398 = math.exp %397 : vector<8x128xf32>
    %cst_117 = arith.constant 1.000000e+00 : f32
    %399 = vector.broadcast %cst_117 : f32 to vector<8x128xf32>
    %400 = arith.addf %399, %398 : vector<8x128xf32>
    %401 = arith.divf %399, %400 : vector<8x128xf32>
    %402 = vector.extract_strided_slice %364 {offsets = [0, 256], sizes = [8, 128], strides = [1, 1]} : vector<8x512xf32> to vector<8x128xf32>
    %403 = math.tanh %402 : vector<8x128xf32>
    %404 = vector.extract_strided_slice %364 {offsets = [0, 384], sizes = [8, 128], strides = [1, 1]} : vector<8x512xf32> to vector<8x128xf32>
    %405 = arith.negf %404 : vector<8x128xf32>
    %406 = math.exp %405 : vector<8x128xf32>
    %cst_118 = arith.constant 1.000000e+00 : f32
    %407 = vector.broadcast %cst_118 : f32 to vector<8x128xf32>
    %408 = arith.addf %407, %406 : vector<8x128xf32>
    %409 = arith.divf %407, %408 : vector<8x128xf32>
    %410 = arith.mulf %401, %345 : vector<8x128xf32>
    %411 = arith.mulf %395, %403 : vector<8x128xf32>
    %412 = arith.addf %410, %411 : vector<8x128xf32>
    %413 = math.tanh %412 : vector<8x128xf32>
    %414 = arith.mulf %409, %413 : vector<8x128xf32>
    %415 = vector.shape_cast %389 : vector<8x128xf32> to vector<1x8x128xf32>
    %416 = arith.index_cast %c5_i32 : i32 to index
    %c0_119 = arith.constant 0 : index
    %c0_120 = arith.constant 0 : index
    %417 = vector.load %arg13[%416, %c0_119, %c0_120] : memref<8x8x128xf32, #tpu.memory_space<vmem>>, vector<1x8x128xf32>
    tpu.vector_store %arg13[%416, %c0_119, %c0_120], %415 {strides = array<i32>} : memref<8x8x128xf32, #tpu.memory_space<vmem>>, vector<1x8x128xf32>,
    %418 = vector.shape_cast %414 : vector<8x128xf32> to vector<1x8x128xf32>
    %419 = arith.index_cast %354 : i32 to index
    %c0_121 = arith.constant 0 : index
    %c0_122 = arith.constant 0 : index
    %420 = vector.load %arg14[%419, %c0_121, %c0_122] : memref<8x8x128xf32, #tpu.memory_space<vmem>>, vector<1x8x128xf32>
    tpu.vector_store %arg14[%419, %c0_121, %c0_122], %418 {strides = array<i32>} : memref<8x8x128xf32, #tpu.memory_space<vmem>>, vector<1x8x128xf32>,
    %c6_i32 = arith.constant 6 : i32
    %c7_i32_123 = arith.constant 7 : i32
    %421 = arith.subi %c7_i32_123, %c6_i32 : i32
    %422 = arith.index_cast %c6_i32 : i32 to index
    %c0_124 = arith.constant 0 : index
    %c0_125 = arith.constant 0 : index
    %423 = vector.load %arg11[%422, %c0_124, %c0_125] : memref<8x8x512xf32, #tpu.memory_space<vmem>>, vector<1x8x512xf32>
    %424 = vector.shape_cast %423 : vector<1x8x512xf32> to vector<8x512xf32>
    %cst_126 = arith.constant dense<0.000000e+00> : vector<8x512xf32>
    %425 = tpu.matmul %389, %16, %cst_126 {dimension_numbers = #tpu.dot_dimension_numbers<[1], [0], [0], [1], [0, 0, 1, 1], [], []>} : vector<8x128xf32>, vector<128x512xf32>, vector<8x512xf32> -> vector<8x512xf32>
    %426 = arith.addf %424, %425 : vector<8x512xf32>
    %427 = arith.index_cast %421 : i32 to index
    %c0_127 = arith.constant 0 : index
    %c0_128 = arith.constant 0 : index
    %428 = vector.load %arg12[%427, %c0_127, %c0_128] : memref<8x8x512xf32, #tpu.memory_space<vmem>>, vector<1x8x512xf32>
    %429 = vector.shape_cast %428 : vector<1x8x512xf32> to vector<8x512xf32>
    %cst_129 = arith.constant dense<0.000000e+00> : vector<8x512xf32>
    %430 = tpu.matmul %414, %17, %cst_129 {dimension_numbers = #tpu.dot_dimension_numbers<[1], [0], [0], [1], [0, 0, 1, 1], [], []>} : vector<8x128xf32>, vector<128x512xf32>, vector<8x512xf32> -> vector<8x512xf32>
    %431 = arith.addf %429, %430 : vector<8x512xf32>
    %432 = vector.extract_strided_slice %426 {offsets = [0, 0], sizes = [8, 128], strides = [1, 1]} : vector<8x512xf32> to vector<8x128xf32>
    %433 = arith.negf %432 : vector<8x128xf32>
    %434 = math.exp %433 : vector<8x128xf32>
    %cst_130 = arith.constant 1.000000e+00 : f32
    %435 = vector.broadcast %cst_130 : f32 to vector<8x128xf32>
    %436 = arith.addf %435, %434 : vector<8x128xf32>
    %437 = arith.divf %435, %436 : vector<8x128xf32>
    %438 = vector.extract_strided_slice %426 {offsets = [0, 128], sizes = [8, 128], strides = [1, 1]} : vector<8x512xf32> to vector<8x128xf32>
    %439 = arith.negf %438 : vector<8x128xf32>
    %440 = math.exp %439 : vector<8x128xf32>
    %cst_131 = arith.constant 1.000000e+00 : f32
    %441 = vector.broadcast %cst_131 : f32 to vector<8x128xf32>
    %442 = arith.addf %441, %440 : vector<8x128xf32>
    %443 = arith.divf %441, %442 : vector<8x128xf32>
    %444 = vector.extract_strided_slice %426 {offsets = [0, 256], sizes = [8, 128], strides = [1, 1]} : vector<8x512xf32> to vector<8x128xf32>
    %445 = math.tanh %444 : vector<8x128xf32>
    %446 = vector.extract_strided_slice %426 {offsets = [0, 384], sizes = [8, 128], strides = [1, 1]} : vector<8x512xf32> to vector<8x128xf32>
    %447 = arith.negf %446 : vector<8x128xf32>
    %448 = math.exp %447 : vector<8x128xf32>
    %cst_132 = arith.constant 1.000000e+00 : f32
    %449 = vector.broadcast %cst_132 : f32 to vector<8x128xf32>
    %450 = arith.addf %449, %448 : vector<8x128xf32>
    %451 = arith.divf %449, %450 : vector<8x128xf32>
    %452 = arith.mulf %443, %387 : vector<8x128xf32>
    %453 = arith.mulf %437, %445 : vector<8x128xf32>
    %454 = arith.addf %452, %453 : vector<8x128xf32>
    %455 = math.tanh %454 : vector<8x128xf32>
    %456 = arith.mulf %451, %455 : vector<8x128xf32>
    %457 = vector.extract_strided_slice %431 {offsets = [0, 0], sizes = [8, 128], strides = [1, 1]} : vector<8x512xf32> to vector<8x128xf32>
    %458 = arith.negf %457 : vector<8x128xf32>
    %459 = math.exp %458 : vector<8x128xf32>
    %cst_133 = arith.constant 1.000000e+00 : f32
    %460 = vector.broadcast %cst_133 : f32 to vector<8x128xf32>
    %461 = arith.addf %460, %459 : vector<8x128xf32>
    %462 = arith.divf %460, %461 : vector<8x128xf32>
    %463 = vector.extract_strided_slice %431 {offsets = [0, 128], sizes = [8, 128], strides = [1, 1]} : vector<8x512xf32> to vector<8x128xf32>
    %464 = arith.negf %463 : vector<8x128xf32>
    %465 = math.exp %464 : vector<8x128xf32>
    %cst_134 = arith.constant 1.000000e+00 : f32
    %466 = vector.broadcast %cst_134 : f32 to vector<8x128xf32>
    %467 = arith.addf %466, %465 : vector<8x128xf32>
    %468 = arith.divf %466, %467 : vector<8x128xf32>
    %469 = vector.extract_strided_slice %431 {offsets = [0, 256], sizes = [8, 128], strides = [1, 1]} : vector<8x512xf32> to vector<8x128xf32>
    %470 = math.tanh %469 : vector<8x128xf32>
    %471 = vector.extract_strided_slice %431 {offsets = [0, 384], sizes = [8, 128], strides = [1, 1]} : vector<8x512xf32> to vector<8x128xf32>
    %472 = arith.negf %471 : vector<8x128xf32>
    %473 = math.exp %472 : vector<8x128xf32>
    %cst_135 = arith.constant 1.000000e+00 : f32
    %474 = vector.broadcast %cst_135 : f32 to vector<8x128xf32>
    %475 = arith.addf %474, %473 : vector<8x128xf32>
    %476 = arith.divf %474, %475 : vector<8x128xf32>
    %477 = arith.mulf %468, %412 : vector<8x128xf32>
    %478 = arith.mulf %462, %470 : vector<8x128xf32>
    %479 = arith.addf %477, %478 : vector<8x128xf32>
    %480 = math.tanh %479 : vector<8x128xf32>
    %481 = arith.mulf %476, %480 : vector<8x128xf32>
    %482 = vector.shape_cast %456 : vector<8x128xf32> to vector<1x8x128xf32>
    %483 = arith.index_cast %c6_i32 : i32 to index
    %c0_136 = arith.constant 0 : index
    %c0_137 = arith.constant 0 : index
    %484 = vector.load %arg13[%483, %c0_136, %c0_137] : memref<8x8x128xf32, #tpu.memory_space<vmem>>, vector<1x8x128xf32>
    tpu.vector_store %arg13[%483, %c0_136, %c0_137], %482 {strides = array<i32>} : memref<8x8x128xf32, #tpu.memory_space<vmem>>, vector<1x8x128xf32>,
    %485 = vector.shape_cast %481 : vector<8x128xf32> to vector<1x8x128xf32>
    %486 = arith.index_cast %421 : i32 to index
    %c0_138 = arith.constant 0 : index
    %c0_139 = arith.constant 0 : index
    %487 = vector.load %arg14[%486, %c0_138, %c0_139] : memref<8x8x128xf32, #tpu.memory_space<vmem>>, vector<1x8x128xf32>
    tpu.vector_store %arg14[%486, %c0_138, %c0_139], %485 {strides = array<i32>} : memref<8x8x128xf32, #tpu.memory_space<vmem>>, vector<1x8x128xf32>,
    %c7_i32_140 = arith.constant 7 : i32
    %c7_i32_141 = arith.constant 7 : i32
    %488 = arith.subi %c7_i32_141, %c7_i32_140 : i32
    %489 = arith.index_cast %c7_i32_140 : i32 to index
    %c0_142 = arith.constant 0 : index
    %c0_143 = arith.constant 0 : index
    %490 = vector.load %arg11[%489, %c0_142, %c0_143] : memref<8x8x512xf32, #tpu.memory_space<vmem>>, vector<1x8x512xf32>
    %491 = vector.shape_cast %490 : vector<1x8x512xf32> to vector<8x512xf32>
    %cst_144 = arith.constant dense<0.000000e+00> : vector<8x512xf32>
    %492 = tpu.matmul %456, %16, %cst_144 {dimension_numbers = #tpu.dot_dimension_numbers<[1], [0], [0], [1], [0, 0, 1, 1], [], []>} : vector<8x128xf32>, vector<128x512xf32>, vector<8x512xf32> -> vector<8x512xf32>
    %493 = arith.addf %491, %492 : vector<8x512xf32>
    %494 = arith.index_cast %488 : i32 to index
    %c0_145 = arith.constant 0 : index
    %c0_146 = arith.constant 0 : index
    %495 = vector.load %arg12[%494, %c0_145, %c0_146] : memref<8x8x512xf32, #tpu.memory_space<vmem>>, vector<1x8x512xf32>
    %496 = vector.shape_cast %495 : vector<1x8x512xf32> to vector<8x512xf32>
    %cst_147 = arith.constant dense<0.000000e+00> : vector<8x512xf32>
    %497 = tpu.matmul %481, %17, %cst_147 {dimension_numbers = #tpu.dot_dimension_numbers<[1], [0], [0], [1], [0, 0, 1, 1], [], []>} : vector<8x128xf32>, vector<128x512xf32>, vector<8x512xf32> -> vector<8x512xf32>
    %498 = arith.addf %496, %497 : vector<8x512xf32>
    %499 = vector.extract_strided_slice %493 {offsets = [0, 0], sizes = [8, 128], strides = [1, 1]} : vector<8x512xf32> to vector<8x128xf32>
    %500 = arith.negf %499 : vector<8x128xf32>
    %501 = math.exp %500 : vector<8x128xf32>
    %cst_148 = arith.constant 1.000000e+00 : f32
    %502 = vector.broadcast %cst_148 : f32 to vector<8x128xf32>
    %503 = arith.addf %502, %501 : vector<8x128xf32>
    %504 = arith.divf %502, %503 : vector<8x128xf32>
    %505 = vector.extract_strided_slice %493 {offsets = [0, 128], sizes = [8, 128], strides = [1, 1]} : vector<8x512xf32> to vector<8x128xf32>
    %506 = arith.negf %505 : vector<8x128xf32>
    %507 = math.exp %506 : vector<8x128xf32>
    %cst_149 = arith.constant 1.000000e+00 : f32
    %508 = vector.broadcast %cst_149 : f32 to vector<8x128xf32>
    %509 = arith.addf %508, %507 : vector<8x128xf32>
    %510 = arith.divf %508, %509 : vector<8x128xf32>
    %511 = vector.extract_strided_slice %493 {offsets = [0, 256], sizes = [8, 128], strides = [1, 1]} : vector<8x512xf32> to vector<8x128xf32>
    %512 = math.tanh %511 : vector<8x128xf32>
    %513 = vector.extract_strided_slice %493 {offsets = [0, 384], sizes = [8, 128], strides = [1, 1]} : vector<8x512xf32> to vector<8x128xf32>
    %514 = arith.negf %513 : vector<8x128xf32>
    %515 = math.exp %514 : vector<8x128xf32>
    %cst_150 = arith.constant 1.000000e+00 : f32
    %516 = vector.broadcast %cst_150 : f32 to vector<8x128xf32>
    %517 = arith.addf %516, %515 : vector<8x128xf32>
    %518 = arith.divf %516, %517 : vector<8x128xf32>
    %519 = arith.mulf %510, %454 : vector<8x128xf32>
    %520 = arith.mulf %504, %512 : vector<8x128xf32>
    %521 = arith.addf %519, %520 : vector<8x128xf32>
    %522 = math.tanh %521 : vector<8x128xf32>
    %523 = arith.mulf %518, %522 : vector<8x128xf32>
    %524 = vector.extract_strided_slice %498 {offsets = [0, 0], sizes = [8, 128], strides = [1, 1]} : vector<8x512xf32> to vector<8x128xf32>
    %525 = arith.negf %524 : vector<8x128xf32>
    %526 = math.exp %525 : vector<8x128xf32>
    %cst_151 = arith.constant 1.000000e+00 : f32
    %527 = vector.broadcast %cst_151 : f32 to vector<8x128xf32>
    %528 = arith.addf %527, %526 : vector<8x128xf32>
    %529 = arith.divf %527, %528 : vector<8x128xf32>
    %530 = vector.extract_strided_slice %498 {offsets = [0, 128], sizes = [8, 128], strides = [1, 1]} : vector<8x512xf32> to vector<8x128xf32>
    %531 = arith.negf %530 : vector<8x128xf32>
    %532 = math.exp %531 : vector<8x128xf32>
    %cst_152 = arith.constant 1.000000e+00 : f32
    %533 = vector.broadcast %cst_152 : f32 to vector<8x128xf32>
    %534 = arith.addf %533, %532 : vector<8x128xf32>
    %535 = arith.divf %533, %534 : vector<8x128xf32>
    %536 = vector.extract_strided_slice %498 {offsets = [0, 256], sizes = [8, 128], strides = [1, 1]} : vector<8x512xf32> to vector<8x128xf32>
    %537 = math.tanh %536 : vector<8x128xf32>
    %538 = vector.extract_strided_slice %498 {offsets = [0, 384], sizes = [8, 128], strides = [1, 1]} : vector<8x512xf32> to vector<8x128xf32>
    %539 = arith.negf %538 : vector<8x128xf32>
    %540 = math.exp %539 : vector<8x128xf32>
    %cst_153 = arith.constant 1.000000e+00 : f32
    %541 = vector.broadcast %cst_153 : f32 to vector<8x128xf32>
    %542 = arith.addf %541, %540 : vector<8x128xf32>
    %543 = arith.divf %541, %542 : vector<8x128xf32>
    %544 = arith.mulf %535, %479 : vector<8x128xf32>
    %545 = arith.mulf %529, %537 : vector<8x128xf32>
    %546 = arith.addf %544, %545 : vector<8x128xf32>
    %547 = math.tanh %546 : vector<8x128xf32>
    %548 = arith.mulf %543, %547 : vector<8x128xf32>
    %549 = vector.shape_cast %523 : vector<8x128xf32> to vector<1x8x128xf32>
    %550 = arith.index_cast %c7_i32_140 : i32 to index
    %c0_154 = arith.constant 0 : index
    %c0_155 = arith.constant 0 : index
    %551 = vector.load %arg13[%550, %c0_154, %c0_155] : memref<8x8x128xf32, #tpu.memory_space<vmem>>, vector<1x8x128xf32>
    tpu.vector_store %arg13[%550, %c0_154, %c0_155], %549 {strides = array<i32>} : memref<8x8x128xf32, #tpu.memory_space<vmem>>, vector<1x8x128xf32>,
    %552 = vector.shape_cast %548 : vector<8x128xf32> to vector<1x8x128xf32>
    %553 = arith.index_cast %488 : i32 to index
    %c0_156 = arith.constant 0 : index
    %c0_157 = arith.constant 0 : index
    %554 = vector.load %arg14[%553, %c0_156, %c0_157] : memref<8x8x128xf32, #tpu.memory_space<vmem>>, vector<1x8x128xf32>
    tpu.vector_store %arg14[%553, %c0_156, %c0_157], %552 {strides = array<i32>} : memref<8x8x128xf32, #tpu.memory_space<vmem>>, vector<1x8x128xf32>,
    %c8_i32 = arith.constant 8 : i32
    %c0_158 = arith.constant 0 : index
    %c0_159 = arith.constant 0 : index
    %c0_160 = arith.constant 0 : index
    %555 = vector.load %arg13[%c0_158, %c0_159, %c0_160] : memref<8x8x128xf32, #tpu.memory_space<vmem>>, vector<8x8x128xf32>
    %c0_161 = arith.constant 0 : index
    %c0_162 = arith.constant 0 : index
    %c0_163 = arith.constant 0 : index
    %556 = vector.load %arg14[%c0_161, %c0_162, %c0_163] : memref<8x8x128xf32, #tpu.memory_space<vmem>>, vector<8x8x128xf32>
    %c0_164 = arith.constant 0 : index
    %c0_165 = arith.constant 0 : index
    %557 = vector.load %arg7[%c0_164, %c0_165] : memref<1x128xf32, #tpu.memory_space<vmem>>, vector<1x128xf32>
    %558 = vector.shape_cast %557 : vector<1x128xf32> to vector<1x1x128xf32>
    %559 = vector.broadcast %558 : vector<1x1x128xf32> to vector<8x8x128xf32>
    %560 = arith.mulf %555, %559 : vector<8x8x128xf32>
    %cst_166 = arith.constant dense<0.000000e+00> : vector<8x8xf32>
    %561 = vector.multi_reduction <add>, %560, %cst_166 [2] : vector<8x8x128xf32> to vector<8x8xf32>
    %c0_167 = arith.constant 0 : index
    %c0_168 = arith.constant 0 : index
    %562 = vector.load %arg8[%c0_167, %c0_168] : memref<1x128xf32, #tpu.memory_space<vmem>>, vector<1x128xf32>
    %563 = vector.shape_cast %562 : vector<1x128xf32> to vector<1x1x128xf32>
    %564 = vector.broadcast %563 : vector<1x1x128xf32> to vector<8x8x128xf32>
    %565 = arith.mulf %556, %564 : vector<8x8x128xf32>
    %cst_169 = arith.constant dense<0.000000e+00> : vector<8x8xf32>
    %566 = vector.multi_reduction <add>, %565, %cst_169 [2] : vector<8x8x128xf32> to vector<8x8xf32>
    %567 = arith.addf %561, %566 : vector<8x8xf32>
    %c0_170 = arith.constant 0 : index
    %c0_171 = arith.constant 0 : index
    %568 = vector.load %arg9[%c0_170, %c0_171] : memref<1x1xf32, #tpu.memory_space<vmem>>, vector<1x1xf32>
    %569 = vector.broadcast %568 : vector<1x1xf32> to vector<8x8xf32>
    %570 = arith.addf %567, %569 : vector<8x8xf32>
    %571 = arith.negf %570 : vector<8x8xf32>
    %572 = math.exp %571 : vector<8x8xf32>
    %cst_172 = arith.constant 1.000000e+00 : f32
    %573 = vector.broadcast %cst_172 : f32 to vector<8x8xf32>
    %574 = arith.addf %573, %572 : vector<8x8xf32>
    %575 = arith.divf %573, %574 : vector<8x8xf32>
    %c0_173 = arith.constant 0 : index
    %c0_174 = arith.constant 0 : index
    %576 = vector.load %arg10[%c0_173, %c0_174] : memref<8x8xf32, #tpu.memory_space<vmem>>, vector<8x8xf32>
    tpu.vector_store %arg10[%c0_173, %c0_174], %575 {strides = array<i32>} : memref<8x8xf32, #tpu.memory_space<vmem>>, vector<8x8xf32>,
    return
  }
}

</mosaic_0001>

<bundles_post_ra>
// kernel: tpu_custom_call.1
= control target key start
LH: loop header
LB: loop body
LE: loop exit
PB: predicated region body
PF: predicated region fallthrough
CT: control target
= control target key end

     0   :  { %s6740_s0 = inlined_call_operand.hbm [shape: f32[8,8,16], index: 0, kind: input, shape index: {}]   ;;  %s6741_s1 = inlined_call_operand.hbm [shape: f32[16,512], index: 1, kind: input, shape index: {}]   ;;  %s6742_s2 = inlined_call_operand.hbm [shape: f32[128,512], index: 2, kind: input, shape index: {}]   ;;  %s6743_s3 = inlined_call_operand.vmem [shape: f32[1,512], index: 3, kind: input, shape index: {}]   ;;  %s6744_s4 = inlined_call_operand.hbm [shape: f32[16,512], index: 4, kind: input, shape index: {}]   ;;  %s6745_s5 = inlined_call_operand.hbm [shape: f32[128,512], index: 5, kind: input, shape index: {}]   ;;  %s6746_s6 = inlined_call_operand.vmem [shape: f32[1,512], index: 6, kind: input, shape index: {}]   ;;  %s6747_s7 = inlined_call_operand.vmem [shape: f32[1,128], index: 7, kind: input, shape index: {}]   ;;  %s6748_s8 = inlined_call_operand.vmem [shape: f32[1,128], index: 8, kind: input, shape index: {}]   ;;  %s6749_s9 = inlined_call_operand.<no memory space> [shape: f32[1,1], index: 9, kind: input, shape index: {}]   ;;  %s6750_s10 = inlined_call_operand.hbm [shape: f32[8,8], index: 10, kind: output, shape index: {}]  }
   0x1   :  { %v15_v0 = vstv %s6749_s9 }
   0x2   :  { %16 = vst [vmem:[#allocation6] sm:$0x1] %v15_v0 }
   0x3   :  { %17 = vsyncpa [#allocation8], 0 }
   0x4   :  { %18 = vsyncpa [#allocation11], 0 }
   0x5   :  { %19 = vsyncpa [#allocation14], 0 }
   0x6   :  { %20 = vsyncpa [#allocation9], 0  ;;  %s5601_s15 = smov [#allocation10]   ;;  %s5461_s19 = scalar_lea.hbm %s6741_s1, 1024 }
   0x7   :  { %s38_s16 = sshll.u32 %s5601_s15, 4  ;;  %p5462_p0 = scmp.ne.s32.totalorder %s6741_s1, %s5461_s19  ;;  %s39_s16 = int_to_ptr.vmem [resolvable:$true] %s38_s16 }
   0x8   :  { %p5465_p1 = scmp.lt.u32.totalorder %s5461_s19, %s6741_s1 }
   0xa   :  { %p5467_p2 = pnand %p5465_p1, %p5462_p0 }
   0xc   :  { %5470 = shalt.err (!%p5467_p2)
}
   0xd   :  { %s5471_s9 = scalar_lea.vmem %s39_s16, 1024  ;;  %p5476_p4 = scmp.lt.s32.totalorder %s39_s16, %s39_s16 }
   0xe   :  { %p5472_p3 = scmp.ne.s32.totalorder %s39_s16, %s5471_s9  ;;  %p5477_p5 = scmp.lt.s32.totalorder %s5471_s9, %s5471_s9 }
  0x10   :  { %p5478_p6 = por %p5477_p5, %p5476_p4 }
  0x12   :  { %p5479_p7 = pnand %p5478_p6, %p5472_p3 }
  0x14   :  { %5482 = shalt.err (!%p5479_p7)
}
  0x15   :  { %s5602_s24 = smov 512   ;;  %s5603_s25 = smov 32  }
  0x16   :  { %44 = dma.hbm_to_vmem [thread:$0]  %s6741_s1, 1024, %s39_s16, [#allocation11], %s5602_s24, %s5602_s24, %s5603_s25  }
  0x17   :  { %s5604_s28 = smov [#allocation13]   ;;  %s5605_s30 = smov [#allocation7]  }
  0x18   :  { %s64_s29 = sshll.u32 %s5604_s28, 4  ;;  %s26_s11 = sshll.u32 %s5605_s30, 4  ;;  %s65_s29 = int_to_ptr.vmem [resolvable:$true] %s64_s29  ;;  %s27_s11 = int_to_ptr.vmem [resolvable:$true] %s26_s11 }
  0x19   :  { %s5483_s14 = scalar_lea.hbm %s6744_s4, 1024 }
  0x1a   :  { %p5484_p8 = scmp.ne.s32.totalorder %s6744_s4, %s5483_s14  ;;  %p5487_p9 = scmp.lt.u32.totalorder %s5483_s14, %s6744_s4 }
  0x1c   :  { %p5489_p10 = pnand %p5487_p9, %p5484_p8 }
  0x1e   :  { %5492 = shalt.err (!%p5489_p10)
}
  0x1f   :  { %s5493_s1 = scalar_lea.vmem %s65_s29, 1024  ;;  %p5498_p12 = scmp.lt.s32.totalorder %s65_s29, %s65_s29 }
  0x20   :  { %p5494_p11 = scmp.ne.s32.totalorder %s65_s29, %s5493_s1  ;;  %p5499_p13 = scmp.lt.s32.totalorder %s5493_s1, %s5493_s1 }
  0x22   :  { %p5500_p0 = por %p5499_p13, %p5498_p12 }
  0x24   :  { %p5501_p1 = pnand %p5500_p0, %p5494_p11 }
  0x26   :  { %5504 = shalt.err (!%p5501_p1)
}
  0x27   :  { %70 = dma.hbm_to_vmem [thread:$0]  %s6744_s4, 1024, %s65_s29, [#allocation14], %s5602_s24, %s5602_s24, %s5603_s25  }
  0x28   :  { %s5505_s23 = scalar_lea.hbm %s6740_s0, 1024 }
  0x29   :  { %p5506_p2 = scmp.ne.s32.totalorder %s6740_s0, %s5505_s23  ;;  %p5509_p3 = scmp.lt.u32.totalorder %s5505_s23, %s6740_s0 }
  0x2b   :  { %p5511_p4 = pnand %p5509_p3, %p5506_p2 }
  0x2d   :  { %5514 = shalt.err (!%p5511_p4)
}
  0x2e   :  { %s5515_s30 = scalar_lea.vmem %s27_s11, 1024  ;;  %p5520_p6 = scmp.lt.s32.totalorder %s27_s11, %s27_s11 }
  0x2f   :  { %p5516_p5 = scmp.ne.s32.totalorder %s27_s11, %s5515_s30  ;;  %p5521_p7 = scmp.lt.s32.totalorder %s5515_s30, %s5515_s30 }
  0x31   :  { %p5522_p8 = por %p5521_p7, %p5520_p6 }
  0x33   :  { %p5523_p9 = pnand %p5522_p8, %p5516_p5 }
  0x35   :  { %5526 = shalt.err (!%p5523_p9)
}
  0x36   :  { %s5606_s4 = smov 128   ;;  %s5607_s29 = smov 8  }
  0x37   :  { %32 = dma.hbm_to_vmem [thread:$0]  %s6740_s0, 1024, %s27_s11, [#allocation8], %s5606_s4, %s5606_s4, %s5607_s29  }
  0x38   :  { %s5608_s14 = smov [#allocation12]   ;;  %s5609_s17 = smov [#allocation15]  }
  0x39   :  { %s50_s15 = sshll.u32 %s5608_s14, 4  ;;  %s76_s18 = sshll.u32 %s5609_s17, 4  ;;  %s51_s15 = int_to_ptr.vmem [resolvable:$true] %s50_s15  ;;  %s77_s18 = int_to_ptr.vmem [resolvable:$true] %s76_s18 }
  0x3a   :  { %s5527_s16 = scalar_lea.hbm %s6742_s2, 8192 }
  0x3b   :  { %p5528_p10 = scmp.ne.s32.totalorder %s6742_s2, %s5527_s16  ;;  %p5531_p11 = scmp.lt.u32.totalorder %s5527_s16, %s6742_s2 }
  0x3d   :  { %p5533_p12 = pnand %p5531_p11, %p5528_p10 }
  0x3f   :  { %5536 = shalt.err (!%p5533_p12)
}
  0x40   :  { %s5537_s0 = scalar_lea.vmem %s51_s15, 8192  ;;  %p5542_p0 = scmp.lt.s32.totalorder %s51_s15, %s51_s15 }
  0x41   :  { %p5538_p13 = scmp.ne.s32.totalorder %s51_s15, %s5537_s0  ;;  %p5543_p1 = scmp.lt.s32.totalorder %s5537_s0, %s5537_s0 }
  0x43   :  { %p5544_p2 = por %p5543_p1, %p5542_p0 }
  0x45   :  { %p5545_p3 = pnand %p5544_p2, %p5538_p13 }
  0x47   :  { %5548 = shalt.err (!%p5545_p3)
}
  0x48   :  { %56 = dma.hbm_to_vmem [thread:$0]  %s6742_s2, 8192, %s51_s15, [#allocation11], %s5602_s24, %s5602_s24, %s5603_s25  }
  0x49   :  { %s5549_s28 = scalar_lea.hbm %s6745_s5, 8192 }
  0x4a   :  { %p5550_p4 = scmp.ne.s32.totalorder %s6745_s5, %s5549_s28  ;;  %p5553_p5 = scmp.lt.u32.totalorder %s5549_s28, %s6745_s5 }
  0x4c   :  { %p5555_p6 = pnand %p5553_p5, %p5550_p4 }
  0x4e   :  { %5558 = shalt.err (!%p5555_p6)
}
  0x4f   :  { %s5559_s13 = scalar_lea.vmem %s77_s18, 8192  ;;  %p5564_p8 = scmp.lt.s32.totalorder %s77_s18, %s77_s18 }
  0x50   :  { %p5560_p7 = scmp.ne.s32.totalorder %s77_s18, %s5559_s13  ;;  %p5565_p9 = scmp.lt.s32.totalorder %s5559_s13, %s5559_s13 }
  0x52   :  { %p5566_p10 = por %p5565_p9, %p5564_p8 }
  0x54   :  { %p5567_p11 = pnand %p5566_p10, %p5560_p7 }
  0x56   :  { %5570 = shalt.err (!%p5567_p11)
}
  0x57   :  { %82 = dma.hbm_to_vmem [thread:$0]  %s6745_s5, 8192, %s77_s18, [#allocation14], %s5602_s24, %s5602_s24, %s5603_s25  }
  0x58   :  { %5593 = dma.done.wait [#allocation8], 1024  }
  0x59   :  { %5594 = vsyncadd [#allocation8], 4294966272 }
  0x5a   :  { %5595 = dma.done.wait [#allocation11], 9216  }
  0x5b   :  { %5596 = vsyncadd [#allocation11], 4294958080 }
  0x5c   :  { %5597 = dma.done.wait [#allocation14], 9216  }
  0x5d   :  { %5598 = vsyncadd [#allocation14], 4294958080  ;;  %v6751_v1 = vmov 0.0   ;;  %v115_v2 = vld [vmem:[#allocation10 + $0x8] sm:$0xff]  ;;  %v117_v4 = vld [vmem:[#allocation10 + $0x18] sm:$0xff]  ;;  %vm144_vm0 = vcmask 130048  }
  0x5e   :  { %233 = vmatprep.mubr.f32.mxu0 %v6751_v1  ;;  %346 = vmatprep.mubr.f32.mxu1 %v6751_v1  ;;  %v119_v3 = vld [vmem:[#allocation10 + $0x28] sm:$0xff]  ;;  %v121_v6 = vld [vmem:[#allocation10 + $0x38] sm:$0xff]  ;;  %v114_v7 = vld [vmem:[#allocation10] sm:$0xff]  ;;  %vm3865_vm1 = vcmask 1041409   ;;  %vm3867_vm2 = vcmask 1042434   ;;  %vm3869_vm3 = vcmask 1043459  }
  0x5f   :  { %v3990_v5 = vpack.c.bf16 %v119_v3, %v115_v2  ;;  %v118_v8 = vld [vmem:[#allocation10 + $0x20] sm:$0xff]  ;;  %v3994_v9 = vpack.c.bf16 %v121_v6, %v117_v4  ;;  %v116_v11 = vld [vmem:[#allocation10 + $0x10] sm:$0xff]  ;;  %v428_v14 = vld [vmem:[#allocation13 + $0x8] sm:$0xff]  ;;  %vm3871_vm4 = vcmask 1044484   ;;  %vm3873_vm5 = vcmask 1045509  }
  0x60   :  { %v3992_v10 = vpack.c.bf16 %v118_v8, %v114_v7  ;;  %v120_v12 = vld [vmem:[#allocation10 + $0x30] sm:$0xff]  ;;  %v432_v15 = vld [vmem:[#allocation13 + $0x28] sm:$0xff]  ;;  %v427_v16 = vld [vmem:[#allocation13] sm:$0xff]  ;;  %vm3875_vm6 = vcmask 1046534   ;;  %vm3877_vm7 = vcmask 1047559   ;;  %vm3880_vm8 = vcmask 64512  }
  0x61   :  { %3991 = vmatprep.subr.bf16.mxu0 %v3990_v5  ;;  %v3996_v13 = vpack.c.bf16 %v120_v12, %v116_v11  ;;  %3995 = vmatprep.subr.bf16.mxu1 %v3994_v9  ;;  %v5745_v17 = vld [vmem:[#allocation7] sm:$0xff]  ;;  %v3998_v18 = vpack.c.bf16 %v432_v15, %v428_v14  ;;  %v430_v21 = vld [vmem:[#allocation13 + $0x18] sm:$0xff]  ;;  %v429_v24 = vld [vmem:[#allocation13 + $0x10] sm:$0xff] }
  0x62   :  { %3993 = vmatpush1.bf16.msra.mxu0 %v3992_v10  ;;  %v431_v19 = vld [vmem:[#allocation13 + $0x20] sm:$0xff]  ;;  %v434_v22 = vld [vmem:[#allocation13 + $0x38] sm:$0xff]  ;;  %v433_v25 = vld [vmem:[#allocation13 + $0x30] sm:$0xff] }
  0x63   :  { %3997 = vmatpush1.bf16.msra.mxu1 %v3996_v13  ;;  %v4000_v20 = vpack.c.bf16 %v431_v19, %v427_v16  ;;  %3999 = vmatprep.subr.bf16.mxu0 %v3998_v18  ;;  %v4002_v23 = vpack.c.bf16 %v434_v22, %v430_v21  ;;  %v5749_v26 = vld [vmem:[#allocation7 + $0x8] sm:$0xff]  ;;  %v4004_v27 = vpack.c.bf16 %v433_v25, %v429_v24  ;;  %v718_v30 = vld [vmem:[#allocation12 + $0x18] sm:$0xff]  ;;  %v5764_v34 = vld [vmem:[#allocation7 + $0x10] sm:$0xff] }
  0x64   :  { %v716_v28 = vld [vmem:[#allocation12 + $0x8] sm:$0xff]  ;;  %v722_v32 = vld [vmem:[#allocation12 + $0x38] sm:$0xff]  ;;  %v5782_v36 = vld [vmem:[#allocation7 + $0x20] sm:$0xff] }
  0x65   :  { %3899 = vmatmul.mubr.msk.f32.vlgmr.msra.gmra.mrb[0].mxu0 %vm144_vm0, %v5745_v17  ;;  %v720_v29 = vld [vmem:[#allocation12 + $0x28] sm:$0xff]  ;;  %4003 = vmatprep.subr.bf16.mxu1 %v4002_v23  ;;  %v5757_v33 = vpack.c.bf16 %v722_v32, %v718_v30  ;;  %v5774_v35 = vld [vmem:[#allocation7 + $0x18] sm:$0xff]  ;;  %v5798_v38 = vld [vmem:[#allocation7 + $0x30] sm:$0xff] }
  0x66   :  { %3907 = vmatmul.mubr.msk.f32.vlgmr.msra.gmra.mrb[0].mxu1 %vm144_vm0, %v5745_v17  ;;  %4001 = vmatpush1.bf16.msra.mxu0 %v4000_v20  ;;  %v5755_v31 = vpack.c.bf16 %v720_v29, %v716_v28  ;;  %v5790_v37 = vld [vmem:[#allocation7 + $0x28] sm:$0xff]  ;;  %v5806_v39 = vld [vmem:[#allocation7 + $0x38] sm:$0xff]  ;;  %v715_v40 = vld [vmem:[#allocation12] sm:$0xff] }
  0x67   :  { %239 = vmatprep.mubr.f32.mxu0 %v6751_v1  ;;  %352 = vmatprep.mubr.f32.mxu1 %v6751_v1  ;;  %v719_v41 = vld [vmem:[#allocation12 + $0x20] sm:$0xff]  ;;  %v717_v42 = vld [vmem:[#allocation12 + $0x10] sm:$0xff]  ;;  %v724_v44 = vld [vmem:[#allocation12 + $0x48] sm:$0xff] }
  0x68   :  { %4005 = vmatpush1.bf16.msra.mxu1 %v4004_v27  ;;  %4007 = vmatprep.subr.bf16.mxu0 %v5755_v31  ;;  %v721_v43 = vld [vmem:[#allocation12 + $0x30] sm:$0xff]  ;;  %v728_v45 = vld [vmem:[#allocation12 + $0x68] sm:$0xff]  ;;  %v5814_v46 = vpack.c.bf16 %v719_v41, %v715_v40  ;;  %v726_v47 = vld [vmem:[#allocation12 + $0x58] sm:$0xff] }
  0x69   :  { %3900 = vmatmul.mubr.msk.f32.gmra.mrb[2].mxu0 %vm144_vm0, %v5749_v26  ;;  %4039 = vmatprep.subr.bf16.mxu1 %v5757_v33  ;;  %v730_v48 = vld [vmem:[#allocation12 + $0x78] sm:$0xff]  ;;  %v5817_v49 = vpack.c.bf16 %v721_v43, %v717_v42  ;;  %v723_v50 = vld [vmem:[#allocation12 + $0x40] sm:$0xff]  ;;  %v5819_v52 = vpack.c.bf16 %v728_v45, %v724_v44  ;;  %v725_v53 = vld [vmem:[#allocation12 + $0x50] sm:$0xff] }
  0x6a   :  { %3908 = vmatmul.mubr.msk.f32.gmra.mrb[2].mxu1 %vm144_vm0, %v5749_v26  ;;  %245 = vmatprep.mubr.f32.mxu0 %v6751_v1  ;;  %v727_v51 = vld [vmem:[#allocation12 + $0x60] sm:$0xff]  ;;  %v729_v54 = vld [vmem:[#allocation12 + $0x70] sm:$0xff]  ;;  %v5823_v55 = vpack.c.bf16 %v730_v48, %v726_v47  ;;  %v732_v56 = vld [vmem:[#allocation12 + $0x88] sm:$0xff] }
  0x6b   :  { %358 = vmatprep.mubr.f32.mxu1 %v6751_v1  ;;  %v736_v57 = vld [vmem:[#allocation12 + $0xa8] sm:$0xff]  ;;  %v5828_v58 = vpack.c.bf16 %v727_v51, %v723_v50  ;;  %v734_v59 = vld [vmem:[#allocation12 + $0x98] sm:$0xff]  ;;  %v5832_v61 = vpack.c.bf16 %v729_v54, %v725_v53  ;;  %v731_v62 = vld [vmem:[#allocation12 + $0x80] sm:$0xff] }
  0x6c   :  { %v738_v60 = vld [vmem:[#allocation12 + $0xb8] sm:$0xff]  ;;  %v735_v63 = vld [vmem:[#allocation12 + $0xa0] sm:$0xff]  ;;  %v5836_v0 = vpack.c.bf16 %v736_v57, %v732_v56  ;;  %v733_v2 = vld [vmem:[#allocation12 + $0x90] sm:$0xff] }
  0x6d   :  { %3901 = vmatmul.mubr.msk.f32.gmra.mrb[4].mxu0 %vm144_vm0, %v5764_v34  ;;  %6840 = vst [vmem:[#allocation21_spill] sm:$0xff] %v5828_v58  ;;  %6841 = vst [vmem:[#allocation22_spill] sm:$0xff] %v5832_v61  ;;  %v737_v3 = vld [vmem:[#allocation12 + $0xb0] sm:$0xff]  ;;  %v5841_v4 = vpack.c.bf16 %v738_v60, %v734_v59  ;;  %v740_v5 = vld [vmem:[#allocation12 + $0xc8] sm:$0xff]  ;;  %v5846_v7 = vpack.c.bf16 %v735_v63, %v731_v62 }
  0x6e   :  { %3909 = vmatmul.mubr.msk.f32.gmra.mrb[4].mxu1 %vm144_vm0, %v5764_v34  ;;  %251 = vmatprep.mubr.f32.mxu0 %v6751_v1  ;;  %6842 = vst [vmem:[#allocation23_spill] sm:$0xff] %v5836_v0  ;;  %v744_v6 = vld [vmem:[#allocation12 + $0xe8] sm:$0xff]  ;;  %v742_v8 = vld [vmem:[#allocation12 + $0xd8] sm:$0xff]  ;;  %v5850_v10 = vpack.c.bf16 %v737_v3, %v733_v2  ;;  %v739_v11 = vld [vmem:[#allocation12 + $0xc0] sm:$0xff] }
  0x6f   :  { %364 = vmatprep.mubr.f32.mxu1 %v6751_v1  ;;  %6843 = vst [vmem:[#allocation24_spill] sm:$0xff] %v5841_v4  ;;  %6844 = vst [vmem:[#allocation25_spill] sm:$0xff] %v5846_v7  ;;  %v746_v9 = vld [vmem:[#allocation12 + $0xf8] sm:$0xff]  ;;  %v743_v12 = vld [vmem:[#allocation12 + $0xe0] sm:$0xff]  ;;  %v5854_v13 = vpack.c.bf16 %v744_v6, %v740_v5 }
  0x70   :  { %6845 = vst [vmem:[#allocation26_spill] sm:$0xff] %v5850_v10  ;;  %v741_v14 = vld [vmem:[#allocation12 + $0xd0] sm:$0xff]  ;;  %v5859_v16 = vpack.c.bf16 %v746_v9, %v742_v8  ;;  %v752_v18 = vld [vmem:[#allocation12 + $0x128] sm:$0xff]  ;;  %v5864_v19 = vpack.c.bf16 %v743_v12, %v739_v11  ;;  %v750_v20 = vld [vmem:[#allocation12 + $0x118] sm:$0xff] }
  0x71   :  { %3902 = vmatmul.mubr.msk.f32.gmra.mrb[6].mxu0 %vm144_vm0, %v5774_v35  ;;  %6846 = vst [vmem:[#allocation27_spill] sm:$0xff] %v5854_v13  ;;  %v745_v15 = vld [vmem:[#allocation12 + $0xf0] sm:$0xff]  ;;  %v754_v21 = vld [vmem:[#allocation12 + $0x138] sm:$0xff]  ;;  %v747_v23 = vld [vmem:[#allocation12 + $0x100] sm:$0xff] }
  0x72   :  { %3910 = vmatmul.mubr.msk.f32.gmra.mrb[6].mxu1 %vm144_vm0, %v5774_v35  ;;  %257 = vmatprep.mubr.f32.mxu0 %v6751_v1  ;;  %6847 = vst [vmem:[#allocation28_spill] sm:$0xff] %v5859_v16  ;;  %6848 = vst [vmem:[#allocation29_spill] sm:$0xff] %v5864_v19  ;;  %v5868_v22 = vpack.c.bf16 %v745_v15, %v741_v14  ;;  %v751_v24 = vld [vmem:[#allocation12 + $0x120] sm:$0xff]  ;;  %v753_v27 = vld [vmem:[#allocation12 + $0x130] sm:$0xff]  ;;  %v5877_v28 = vpack.c.bf16 %v754_v21, %v750_v20 }
  0x73   :  { %370 = vmatprep.mubr.f32.mxu1 %v6751_v1  ;;  %v756_v29 = vld [vmem:[#allocation12 + $0x148] sm:$0xff]  ;;  %v5882_v32 = vpack.c.bf16 %v751_v24, %v747_v23  ;;  %v762_v40 = vld [vmem:[#allocation12 + $0x178] sm:$0xff]  ;;  %v755_v42 = vld [vmem:[#allocation12 + $0x140] sm:$0xff] }
  0x74   :  { %6849 = vst [vmem:[#allocation30_spill] sm:$0xff] %v5868_v22  ;;  %6851 = vst [vmem:[#allocation32_spill] sm:$0xff] %v5877_v28  ;;  %v760_v30 = vld [vmem:[#allocation12 + $0x168] sm:$0xff]  ;;  %v759_v43 = vld [vmem:[#allocation12 + $0x160] sm:$0xff] }
  0x75   :  { %3903 = vmatmul.mubr.msk.f32.gmra.mrb[8].mxu0 %vm144_vm0, %v5782_v36  ;;  %6852 = vst [vmem:[#allocation33_spill] sm:$0xff] %v5882_v32  ;;  %v5890_v44 = vpack.c.bf16 %v760_v30, %v756_v29  ;;  %v761_v45 = vld [vmem:[#allocation12 + $0x170] sm:$0xff]  ;;  %v764_v48 = vld [vmem:[#allocation12 + $0x188] sm:$0xff]  ;;  %v5900_v51 = vpack.c.bf16 %v759_v43, %v755_v42  ;;  %v766_v53 = vld [vmem:[#allocation12 + $0x198] sm:$0xff] }
  0x76   :  { %3911 = vmatmul.mubr.msk.f32.gmra.mrb[8].mxu1 %vm144_vm0, %v5782_v36  ;;  %263 = vmatprep.mubr.f32.mxu0 %v6751_v1  ;;  %v768_v50 = vld [vmem:[#allocation12 + $0x1a8] sm:$0xff]  ;;  %v770_v54 = vld [vmem:[#allocation12 + $0x1b8] sm:$0xff]  ;;  %v763_v57 = vld [vmem:[#allocation12 + $0x180] sm:$0xff] }
  0x77   :  { %376 = vmatprep.mubr.f32.mxu1 %v6751_v1  ;;  %6854 = vst [vmem:[#allocation35_spill] sm:$0xff] %v5890_v44  ;;  %6856 = vst [vmem:[#allocation37_spill] sm:$0xff] %v5900_v51  ;;  %v767_v59 = vld [vmem:[#allocation12 + $0x1a0] sm:$0xff]  ;;  %v5908_v60 = vpack.c.bf16 %v768_v50, %v764_v48  ;;  %v769_v62 = vld [vmem:[#allocation12 + $0x1b0] sm:$0xff]  ;;  %v5913_v63 = vpack.c.bf16 %v770_v54, %v766_v53 }
  0x78   :  { %v772_v2 = vld [vmem:[#allocation12 + $0x1c8] sm:$0xff]  ;;  %v5918_v5 = vpack.c.bf16 %v767_v59, %v763_v57  ;;  %v774_v6 = vld [vmem:[#allocation12 + $0x1d8] sm:$0xff]  ;;  %v771_v11 = vld [vmem:[#allocation12 + $0x1c0] sm:$0xff] }
  0x79   :  { %3904 = vmatmul.mubr.msk.f32.gmra.mrb[10].mxu0 %vm144_vm0, %v5790_v37  ;;  %6858 = vst [vmem:[#allocation39_spill] sm:$0xff] %v5908_v60  ;;  %6859 = vst [vmem:[#allocation40_spill] sm:$0xff] %v5913_v63  ;;  %v776_v3 = vld [vmem:[#allocation12 + $0x1e8] sm:$0xff]  ;;  %v778_v8 = vld [vmem:[#allocation12 + $0x1f8] sm:$0xff] }
  0x7a   :  { %3912 = vmatmul.mubr.msk.f32.gmra.mrb[10].mxu1 %vm144_vm0, %v5790_v37  ;;  %269 = vmatprep.mubr.f32.mxu0 %v6751_v1  ;;  %6860 = vst [vmem:[#allocation41_spill] sm:$0xff] %v5918_v5  ;;  %v775_v12 = vld [vmem:[#allocation12 + $0x1e0] sm:$0xff]  ;;  %v5926_v14 = vpack.c.bf16 %v776_v3, %v772_v2  ;;  %v777_v15 = vld [vmem:[#allocation12 + $0x1f0] sm:$0xff]  ;;  %v784_v20 = vld [vmem:[#allocation15 + $0x28] sm:$0xff] }
  0x7b   :  { %382 = vmatprep.mubr.f32.mxu1 %v6751_v1  ;;  %v5936_v21 = vpack.c.bf16 %v775_v12, %v771_v11  ;;  %v782_v23 = vld [vmem:[#allocation15 + $0x18] sm:$0xff]  ;;  %v783_v29 = vld [vmem:[#allocation15 + $0x20] sm:$0xff]  ;;  %v781_v30 = vld [vmem:[#allocation15 + $0x10] sm:$0xff] }
  0x7c   :  { %6862 = vst [vmem:[#allocation43_spill] sm:$0xff] %v5926_v14  ;;  %v786_v24 = vld [vmem:[#allocation15 + $0x38] sm:$0xff]  ;;  %v792_v42 = vld [vmem:[#allocation15 + $0x68] sm:$0xff]  ;;  %v787_v54 = vld [vmem:[#allocation15 + $0x40] sm:$0xff] }
  0x7d   :  { %3905 = vmatmul.mubr.msk.f32.gmra.mrb[12].mxu0 %vm144_vm0, %v5798_v38  ;;  %6864 = vst [vmem:[#allocation45_spill] sm:$0xff] %v5936_v21  ;;  %v5949_v43 = vpack.c.bf16 %v786_v24, %v782_v23  ;;  %v791_v57 = vld [vmem:[#allocation15 + $0x60] sm:$0xff]  ;;  %v789_v59 = vld [vmem:[#allocation15 + $0x50] sm:$0xff]  ;;  %v800_v2 = vld [vmem:[#allocation15 + $0xa8] sm:$0xff] }
  0x7e   :  { %3913 = vmatmul.mubr.msk.f32.gmra.mrb[12].mxu1 %vm144_vm0, %v5798_v38  ;;  %275 = vmatprep.mubr.f32.mxu0 %v6751_v1  ;;  %v798_v3 = vld [vmem:[#allocation15 + $0x98] sm:$0xff]  ;;  %v801_v23 = vld [vmem:[#allocation15 + $0xb0] sm:$0xff]  ;;  %v804_v24 = vld [vmem:[#allocation15 + $0xc8] sm:$0xff] }
  0x7f   :  { %388 = vmatprep.mubr.f32.mxu1 %v6751_v1  ;;  %6867 = vst [vmem:[#allocation48_spill] sm:$0xff] %v5949_v43 }
  0x81   :  { %3906 = vmatmul.mubr.msk.f32.gmra.mrb[14].mxu0 %vm144_vm0, %v5806_v39 }
  0x82   :  { %3914 = vmatmul.mubr.msk.f32.gmra.mrb[14].mxu1 %vm144_vm0, %v5806_v39  ;;  %521 = vmatprep.mubr.f32.mxu0 %v6751_v1 }
  0x83   :  { %634 = vmatprep.mubr.f32.mxu1 %v6751_v1 }
  0x85   :  { %3915 = vmatmul.mubr.msk.f32.vlgmr.msra.gmra.mrb[16].mxu0 %vm144_vm0, %v5745_v17 }
  0x86   :  { %3923 = vmatmul.mubr.msk.f32.vlgmr.msra.gmra.mrb[16].mxu1 %vm144_vm0, %v5745_v17  ;;  %4009 = vmatpush1.bf16.msra.mxu0 %v5814_v46  ;;  %v748_v17 = vld [vmem:[#allocation12 + $0x108] sm:$0xff] }
  0x87   :  { %4041 = vmatpush1.bf16.msra.mxu1 %v5817_v49  ;;  %527 = vmatprep.mubr.f32.mxu0 %v6751_v1  ;;  %v5872_v25 = vpack.c.bf16 %v752_v18, %v748_v17  ;;  %v5931_v17 = vpack.c.bf16 %v778_v8, %v774_v6  ;;  %v780_v18 = vld [vmem:[#allocation15 + $0x8] sm:$0xff]  ;;  %v802_v6 = vld [vmem:[#allocation15 + $0xb8] sm:$0xff]  ;;  %v5970_v8 = vpack.c.bf16 %v791_v57, %v787_v54  ;;  %v805_v54 = vld [vmem:[#allocation15 + $0xd0] sm:$0xff] }
  0x88   :  { %640 = vmatprep.mubr.f32.mxu1 %v6751_v1  ;;  %4011 = vmatprep.subr.bf16.mxu0 %v5819_v52 }
  0x89   :  { %4043 = vmatprep.subr.bf16.mxu1 %v5823_v55  ;;  %3916 = vmatmul.mubr.msk.f32.gmra.mrb[18].mxu0 %vm144_vm0, %v5749_v26  ;;  %6850 = vst [vmem:[#allocation31_spill] sm:$0xff] %v5872_v25  ;;  %6863 = vst [vmem:[#allocation44_spill] sm:$0xff] %v5931_v17 }
  0x8a   :  { %3924 = vmatmul.mubr.msk.f32.gmra.mrb[18].mxu1 %vm144_vm0, %v5749_v26  ;;  %4013 = vmatpush1.bf16.msra.mxu0 %v5828_v58  ;;  %v749_v26 = vld [vmem:[#allocation12 + $0x110] sm:$0xff] }
  0x8b   :  { %4045 = vmatpush1.bf16.msra.mxu1 %v5832_v61  ;;  %533 = vmatprep.mubr.f32.mxu0 %v6751_v1  ;;  %v5886_v41 = vpack.c.bf16 %v753_v27, %v749_v26  ;;  %v779_v27 = vld [vmem:[#allocation15] sm:$0xff] }
  0x8c   :  { %646 = vmatprep.mubr.f32.mxu1 %v6751_v1  ;;  %4015 = vmatprep.subr.bf16.mxu0 %v5836_v0  ;;  %v5954_v48 = vpack.c.bf16 %v783_v29, %v779_v27  ;;  %v808_v27 = vld [vmem:[#allocation15 + $0xe8] sm:$0xff]  ;;  %v806_v29 = vld [vmem:[#allocation15 + $0xd8] sm:$0xff] }
  0x8d   :  { %4047 = vmatprep.subr.bf16.mxu1 %v5841_v4  ;;  %3917 = vmatmul.mubr.msk.f32.gmra.mrb[20].mxu0 %vm144_vm0, %v5764_v34  ;;  %6853 = vst [vmem:[#allocation34_spill] sm:$0xff] %v5886_v41 }
  0x8e   :  { %3925 = vmatmul.mubr.msk.f32.gmra.mrb[20].mxu1 %vm144_vm0, %v5764_v34  ;;  %4017 = vmatpush1.bf16.msra.mxu0 %v5846_v7  ;;  %v758_v34 = vld [vmem:[#allocation12 + $0x158] sm:$0xff] }
  0x8f   :  { %4049 = vmatpush1.bf16.msra.mxu1 %v5850_v10  ;;  %539 = vmatprep.mubr.f32.mxu0 %v6751_v1  ;;  %v5895_v47 = vpack.c.bf16 %v762_v40, %v758_v34  ;;  %v785_v34 = vld [vmem:[#allocation15 + $0x30] sm:$0xff]  ;;  %v788_v40 = vld [vmem:[#allocation15 + $0x48] sm:$0xff] }
  0x90   :  { %652 = vmatprep.mubr.f32.mxu1 %v6751_v1  ;;  %4019 = vmatprep.subr.bf16.mxu0 %v5854_v13  ;;  %v5958_v50 = vpack.c.bf16 %v785_v34, %v781_v30  ;;  %v5960_v53 = vpack.c.bf16 %v792_v42, %v788_v40  ;;  %v810_v30 = vld [vmem:[#allocation15 + $0xf8] sm:$0xff]  ;;  %v5990_v42 = vpack.c.bf16 %v808_v27, %v804_v24  ;;  %v813_v24 = vld [vmem:[#allocation15 + $0x110] sm:$0xff] }
  0x91   :  { %4051 = vmatprep.subr.bf16.mxu1 %v5859_v16  ;;  %3918 = vmatmul.mubr.msk.f32.gmra.mrb[22].mxu0 %vm144_vm0, %v5774_v35  ;;  %6855 = vst [vmem:[#allocation36_spill] sm:$0xff] %v5895_v47  ;;  %v5993_v57 = vpack.c.bf16 %v810_v30, %v806_v29  ;;  %v817_v29 = vld [vmem:[#allocation15 + $0x130] sm:$0xff]  ;;  %v820_v30 = vld [vmem:[#allocation15 + $0x148] sm:$0xff] }
  0x92   :  { %3926 = vmatmul.mubr.msk.f32.gmra.mrb[22].mxu1 %vm144_vm0, %v5774_v35  ;;  %4021 = vmatpush1.bf16.msra.mxu0 %v5864_v19  ;;  %v757_v35 = vld [vmem:[#allocation12 + $0x150] sm:$0xff]  ;;  %6869 = vst [vmem:[#allocation50_spill] sm:$0xff] %v5990_v42 }
  0x93   :  { %4053 = vmatpush1.bf16.msra.mxu1 %v5868_v22  ;;  %545 = vmatprep.mubr.f32.mxu0 %v6751_v1  ;;  %v5904_v56 = vpack.c.bf16 %v761_v45, %v757_v35  ;;  %v790_v35 = vld [vmem:[#allocation15 + $0x58] sm:$0xff]  ;;  %6870 = vst [vmem:[#allocation51_spill] sm:$0xff] %v5993_v57 }
  0x94   :  { %658 = vmatprep.mubr.f32.mxu1 %v6751_v1  ;;  %4023 = vmatprep.subr.bf16.mxu0 %v5872_v25  ;;  %v794_v45 = vld [vmem:[#allocation15 + $0x78] sm:$0xff] }
  0x95   :  { %4055 = vmatprep.subr.bf16.mxu1 %v5877_v28  ;;  %3919 = vmatmul.mubr.msk.f32.gmra.mrb[24].mxu0 %vm144_vm0, %v5782_v36  ;;  %6857 = vst [vmem:[#allocation38_spill] sm:$0xff] %v5904_v56 }
  0x96   :  { %3927 = vmatmul.mubr.msk.f32.gmra.mrb[24].mxu1 %vm144_vm0, %v5782_v36  ;;  %4025 = vmatpush1.bf16.msra.mxu0 %v5882_v32  ;;  %v765_v36 = vld [vmem:[#allocation12 + $0x190] sm:$0xff] }
  0x97   :  { %4057 = vmatpush1.bf16.msra.mxu1 %v5886_v41  ;;  %551 = vmatprep.mubr.f32.mxu0 %v6751_v1  ;;  %v5922_v9 = vpack.c.bf16 %v769_v62, %v765_v36  ;;  %v793_v36 = vld [vmem:[#allocation15 + $0x70] sm:$0xff]  ;;  %v796_v62 = vld [vmem:[#allocation15 + $0x88] sm:$0xff] }
  0x98   :  { %664 = vmatprep.mubr.f32.mxu1 %v6751_v1  ;;  %4027 = vmatprep.subr.bf16.mxu0 %v5890_v44  ;;  %v5974_v11 = vpack.c.bf16 %v793_v36, %v789_v59  ;;  %v5976_v12 = vpack.c.bf16 %v800_v2, %v796_v62  ;;  %v809_v59 = vld [vmem:[#allocation15 + $0xf0] sm:$0xff]  ;;  %v812_v36 = vld [vmem:[#allocation15 + $0x108] sm:$0xff]  ;;  %v814_v2 = vld [vmem:[#allocation15 + $0x118] sm:$0xff] }
  0x99   :  { %4059 = vmatprep.subr.bf16.mxu1 %v5895_v47  ;;  %3920 = vmatmul.mubr.msk.f32.gmra.mrb[26].mxu0 %vm144_vm0, %v5790_v37  ;;  %6861 = vst [vmem:[#allocation42_spill] sm:$0xff] %v5922_v9  ;;  %v816_v62 = vld [vmem:[#allocation15 + $0x128] sm:$0xff] }
  0x9a   :  { %3928 = vmatmul.mubr.msk.f32.gmra.mrb[26].mxu1 %vm144_vm0, %v5790_v37  ;;  %4029 = vmatpush1.bf16.msra.mxu0 %v5900_v51  ;;  %v773_v37 = vld [vmem:[#allocation12 + $0x1d0] sm:$0xff] }
  0x9b   :  { %4061 = vmatpush1.bf16.msra.mxu1 %v5904_v56  ;;  %557 = vmatprep.mubr.f32.mxu0 %v6751_v1  ;;  %v5940_v26 = vpack.c.bf16 %v777_v15, %v773_v37  ;;  %v795_v37 = vld [vmem:[#allocation15 + $0x80] sm:$0xff] }
  0x9c   :  { %670 = vmatprep.mubr.f32.mxu1 %v6751_v1  ;;  %4031 = vmatprep.subr.bf16.mxu0 %v5908_v60  ;;  %v799_v15 = vld [vmem:[#allocation15 + $0xa0] sm:$0xff] }
  0x9d   :  { %4063 = vmatprep.subr.bf16.mxu1 %v5913_v63  ;;  %3921 = vmatmul.mubr.msk.f32.gmra.mrb[28].mxu0 %vm144_vm0, %v5798_v38  ;;  %6865 = vst [vmem:[#allocation46_spill] sm:$0xff] %v5940_v26  ;;  %v5984_v34 = vpack.c.bf16 %v799_v15, %v795_v37  ;;  %v6000_v37 = vpack.c.bf16 %v809_v59, %v805_v54 }
  0x9e   :  { %3929 = vmatmul.mubr.msk.f32.gmra.mrb[28].mxu1 %vm144_vm0, %v5798_v38  ;;  %4033 = vmatpush1.bf16.msra.mxu0 %v5918_v5  ;;  %v5944_v38 = vpack.c.bf16 %v784_v20, %v780_v18  ;;  %v797_v18 = vld [vmem:[#allocation15 + $0x90] sm:$0xff]  ;;  %v5979_v20 = vpack.c.bf16 %v802_v6, %v798_v3  ;;  %v818_v3 = vld [vmem:[#allocation15 + $0x138] sm:$0xff]  ;;  %v6002_v15 = vpack.c.bf16 %v816_v62, %v812_v36  ;;  %v819_v36 = vld [vmem:[#allocation15 + $0x140] sm:$0xff] }
  0x9f   :  { %4065 = vmatpush1.bf16.msra.mxu1 %v5922_v9  ;;  %563 = vmatprep.mubr.f32.mxu0 %v6751_v1  ;;  %v5988_v40 = vpack.c.bf16 %v801_v23, %v797_v18  ;;  %6872 = vst [vmem:[#allocation53_spill] sm:$0xff] %v6000_v37  ;;  %v811_v18 = vld [vmem:[#allocation15 + $0x100] sm:$0xff]  ;;  %v6005_v27 = vpack.c.bf16 %v818_v3, %v814_v2  ;;  %v821_v2 = vld [vmem:[#allocation15 + $0x150] sm:$0xff] }
  0xa0   :  { %676 = vmatprep.mubr.f32.mxu1 %v6751_v1  ;;  %4035 = vmatprep.subr.bf16.mxu0 %v5926_v14  ;;  %6866 = vst [vmem:[#allocation47_spill] sm:$0xff] %v5944_v38  ;;  %6873 = vst [vmem:[#allocation54_spill] sm:$0xff] %v6002_v15  ;;  %v815_v23 = vld [vmem:[#allocation15 + $0x120] sm:$0xff]  ;;  %v6012_v54 = vpack.c.bf16 %v817_v29, %v813_v24 }
  0xa1   :  { %4067 = vmatprep.subr.bf16.mxu1 %v5931_v17  ;;  %3922 = vmatmul.mubr.msk.f32.gmra.mrb[30].mxu0 %vm144_vm0, %v5806_v39  ;;  %6868 = vst [vmem:[#allocation49_spill] sm:$0xff] %v5988_v40  ;;  %6874 = vst [vmem:[#allocation55_spill] sm:$0xff] %v6005_v27  ;;  %v823_v62 = vld [vmem:[#allocation15 + $0x160] sm:$0xff] }
  0xa2   :  { %3930 = vmatmul.mubr.msk.f32.gmra.mrb[30].mxu1 %vm144_vm0, %v5806_v39  ;;  %4037 = vmatpush1.bf16.msra.mxu0 %v5936_v21  ;;  %v5964_v39 = vpack.c.bf16 %v794_v45, %v790_v35  ;;  %v803_v35 = vld [vmem:[#allocation15 + $0xc0] sm:$0xff]  ;;  %6876 = vst [vmem:[#allocation57_spill] sm:$0xff] %v6012_v54 }
  0xa3   :  { %4069 = vmatpush1.bf16.msra.mxu1 %v5940_v26  ;;  %911 = vmatprep.mubr.f32.mxu0 %v6751_v1  ;;  %v807_v45 = vld [vmem:[#allocation15 + $0xe0] sm:$0xff] }
  0xa4   :  { %982 = vmatprep.mubr.f32.mxu1 %v6751_v1  ;;  %4071 = vmatprep.subr.bf16.mxu0 %v5944_v38  ;;  %v5996_v6 = vpack.c.bf16 %v807_v45, %v803_v35  ;;  %v822_v35 = vld [vmem:[#allocation15 + $0x158] sm:$0xff]  ;;  %v827_v29 = vld [vmem:[#allocation15 + $0x180] sm:$0xff] }
  0xa5   :  { %4103 = vmatprep.subr.bf16.mxu1 %v5949_v43  ;;  %912 = vmatmul.mubr.f32.vlgmr.msra.gmra.mrb[0].mxu0 %v6751_v1  ;;  %v826_v45 = vld [vmem:[#allocation15 + $0x178] sm:$0xff] }
  0xa6   :  { %983 = vmatmul.mubr.f32.vlgmr.msra.gmra.mrb[0].mxu1 %v6751_v1  ;;  %4073 = vmatpush1.bf16.msra.mxu0 %v5954_v48  ;;  %6871 = vst [vmem:[#allocation52_spill] sm:$0xff] %v5996_v6  ;;  %v6017_v3 = vpack.c.bf16 %v826_v45, %v822_v35  ;;  %v829_v35 = vld [vmem:[#allocation15 + $0x190] sm:$0xff] }
  0xa7   :  { %4105 = vmatpush1.bf16.msra.mxu1 %v5958_v50  ;;  %4075 = vmatprep.subr.bf16.mxu0 %v5960_v53 }
  0xa8   :  { %4107 = vmatprep.subr.bf16.mxu1 %v5964_v39  ;;  %1062 = vmatprep.mubr.f32.mxu0 %v6751_v1  ;;  %6877 = vst [vmem:[#allocation58_spill] sm:$0xff] %v6017_v3 }
  0xa9   :  { %1133 = vmatprep.mubr.f32.mxu1 %v6751_v1  ;;  %v824_v1 = vld [vmem:[#allocation15 + $0x168] sm:$0xff] }
  0xaa   :  { %4077 = vmatpush1.bf16.msra.mxu0 %v5970_v8  ;;  %v6014_v59 = vpack.c.bf16 %v824_v1, %v820_v30  ;;  %v831_v30 = vld [vmem:[#allocation15 + $0x1a0] sm:$0xff] }
  0xab   :  { %4109 = vmatpush1.bf16.msra.mxu1 %v5974_v11  ;;  %4079 = vmatprep.subr.bf16.mxu0 %v5976_v12 }
  0xac   :  { %4111 = vmatprep.subr.bf16.mxu1 %v5979_v20 }
  0xae   :  { %4081 = vmatpush1.bf16.msra.mxu0 %v5984_v34 }
  0xaf   :  { %4113 = vmatpush1.bf16.msra.mxu1 %v5988_v40  ;;  %4083 = vmatprep.subr.bf16.mxu0 %v5990_v42  ;;  %v6008_v40 = vpack.c.bf16 %v815_v23, %v811_v18  ;;  %v828_v42 = vld [vmem:[#allocation15 + $0x188] sm:$0xff]  ;;  %v830_v18 = vld [vmem:[#allocation15 + $0x198] sm:$0xff] }
  0xb0   :  { %4115 = vmatprep.subr.bf16.mxu1 %v5993_v57  ;;  %v825_v57 = vld [vmem:[#allocation15 + $0x170] sm:$0xff]  ;;  %v834_v23 = vld [vmem:[#allocation15 + $0x1b8] sm:$0xff] }
  0xb1   :  { %6875 = vst [vmem:[#allocation56_spill] sm:$0xff] %v6008_v40  ;;  %v6024_v1 = vpack.c.bf16 %v825_v57, %v821_v2  ;;  %v6029_v45 = vpack.c.bf16 %v834_v23, %v830_v18  ;;  %v839_v2 = vld [vmem:[#allocation15 + $0x1e0] sm:$0xff]  ;;  %v837_v23 = vld [vmem:[#allocation15 + $0x1d0] sm:$0xff] }
  0xb2   :  { %4085 = vmatpush1.bf16.msra.mxu0 %v5996_v6  ;;  %v832_v6 = vld [vmem:[#allocation15 + $0x1a8] sm:$0xff] }
  0xb3   :  { %4117 = vmatpush1.bf16.msra.mxu1 %v6000_v37  ;;  %4087 = vmatprep.subr.bf16.mxu0 %v6002_v15  ;;  %v6020_v37 = vpack.c.bf16 %v823_v62, %v819_v36  ;;  %v6026_v24 = vpack.c.bf16 %v832_v6, %v828_v42  ;;  %v836_v15 = vld [vmem:[#allocation15 + $0x1c8] sm:$0xff]  ;;  %v838_v36 = vld [vmem:[#allocation15 + $0x1d8] sm:$0xff]  ;;  %v835_v6 = vld [vmem:[#allocation15 + $0x1c0] sm:$0xff] }
  0xb4   :  { %4119 = vmatprep.subr.bf16.mxu1 %v6005_v27  ;;  %v833_v27 = vld [vmem:[#allocation15 + $0x1b0] sm:$0xff]  ;;  %v842_v62 = vld [vmem:[#allocation15 + $0x1f8] sm:$0xff] }
  0xb5   :  { %v6036_v42 = vpack.c.bf16 %v833_v27, %v829_v35  ;;  %v6041_v18 = vpack.c.bf16 %v842_v62, %v838_v36  ;;  %v122_v35 = vld [vmem:[%s6743_s3] sm:$0xf] }
  0xb6   :  { %4089 = vmatpush1.bf16.msra.mxu0 %v6008_v40  ;;  %v840_v40 = vld [vmem:[#allocation15 + $0x1e8] sm:$0xff] }
  0xb7   :  { %4121 = vmatpush1.bf16.msra.mxu1 %v6012_v54  ;;  %4091 = vmatprep.subr.bf16.mxu0 %v6014_v59  ;;  %v6032_v54 = vpack.c.bf16 %v831_v30, %v827_v29  ;;  %v6038_v57 = vpack.c.bf16 %v840_v40, %v836_v15  ;;  %v6044_v29 = vpack.c.bf16 %v839_v2, %v835_v6  ;;  %v6878_v40 = vmov 0.0  }
  0xb8   :  { %4123 = vmatprep.subr.bf16.mxu1 %v6017_v3  ;;  %v841_v3 = vld [vmem:[#allocation15 + $0x1f0] sm:$0xff]  ;;  %v6777_v15 = vlaneseq }
  0xb9   :  { %v6048_v27 = vpack.c.bf16 %v841_v3, %v837_v23 }
  0xba   :  { %4093 = vmatpush1.bf16.msra.mxu0 %v6020_v37  ;;  %v6092_v3 = vshrl.u32 %v6777_v15, 7 }
  0xbb   :  { %4125 = vmatpush1.bf16.msra.mxu1 %v6024_v1  ;;  %4095 = vmatprep.subr.bf16.mxu0 %v6026_v24 }
  0xbc   :  { %4127 = vmatprep.subr.bf16.mxu1 %v6029_v45  ;;  %6879 = vst [vmem:[#allocation59_spill] sm:$0xff] %v6092_v3  ;;  %v126_v30 = vsub.s32 0, %v6092_v3  ;;  %v130_v36 = vsub.s32 1, %v6092_v3  ;;  %v138_v23 = vsub.s32 3, %v6092_v3 }
  0xbe   :  { %4097 = vmatpush1.bf16.msra.mxu0 %v6032_v54  ;;  %v6099_v62 = vrot.slane %v122_v35, %v126_v30  ;;  %v6101_v6 = vrot.slane %v122_v35, %v130_v36 }
  0xbf   :  { %4129 = vmatpush1.bf16.msra.mxu1 %v6036_v42  ;;  %4099 = vmatprep.subr.bf16.mxu0 %v6038_v57 }
  0xc0   :  { %4131 = vmatprep.subr.bf16.mxu1 %v6041_v18  ;;  %6880 = vst [vmem:[#allocation60_spill] sm:$0xff] %v6099_v62 }
  0xc2   :  { %4101 = vmatpush1.bf16.msra.mxu0 %v6044_v29 }
  0xc3   :  { %4133 = vmatpush1.bf16.msra.mxu1 %v6048_v27  ;;  %4135 = vmatprep.subr.bf16.mxu0 %v5755_v31 }
  0xc4   :  { %4167 = vmatprep.subr.bf16.mxu1 %v5757_v33 }
  0xc5   :  { %1063 = vmatmul.mubr.f32.vlgmr.msra.gmra.mrb[30].mxu0 %v6878_v40 }
  0xc6   :  { %1134 = vmatmul.mubr.f32.vlgmr.msra.gmra.mrb[30].mxu1 %v6878_v40  ;;  %4137 = vmatpush1.bf16.msra.mxu0 %v5814_v46 }
  0xc7   :  { %4169 = vmatpush1.bf16.msra.mxu1 %v5817_v49  ;;  %4139 = vmatprep.subr.bf16.mxu0 %v5819_v52 }
  0xc8   :  { %4171 = vmatprep.subr.bf16.mxu1 %v5823_v55  ;;  %1264 = vmatprep.mubr.f32.mxu0 %v6878_v40 }
  0xc9   :  { %1335 = vmatprep.mubr.f32.mxu1 %v6878_v40 }
  0xca   :  { %4141 = vmatpush1.bf16.msra.mxu0 %v5828_v58 }
  0xcb   :  { %4173 = vmatpush1.bf16.msra.mxu1 %v5832_v61  ;;  %4143 = vmatprep.subr.bf16.mxu0 %v5836_v0 }
  0xcc   :  { %4175 = vmatprep.subr.bf16.mxu1 %v5841_v4 }
  0xce   :  { %4145 = vmatpush1.bf16.msra.mxu0 %v5846_v7 }
  0xcf   :  { %4177 = vmatpush1.bf16.msra.mxu1 %v5850_v10  ;;  %4147 = vmatprep.subr.bf16.mxu0 %v5854_v13 }
  0xd0   :  { %4179 = vmatprep.subr.bf16.mxu1 %v5859_v16 }
  0xd2   :  { %4149 = vmatpush1.bf16.msra.mxu0 %v5864_v19 }
  0xd3   :  { %4181 = vmatpush1.bf16.msra.mxu1 %v5868_v22  ;;  %4151 = vmatprep.subr.bf16.mxu0 %v5872_v25 }
  0xd4   :  { %4183 = vmatprep.subr.bf16.mxu1 %v5877_v28 }
  0xd6   :  { %4153 = vmatpush1.bf16.msra.mxu0 %v5882_v32 }
  0xd7   :  { %4185 = vmatpush1.bf16.msra.mxu1 %v5886_v41  ;;  %4155 = vmatprep.subr.bf16.mxu0 %v5890_v44 }
  0xd8   :  { %4187 = vmatprep.subr.bf16.mxu1 %v5895_v47 }
  0xda   :  { %4157 = vmatpush1.bf16.msra.mxu0 %v5900_v51 }
  0xdb   :  { %4189 = vmatpush1.bf16.msra.mxu1 %v5904_v56  ;;  %4159 = vmatprep.subr.bf16.mxu0 %v5908_v60 }
  0xdc   :  { %4191 = vmatprep.subr.bf16.mxu1 %v5913_v63 }
  0xde   :  { %4161 = vmatpush1.bf16.msra.mxu0 %v5918_v5  ;;  %v134_v5 = vsub.s32 2, %v6092_v3 }
  0xdf   :  { %4193 = vmatpush1.bf16.msra.mxu1 %v5922_v9  ;;  %4163 = vmatprep.subr.bf16.mxu0 %v5926_v14  ;;  %v6106_v9 = vrot.slane %v122_v35, %v138_v23 }
  0xe0   :  { %4195 = vmatprep.subr.bf16.mxu1 %v5931_v17  ;;  %v6110_v60 = vrot.slane %v122_v35, %v134_v5 }
  0xe1   :  { %6881 = vst [vmem:[#allocation61_spill] sm:$0xff] %v6106_v9 }
  0xe2   :  { %4165 = vmatpush1.bf16.msra.mxu0 %v5936_v21  ;;  %6882 = vst [vmem:[#allocation62_spill] sm:$0xff] %v6110_v60 }
  0xe3   :  { %4197 = vmatpush1.bf16.msra.mxu1 %v5940_v26  ;;  %4199 = vmatprep.subr.bf16.mxu0 %v5944_v38 }
  0xe4   :  { %4231 = vmatprep.subr.bf16.mxu1 %v5949_v43 }
 0x178   :  { %v913_v2 = vpop.f32.mrb[0].mxu0 }
 0x179   :  { %v5030_v43 = vadd.f32 %v913_v2, %v6099_v62  ;;  %v984_v38 = vpop.f32.mrb[0].mxu1  ;;  %v915_v15 = vpop.f32.mrb[1].mxu0 }
 0x17a   :  { %v5031_v26 = vadd.f32 %v915_v15, %v6101_v6  ;;  %v986_v21 = vpop.f32.mrb[1].mxu1  ;;  %v5046_v2 = vadd.f32 %v984_v38, %v6110_v60 }
 0x17b   :  { %v3931_v17 = vmul.f32 -1.442695, %v5030_v43  ;;  %v5047_v63 = vadd.f32 %v986_v21, %v6106_v9 }
 0x17c   :  { %v3932_v14 = vmul.f32 -1.442695, %v5031_v26 }
 0x17d   :  { %5171 = vpow2.f32 %v3931_v17  ;;  %v3933_v56 = vmul.f32 -1.442695, %v5047_v63 }
 0x17e   :  { %5173 = vpow2.f32 %v3932_v14  ;;  %v435_v14 = vld [vmem:[%s6746_s6] sm:$0xf] }
 0x17f   :  { %5175 = vpow2.f32 %v3933_v56  ;;  %v6116_v3 = vrot.slane %v435_v14, %v126_v30  ;;  %v6118_v60 = vrot.slane %v435_v14, %v130_v36  ;;  %v6125_v30 = vrot.slane %v435_v14, %v138_v23 }
 0x180   :  { %5177 = vtanh.f32 %v5046_v2 }
 0x187   :  { %v5172_v62 = vpop.eup %5171 }
 0x188   :  { %v5174_v51 = vpop.eup %5173  ;;  %v1147_v47 = vadd.f32 1.0, %v5172_v62 }
 0x189   :  { %v1153_v43 = vadd.f32 1.0, %v5174_v51  ;;  %v5176_v26 = vpop.eup %5175 }
 0x18a   :  { %5179 = vrcp.f32 %v1147_v47  ;;  %v5178_v17 = vpop.eup %5177  ;;  %v1160_v63 = vadd.f32 1.0, %v5176_v26 }
 0x18b   :  { %5181 = vrcp.f32 %v1153_v43 }
 0x18c   :  { %5183 = vrcp.f32 %v1160_v63 }
 0x194   :  { %v5180_v21 = vpop.eup %5179 }
 0x195   :  { %v5182_v15 = vpop.eup %5181  ;;  %v1164_v35 = vmul.f32 %v5180_v21, %v5178_v17  ;;  %v6128_v21 = vrot.slane %v435_v14, %v134_v5  ;;  %v6883_v14 = vld [vmem:[#allocation49_spill] sm:$0xff] }
 0x196   :  { %v1163_v38 = vmul.f32 0.0, %v5182_v15  ;;  %v5184_v15 = vpop.eup %5183 }
 0x198   :  { %v6120_v56 = vadd.f32 %v1164_v35, %v1163_v38  ;;  %v1064_v51 = vpop.f32.mrb[30].mxu0  ;;  %v6133_v38 = vld [vmem:[%s6747_s7] ss:$0 sm:$0xff] }
 0x199   :  { %v5076_v47 = vadd.f32 %v1064_v51, %v6116_v3  ;;  %v1135_v62 = vpop.f32.mrb[30].mxu1  ;;  %v1066_v2 = vpop.f32.mrb[31].mxu0 }
 0x19a   :  { %5185 = vtanh.f32 %v6120_v56  ;;  %v5077_v43 = vadd.f32 %v1066_v2, %v6118_v60  ;;  %v1137_v9 = vpop.f32.mrb[31].mxu1  ;;  %v5092_v51 = vadd.f32 %v1135_v62, %v6128_v21  ;;  %v6884_v62 = vld [vmem:[#allocation50_spill] sm:$0xff] }
 0x19b   :  { %v3934_v17 = vmul.f32 -1.442695, %v5076_v47  ;;  %v5093_v36 = vadd.f32 %v1137_v9, %v6125_v30 }
 0x19c   :  { %v3935_v26 = vmul.f32 -1.442695, %v5077_v43 }
 0x19d   :  { %5187 = vpow2.f32 %v3934_v17  ;;  %v3936_v63 = vmul.f32 -1.442695, %v5093_v36  ;;  %v6885_v17 = vld [vmem:[#allocation51_spill] sm:$0xff] }
 0x19e   :  { %5189 = vpow2.f32 %v3935_v26 }
 0x19f   :  { %5191 = vpow2.f32 %v3936_v63  ;;  %v6887_v63 = vld [vmem:[#allocation53_spill] sm:$0xff] }
 0x1a0   :  { %5193 = vtanh.f32 %v5092_v51 }
 0x1a4   :  { %v5186_v35 = vpop.eup %5185 }
 0x1a5   :  { %v1167_v47 = vmul.f32 %v5186_v35, %v5184_v15  ;;  %v6886_v35 = vld [vmem:[#allocation52_spill] sm:$0xff] }
 0x1a7   :  { %v5188_v2 = vpop.eup %5187  ;;  %1265 = vmatmul.mubr.f32.vlgmr.msra.gmra.mrb[2].mxu0 %v1167_v47  ;;  %1336 = vmatmul.mubr.f32.vlgmr.msra.gmra.mrb[2].mxu1 %v1167_v47  ;;  %v3694_v23 = vmul.f32 %v6133_v38, %v1167_v47 }
 0x1a8   :  { %v5190_v43 = vpop.eup %5189  ;;  %v1171_v9 = vadd.f32 1.0, %v5188_v2  ;;  %4201 = vmatpush1.bf16.msra.mxu0 %v5954_v48  ;;  %4233 = vmatpush1.bf16.msra.mxu1 %v5958_v50 }
 0x1a9   :  { %v1177_v5 = vadd.f32 1.0, %v5190_v43  ;;  %3702 = vadd.xlane.f32.xlu0 %v3694_v23  ;;  %4203 = vmatprep.subr.bf16.mxu0 %v5960_v53  ;;  %v5192_v26 = vpop.eup %5191  ;;  %v6888_v23 = vld [vmem:[#allocation54_spill] sm:$0xff]  ;;  %v6889_v43 = vld [vmem:[#allocation55_spill] sm:$0xff] }
 0x1aa   :  { %5195 = vrcp.f32 %v1171_v9  ;;  %4235 = vmatprep.subr.bf16.mxu1 %v5964_v39  ;;  %1415 = vmatprep.mubr.f32.mxu0 %v6878_v40  ;;  %v5194_v36 = vpop.eup %5193  ;;  %v1184_v2 = vadd.f32 1.0, %v5192_v26 }
 0x1ab   :  { %5197 = vrcp.f32 %v1177_v5  ;;  %1486 = vmatprep.mubr.f32.mxu1 %v6878_v40 }
 0x1ac   :  { %4205 = vmatpush1.bf16.msra.mxu0 %v5970_v8  ;;  %4237 = vmatpush1.bf16.msra.mxu1 %v5974_v11  ;;  %5199 = vrcp.f32 %v1184_v2  ;;  %v6896_v2 = vld [vmem:[#allocation38_spill] sm:$0xff] }
 0x1ad   :  { %4207 = vmatprep.subr.bf16.mxu0 %v5976_v12  ;;  %4239 = vmatprep.subr.bf16.mxu1 %v5979_v20 }
 0x1b0   :  { %4209 = vmatpush1.bf16.msra.mxu0 %v5984_v34  ;;  %4241 = vmatpush1.bf16.msra.mxu1 %v6883_v14 }
 0x1b1   :  { %4211 = vmatprep.subr.bf16.mxu0 %v6884_v62  ;;  %4243 = vmatprep.subr.bf16.mxu1 %v6885_v17  ;;  %v6890_v62 = vld [vmem:[#allocation56_spill] sm:$0xff]  ;;  %v6891_v17 = vld [vmem:[#allocation57_spill] sm:$0xff] }
 0x1b4   :  { %v5196_v15 = vpop.eup %5195  ;;  %4213 = vmatpush1.bf16.msra.mxu0 %v6886_v35  ;;  %4245 = vmatpush1.bf16.msra.mxu1 %v6887_v63  ;;  %v6892_v35 = vld [vmem:[#allocation58_spill] sm:$0xff] }
 0x1b5   :  { %v5198_v51 = vpop.eup %5197  ;;  %v1188_v47 = vmul.f32 %v5196_v15, %v5194_v36  ;;  %4215 = vmatprep.subr.bf16.mxu0 %v6888_v23  ;;  %4247 = vmatprep.subr.bf16.mxu1 %v6889_v43 }
 0x1b6   :  { %v1187_v9 = vmul.f32 0.0, %v5198_v51  ;;  %v5200_v26 = vpop.eup %5199  ;;  %v6894_v51 = vld [vmem:[#allocation36_spill] sm:$0xff] }
 0x1b8   :  { %v6155_v5 = vadd.f32 %v1188_v47, %v1187_v9  ;;  %4217 = vmatpush1.bf16.msra.mxu0 %v6890_v62  ;;  %4249 = vmatpush1.bf16.msra.mxu1 %v6891_v17  ;;  %v6895_v47 = vld [vmem:[#allocation37_spill] sm:$0xff]  ;;  %v6897_v9 = vld [vmem:[#allocation39_spill] sm:$0xff] }
 0x1b9   :  { %4219 = vmatprep.subr.bf16.mxu0 %v6014_v59  ;;  %4251 = vmatprep.subr.bf16.mxu1 %v6892_v35 }
 0x1ba   :  { %5201 = vtanh.f32 %v6155_v5 }
 0x1bc   :  { %4221 = vmatpush1.bf16.msra.mxu0 %v6020_v37  ;;  %4253 = vmatpush1.bf16.msra.mxu1 %v6024_v1 }
 0x1bd   :  { %4223 = vmatprep.subr.bf16.mxu0 %v6026_v24  ;;  %4255 = vmatprep.subr.bf16.mxu1 %v6029_v45 }
 0x1c0   :  { %4225 = vmatpush1.bf16.msra.mxu0 %v6032_v54  ;;  %4257 = vmatpush1.bf16.msra.mxu1 %v6036_v42 }
 0x1c1   :  { %4227 = vmatprep.subr.bf16.mxu0 %v6038_v57  ;;  %4259 = vmatprep.subr.bf16.mxu1 %v6041_v18 }
 0x1c4   :  { %v5202_v36 = vpop.eup %5201  ;;  %4229 = vmatpush1.bf16.msra.mxu0 %v6044_v29  ;;  %4261 = vmatpush1.bf16.msra.mxu1 %v6048_v27 }
 0x1c5   :  { %v6172_v15 = vmul.f32 %v5202_v36, %v5200_v26  ;;  %4263 = vmatprep.subr.bf16.mxu0 %v5755_v31  ;;  %4295 = vmatprep.subr.bf16.mxu1 %v5757_v33  ;;  %v6898_v26 = vld [vmem:[#allocation40_spill] sm:$0xff]  ;;  %v6899_v36 = vld [vmem:[#allocation41_spill] sm:$0xff] }
 0x1c7   :  { %6893 = vst [vmem:[#allocation49_spill] sm:$0xff] %v6172_v15  ;;  %1416 = vmatmul.mubr.f32.vlgmr.msra.gmra.mrb[28].mxu0 %v6172_v15  ;;  %1487 = vmatmul.mubr.f32.vlgmr.msra.gmra.mrb[28].mxu1 %v6172_v15  ;;  %v6900_v15 = vld [vmem:[#allocation42_spill] sm:$0xff] }
 0x1c8   :  { %4265 = vmatpush1.bf16.msra.mxu0 %v5814_v46  ;;  %4297 = vmatpush1.bf16.msra.mxu1 %v5817_v49 }
 0x1c9   :  { %4267 = vmatprep.subr.bf16.mxu0 %v5819_v52  ;;  %4299 = vmatprep.subr.bf16.mxu1 %v5823_v55 }
 0x1ca   :  { %1618 = vmatprep.mubr.f32.mxu0 %v6878_v40  ;;  %1689 = vmatprep.mubr.f32.mxu1 %v6878_v40 }
 0x1cc   :  { %4269 = vmatpush1.bf16.msra.mxu0 %v5828_v58  ;;  %4301 = vmatpush1.bf16.msra.mxu1 %v5832_v61 }
 0x1cd   :  { %4271 = vmatprep.subr.bf16.mxu0 %v5836_v0  ;;  %4303 = vmatprep.subr.bf16.mxu1 %v5841_v4 }
 0x1d0   :  { %4273 = vmatpush1.bf16.msra.mxu0 %v5846_v7  ;;  %4305 = vmatpush1.bf16.msra.mxu1 %v5850_v10 }
 0x1d1   :  { %4275 = vmatprep.subr.bf16.mxu0 %v5854_v13  ;;  %4307 = vmatprep.subr.bf16.mxu1 %v5859_v16 }
 0x1d4   :  { %4277 = vmatpush1.bf16.msra.mxu0 %v5864_v19  ;;  %4309 = vmatpush1.bf16.msra.mxu1 %v5868_v22 }
 0x1d5   :  { %4279 = vmatprep.subr.bf16.mxu0 %v5872_v25  ;;  %4311 = vmatprep.subr.bf16.mxu1 %v5877_v28  ;;  %v6901_v28 = vld [vmem:[#allocation43_spill] sm:$0xff]  ;;  %v6907_v25 = vld [vmem:[#allocation60_spill] sm:$0xff] }
 0x1d8   :  { %4281 = vmatpush1.bf16.msra.mxu0 %v5882_v32  ;;  %4313 = vmatpush1.bf16.msra.mxu1 %v5886_v41  ;;  %v6902_v32 = vld [vmem:[#allocation44_spill] sm:$0xff]  ;;  %v6903_v41 = vld [vmem:[#allocation45_spill] sm:$0xff] }
 0x1d9   :  { %4283 = vmatprep.subr.bf16.mxu0 %v5890_v44  ;;  %4315 = vmatprep.subr.bf16.mxu1 %v6894_v51  ;;  %v6904_v44 = vld [vmem:[#allocation46_spill] sm:$0xff]  ;;  %v6905_v51 = vld [vmem:[#allocation47_spill] sm:$0xff] }
 0x1dc   :  { %4285 = vmatpush1.bf16.msra.mxu0 %v6895_v47  ;;  %4317 = vmatpush1.bf16.msra.mxu1 %v6896_v2  ;;  %v6906_v47 = vld [vmem:[#allocation48_spill] sm:$0xff] }
 0x1dd   :  { %4287 = vmatprep.subr.bf16.mxu0 %v6897_v9  ;;  %4319 = vmatprep.subr.bf16.mxu1 %v6898_v26 }
 0x1e0   :  { %4289 = vmatpush1.bf16.msra.mxu0 %v6899_v36  ;;  %4321 = vmatpush1.bf16.msra.mxu1 %v6900_v15 }
 0x1e1   :  { %4291 = vmatprep.subr.bf16.mxu0 %v6901_v28  ;;  %4323 = vmatprep.subr.bf16.mxu1 %v6902_v32  ;;  %v6908_v32 = vld [vmem:[#allocation61_spill] sm:$0xff] }
 0x1e4   :  { %4293 = vmatpush1.bf16.msra.mxu0 %v6903_v41  ;;  %4325 = vmatpush1.bf16.msra.mxu1 %v6904_v44  ;;  %v6909_v44 = vld [vmem:[#allocation62_spill] sm:$0xff] }
 0x1e5   :  { %4327 = vmatprep.subr.bf16.mxu0 %v6905_v51  ;;  %4359 = vmatprep.subr.bf16.mxu1 %v6906_v47 }
 0x27a   :  { %v1266_v2 = vpop.f32.mrb[2].mxu0  ;;  %v1337_v9 = vpop.f32.mrb[2].mxu1 }
 0x27b   :  { %v5032_v26 = vadd.f32 %v1266_v2, %v6907_v25  ;;  %v1268_v22 = vpop.f32.mrb[3].mxu0  ;;  %v1339_v36 = vpop.f32.mrb[3].mxu1  ;;  %v5048_v13 = vadd.f32 %v1337_v9, %v6909_v44 }
 0x27c   :  { %v5033_v15 = vadd.f32 %v1268_v22, %v6101_v6  ;;  %v5049_v41 = vadd.f32 %v1339_v36, %v6908_v32 }
 0x27d   :  { %v3937_v19 = vmul.f32 -1.442695, %v5032_v26 }
 0x27e   :  { %v3938_v28 = vmul.f32 -1.442695, %v5033_v15  ;;  %v3939_v16 = vmul.f32 -1.442695, %v5049_v41 }
 0x27f   :  { %5203 = vpow2.f32 %v3937_v19 }
 0x280   :  { %5205 = vpow2.f32 %v3938_v28 }
 0x281   :  { %5207 = vpow2.f32 %v3939_v16 }
 0x282   :  { %5209 = vtanh.f32 %v5048_v13 }
 0x289   :  { %v5204_v51 = vpop.eup %5203 }
 0x28a   :  { %v5206_v10 = vpop.eup %5205  ;;  %v1500_v47 = vadd.f32 1.0, %v5204_v51 }
 0x28b   :  { %v1506_v7 = vadd.f32 1.0, %v5206_v10  ;;  %v5208_v2 = vpop.eup %5207 }
 0x28c   :  { %5211 = vrcp.f32 %v1500_v47  ;;  %v5210_v25 = vpop.eup %5209  ;;  %v1513_v19 = vadd.f32 1.0, %v5208_v2 }
 0x28d   :  { %5213 = vrcp.f32 %v1506_v7 }
 0x28e   :  { %5215 = vrcp.f32 %v1513_v19 }
 0x296   :  { %v5212_v22 = vpop.eup %5211 }
 0x297   :  { %v5214_v26 = vpop.eup %5213  ;;  %v1517_v15 = vmul.f32 %v5212_v22, %v5210_v25 }
 0x298   :  { %v1516_v28 = vmul.f32 %v5214_v26, %v6120_v56  ;;  %v5216_v56 = vpop.eup %5215 }
 0x29a   :  { %v6217_v36 = vadd.f32 %v1517_v15, %v1516_v28  ;;  %v1417_v41 = vpop.f32.mrb[28].mxu0  ;;  %v1488_v9 = vpop.f32.mrb[28].mxu1 }
 0x29b   :  { %v5074_v51 = vadd.f32 %v1417_v41, %v6116_v3  ;;  %v1419_v16 = vpop.f32.mrb[29].mxu0  ;;  %v1490_v13 = vpop.f32.mrb[29].mxu1  ;;  %v5090_v26 = vadd.f32 %v1488_v9, %v6128_v21  ;;  %v6910_v9 = vld [vmem:[#allocation50_spill] sm:$0xff] }
 0x29c   :  { %v5075_v10 = vadd.f32 %v1419_v16, %v6118_v60  ;;  %5217 = vtanh.f32 %v6217_v36  ;;  %v5091_v25 = vadd.f32 %v1490_v13, %v6125_v30  ;;  %v6911_v13 = vld [vmem:[#allocation51_spill] sm:$0xff] }
 0x29d   :  { %v3940_v7 = vmul.f32 -1.442695, %v5074_v51 }
 0x29e   :  { %v3941_v47 = vmul.f32 -1.442695, %v5075_v10  ;;  %v3942_v22 = vmul.f32 -1.442695, %v5091_v25  ;;  %v6912_v25 = vld [vmem:[#allocation52_spill] sm:$0xff] }
 0x29f   :  { %5219 = vpow2.f32 %v3940_v7 }
 0x2a0   :  { %5221 = vpow2.f32 %v3941_v47 }
 0x2a1   :  { %5223 = vpow2.f32 %v3942_v22 }
 0x2a2   :  { %5225 = vtanh.f32 %v5090_v26 }
 0x2a6   :  { %v5218_v2 = vpop.eup %5217 }
 0x2a7   :  { %v1520_v15 = vmul.f32 %v5218_v2, %v5216_v56 }
 0x2a9   :  { %v5220_v19 = vpop.eup %5219  ;;  %1619 = vmatmul.mubr.f32.vlgmr.msra.gmra.mrb[4].mxu0 %v1520_v15  ;;  %1690 = vmatmul.mubr.f32.vlgmr.msra.gmra.mrb[4].mxu1 %v1520_v15  ;;  %v3695_v28 = vmul.f32 %v6133_v38, %v1520_v15 }
 0x2aa   :  { %v5222_v41 = vpop.eup %5221  ;;  %v1524_v16 = vadd.f32 1.0, %v5220_v19  ;;  %4329 = vmatpush1.bf16.msra.mxu0 %v5954_v48  ;;  %4361 = vmatpush1.bf16.msra.mxu1 %v5958_v50 }
 0x2ab   :  { %v1530_v51 = vadd.f32 1.0, %v5222_v41  ;;  %3704 = vadd.xlane.f32.xlu0 %v3695_v28  ;;  %4331 = vmatprep.subr.bf16.mxu0 %v5960_v53  ;;  %v5224_v10 = vpop.eup %5223  ;;  %v6914_v41 = vld [vmem:[#allocation25_spill] sm:$0xff] }
 0x2ac   :  { %5227 = vrcp.f32 %v1524_v16  ;;  %4363 = vmatprep.subr.bf16.mxu1 %v5964_v39  ;;  %1769 = vmatprep.mubr.f32.mxu0 %v6878_v40  ;;  %v5226_v7 = vpop.eup %5225  ;;  %v1537_v22 = vadd.f32 1.0, %v5224_v10  ;;  %v6915_v16 = vld [vmem:[#allocation26_spill] sm:$0xff]  ;;  %v6917_v10 = vld [vmem:[#allocation28_spill] sm:$0xff] }
 0x2ad   :  { %5229 = vrcp.f32 %v1530_v51  ;;  %1840 = vmatprep.mubr.f32.mxu1 %v6878_v40  ;;  %v6916_v51 = vld [vmem:[#allocation27_spill] sm:$0xff] }
 0x2ae   :  { %4333 = vmatpush1.bf16.msra.mxu0 %v5970_v8  ;;  %4365 = vmatpush1.bf16.msra.mxu1 %v5974_v11  ;;  %5231 = vrcp.f32 %v1537_v22  ;;  %v6922_v22 = vld [vmem:[#allocation33_spill] sm:$0xff] }
 0x2af   :  { %4335 = vmatprep.subr.bf16.mxu0 %v5976_v12  ;;  %4367 = vmatprep.subr.bf16.mxu1 %v5979_v20 }
 0x2b2   :  { %4337 = vmatpush1.bf16.msra.mxu0 %v5984_v34  ;;  %4369 = vmatpush1.bf16.msra.mxu1 %v6883_v14 }
 0x2b3   :  { %4339 = vmatprep.subr.bf16.mxu0 %v6910_v9  ;;  %4371 = vmatprep.subr.bf16.mxu1 %v6911_v13 }
 0x2b6   :  { %v5228_v47 = vpop.eup %5227  ;;  %4341 = vmatpush1.bf16.msra.mxu0 %v6912_v25  ;;  %4373 = vmatpush1.bf16.msra.mxu1 %v6887_v63 }
 0x2b7   :  { %v5230_v56 = vpop.eup %5229  ;;  %v1541_v2 = vmul.f32 %v5228_v47, %v5226_v7  ;;  %4343 = vmatprep.subr.bf16.mxu0 %v6888_v23  ;;  %4375 = vmatprep.subr.bf16.mxu1 %v6889_v43  ;;  %v6918_v7 = vld [vmem:[#allocation29_spill] sm:$0xff]  ;;  %v6919_v47 = vld [vmem:[#allocation30_spill] sm:$0xff] }
 0x2b8   :  { %v1540_v26 = vmul.f32 %v5230_v56, %v6155_v5  ;;  %v5232_v5 = vpop.eup %5231  ;;  %v6920_v56 = vld [vmem:[#allocation31_spill] sm:$0xff] }
 0x2ba   :  { %v6244_v15 = vadd.f32 %v1541_v2, %v1540_v26  ;;  %4345 = vmatpush1.bf16.msra.mxu0 %v6890_v62  ;;  %4377 = vmatpush1.bf16.msra.mxu1 %v6891_v17  ;;  %v6921_v2 = vld [vmem:[#allocation32_spill] sm:$0xff]  ;;  %v6923_v26 = vld [vmem:[#allocation34_spill] sm:$0xff] }
 0x2bb   :  { %4347 = vmatprep.subr.bf16.mxu0 %v6014_v59  ;;  %4379 = vmatprep.subr.bf16.mxu1 %v6892_v35 }
 0x2bc   :  { %5233 = vtanh.f32 %v6244_v15 }
 0x2be   :  { %4349 = vmatpush1.bf16.msra.mxu0 %v6020_v37  ;;  %4381 = vmatpush1.bf16.msra.mxu1 %v6024_v1 }
 0x2bf   :  { %4351 = vmatprep.subr.bf16.mxu0 %v6026_v24  ;;  %4383 = vmatprep.subr.bf16.mxu1 %v6029_v45 }
 0x2c2   :  { %4353 = vmatpush1.bf16.msra.mxu0 %v6032_v54  ;;  %4385 = vmatpush1.bf16.msra.mxu1 %v6036_v42 }
 0x2c3   :  { %4355 = vmatprep.subr.bf16.mxu0 %v6038_v57  ;;  %4387 = vmatprep.subr.bf16.mxu1 %v6041_v18 }
 0x2c6   :  { %v5234_v19 = vpop.eup %5233  ;;  %4357 = vmatpush1.bf16.msra.mxu0 %v6044_v29  ;;  %4389 = vmatpush1.bf16.msra.mxu1 %v6048_v27 }
 0x2c7   :  { %v6261_v28 = vmul.f32 %v5234_v19, %v5232_v5  ;;  %4391 = vmatprep.subr.bf16.mxu0 %v5755_v31  ;;  %4423 = vmatprep.subr.bf16.mxu1 %v5757_v33  ;;  %v6924_v5 = vld [vmem:[#allocation35_spill] sm:$0xff]  ;;  %v6925_v19 = vld [vmem:[#allocation36_spill] sm:$0xff] }
 0x2c9   :  { %6913 = vst [vmem:[#allocation53_spill] sm:$0xff] %v6261_v28  ;;  %1770 = vmatmul.mubr.f32.vlgmr.msra.gmra.mrb[26].mxu0 %v6261_v28  ;;  %1841 = vmatmul.mubr.f32.vlgmr.msra.gmra.mrb[26].mxu1 %v6261_v28  ;;  %v6926_v28 = vld [vmem:[#allocation37_spill] sm:$0xff] }
 0x2ca   :  { %4393 = vmatpush1.bf16.msra.mxu0 %v5814_v46  ;;  %4425 = vmatpush1.bf16.msra.mxu1 %v5817_v49 }
 0x2cb   :  { %4395 = vmatprep.subr.bf16.mxu0 %v5819_v52  ;;  %4427 = vmatprep.subr.bf16.mxu1 %v5823_v55 }
 0x2cc   :  { %1972 = vmatprep.mubr.f32.mxu0 %v6878_v40  ;;  %2043 = vmatprep.mubr.f32.mxu1 %v6878_v40 }
 0x2ce   :  { %4397 = vmatpush1.bf16.msra.mxu0 %v5828_v58  ;;  %4429 = vmatpush1.bf16.msra.mxu1 %v5832_v61 }
 0x2cf   :  { %4399 = vmatprep.subr.bf16.mxu0 %v5836_v0  ;;  %4431 = vmatprep.subr.bf16.mxu1 %v5841_v4 }
 0x2d2   :  { %4401 = vmatpush1.bf16.msra.mxu0 %v6914_v41  ;;  %4433 = vmatpush1.bf16.msra.mxu1 %v6915_v16  ;;  %v6938_v16 = vld [vmem:[#allocation60_spill] sm:$0xff] }
 0x2d3   :  { %4403 = vmatprep.subr.bf16.mxu0 %v6916_v51  ;;  %4435 = vmatprep.subr.bf16.mxu1 %v6917_v10  ;;  %v6927_v51 = vld [vmem:[#allocation38_spill] sm:$0xff]  ;;  %v6928_v10 = vld [vmem:[#allocation39_spill] sm:$0xff] }
 0x2d6   :  { %4405 = vmatpush1.bf16.msra.mxu0 %v6918_v7  ;;  %4437 = vmatpush1.bf16.msra.mxu1 %v6919_v47  ;;  %v6929_v7 = vld [vmem:[#allocation40_spill] sm:$0xff]  ;;  %v6930_v47 = vld [vmem:[#allocation41_spill] sm:$0xff] }
 0x2d7   :  { %4407 = vmatprep.subr.bf16.mxu0 %v6920_v56  ;;  %4439 = vmatprep.subr.bf16.mxu1 %v6921_v2  ;;  %v6931_v56 = vld [vmem:[#allocation42_spill] sm:$0xff]  ;;  %v6932_v2 = vld [vmem:[#allocation43_spill] sm:$0xff] }
 0x2da   :  { %4409 = vmatpush1.bf16.msra.mxu0 %v6922_v22  ;;  %4441 = vmatpush1.bf16.msra.mxu1 %v6923_v26  ;;  %v6933_v22 = vld [vmem:[#allocation44_spill] sm:$0xff]  ;;  %v6934_v26 = vld [vmem:[#allocation45_spill] sm:$0xff] }
 0x2db   :  { %4411 = vmatprep.subr.bf16.mxu0 %v6924_v5  ;;  %4443 = vmatprep.subr.bf16.mxu1 %v6925_v19  ;;  %v6935_v5 = vld [vmem:[#allocation46_spill] sm:$0xff]  ;;  %v6936_v19 = vld [vmem:[#allocation47_spill] sm:$0xff] }
 0x2de   :  { %4413 = vmatpush1.bf16.msra.mxu0 %v6926_v28  ;;  %4445 = vmatpush1.bf16.msra.mxu1 %v6927_v51  ;;  %v6937_v28 = vld [vmem:[#allocation48_spill] sm:$0xff] }
 0x2df   :  { %4415 = vmatprep.subr.bf16.mxu0 %v6928_v10  ;;  %4447 = vmatprep.subr.bf16.mxu1 %v6929_v7 }
 0x2e2   :  { %4417 = vmatpush1.bf16.msra.mxu0 %v6930_v47  ;;  %4449 = vmatpush1.bf16.msra.mxu1 %v6931_v56 }
 0x2e3   :  { %4419 = vmatprep.subr.bf16.mxu0 %v6932_v2  ;;  %4451 = vmatprep.subr.bf16.mxu1 %v6933_v22 }
 0x2e6   :  { %4421 = vmatpush1.bf16.msra.mxu0 %v6934_v26  ;;  %4453 = vmatpush1.bf16.msra.mxu1 %v6935_v5 }
 0x2e7   :  { %4455 = vmatprep.subr.bf16.mxu0 %v6936_v19  ;;  %4487 = vmatprep.subr.bf16.mxu1 %v6937_v28 }
 0x37c   :  { %v1620_v51 = vpop.f32.mrb[4].mxu0  ;;  %v1691_v10 = vpop.f32.mrb[4].mxu1 }
 0x37d   :  { %v5034_v7 = vadd.f32 %v1620_v51, %v6938_v16  ;;  %v1622_v41 = vpop.f32.mrb[5].mxu0  ;;  %v1693_v47 = vpop.f32.mrb[5].mxu1  ;;  %v5050_v5 = vadd.f32 %v1691_v10, %v6909_v44 }
 0x37e   :  { %v5035_v56 = vadd.f32 %v1622_v41, %v6101_v6  ;;  %v5051_v26 = vadd.f32 %v1693_v47, %v6908_v32 }
 0x37f   :  { %v3943_v4 = vmul.f32 -1.442695, %v5034_v7 }
 0x380   :  { %v3944_v2 = vmul.f32 -1.442695, %v5035_v56  ;;  %v3945_v22 = vmul.f32 -1.442695, %v5051_v26 }
 0x381   :  { %5235 = vpow2.f32 %v3943_v4 }
 0x382   :  { %5237 = vpow2.f32 %v3944_v2 }
 0x383   :  { %5239 = vpow2.f32 %v3945_v22 }
 0x384   :  { %5241 = vtanh.f32 %v5050_v5 }
 0x38b   :  { %v5236_v19 = vpop.eup %5235 }
 0x38c   :  { %v5238_v0 = vpop.eup %5237  ;;  %v1854_v28 = vadd.f32 1.0, %v5236_v19 }
 0x38d   :  { %v1860_v61 = vadd.f32 1.0, %v5238_v0  ;;  %v5240_v51 = vpop.eup %5239 }
 0x38e   :  { %5243 = vrcp.f32 %v1854_v28  ;;  %v5242_v16 = vpop.eup %5241  ;;  %v1867_v4 = vadd.f32 1.0, %v5240_v51 }
 0x38f   :  { %5245 = vrcp.f32 %v1860_v61 }
 0x390   :  { %5247 = vrcp.f32 %v1867_v4 }
 0x398   :  { %v5244_v41 = vpop.eup %5243 }
 0x399   :  { %v5246_v7 = vpop.eup %5245  ;;  %v1871_v56 = vmul.f32 %v5244_v41, %v5242_v16 }
 0x39a   :  { %v1870_v2 = vmul.f32 %v5246_v7, %v6217_v36  ;;  %v5248_v36 = vpop.eup %5247 }
 0x39c   :  { %v6306_v47 = vadd.f32 %v1871_v56, %v1870_v2  ;;  %v1771_v26 = vpop.f32.mrb[26].mxu0  ;;  %v1842_v10 = vpop.f32.mrb[26].mxu1 }
 0x39d   :  { %v5072_v19 = vadd.f32 %v1771_v26, %v6116_v3  ;;  %v1773_v22 = vpop.f32.mrb[27].mxu0  ;;  %v1844_v5 = vpop.f32.mrb[27].mxu1  ;;  %v5088_v7 = vadd.f32 %v1842_v10, %v6128_v21 }
 0x39e   :  { %v5073_v0 = vadd.f32 %v1773_v22, %v6118_v60  ;;  %5249 = vtanh.f32 %v6306_v47  ;;  %v5089_v16 = vadd.f32 %v1844_v5, %v6125_v30 }
 0x39f   :  { %v3946_v61 = vmul.f32 -1.442695, %v5072_v19 }
 0x3a0   :  { %v3947_v28 = vmul.f32 -1.442695, %v5073_v0  ;;  %v3948_v41 = vmul.f32 -1.442695, %v5089_v16 }
 0x3a1   :  { %5251 = vpow2.f32 %v3946_v61 }
 0x3a2   :  { %5253 = vpow2.f32 %v3947_v28 }
 0x3a3   :  { %5255 = vpow2.f32 %v3948_v41 }
 0x3a4   :  { %5257 = vtanh.f32 %v5088_v7 }
 0x3a8   :  { %v5250_v51 = vpop.eup %5249 }
 0x3a9   :  { %v1874_v56 = vmul.f32 %v5250_v51, %v5248_v36 }
 0x3ab   :  { %v5252_v4 = vpop.eup %5251  ;;  %1973 = vmatmul.mubr.f32.vlgmr.msra.gmra.mrb[6].mxu0 %v1874_v56  ;;  %2044 = vmatmul.mubr.f32.vlgmr.msra.gmra.mrb[6].mxu1 %v1874_v56  ;;  %v3696_v2 = vmul.f32 %v6133_v38, %v1874_v56  ;;  %v6355_v56 = vld [vmem:[%s6748_s8] ss:$0 sm:$0xff] }
 0x3ac   :  { %v5254_v26 = vpop.eup %5253  ;;  %v1878_v22 = vadd.f32 1.0, %v5252_v4  ;;  %4457 = vmatpush1.bf16.msra.mxu0 %v5954_v48  ;;  %4489 = vmatpush1.bf16.msra.mxu1 %v5958_v50 }
 0x3ad   :  { %v1884_v19 = vadd.f32 1.0, %v5254_v26  ;;  %3706 = vadd.xlane.f32.xlu0 %v3696_v2  ;;  %4459 = vmatprep.subr.bf16.mxu0 %v5960_v53  ;;  %v5256_v10 = vpop.eup %5255  ;;  %v6939_v2 = vld [vmem:[#allocation22_spill] sm:$0xff]  ;;  %v6940_v26 = vld [vmem:[#allocation23_spill] sm:$0xff] }
 0x3ae   :  { %5259 = vrcp.f32 %v1878_v22  ;;  %4491 = vmatprep.subr.bf16.mxu1 %v5964_v39  ;;  %2123 = vmatprep.mubr.f32.mxu0 %v6878_v40  ;;  %v5258_v5 = vpop.eup %5257  ;;  %v1891_v16 = vadd.f32 1.0, %v5256_v10  ;;  %v6941_v22 = vld [vmem:[#allocation24_spill] sm:$0xff]  ;;  %v6943_v10 = vld [vmem:[#allocation26_spill] sm:$0xff] }
 0x3af   :  { %5261 = vrcp.f32 %v1884_v19  ;;  %2194 = vmatprep.mubr.f32.mxu1 %v6878_v40  ;;  %v6942_v19 = vld [vmem:[#allocation25_spill] sm:$0xff] }
 0x3b0   :  { %4461 = vmatpush1.bf16.msra.mxu0 %v5970_v8  ;;  %4493 = vmatpush1.bf16.msra.mxu1 %v5974_v11  ;;  %5263 = vrcp.f32 %v1891_v16  ;;  %v6948_v16 = vld [vmem:[#allocation31_spill] sm:$0xff] }
 0x3b1   :  { %4463 = vmatprep.subr.bf16.mxu0 %v5976_v12  ;;  %4495 = vmatprep.subr.bf16.mxu1 %v5979_v20 }
 0x3b4   :  { %4465 = vmatpush1.bf16.msra.mxu0 %v5984_v34  ;;  %4497 = vmatpush1.bf16.msra.mxu1 %v6883_v14 }
 0x3b5   :  { %4467 = vmatprep.subr.bf16.mxu0 %v6910_v9  ;;  %4499 = vmatprep.subr.bf16.mxu1 %v6911_v13 }
 0x3b8   :  { %v5260_v0 = vpop.eup %5259  ;;  %4469 = vmatpush1.bf16.msra.mxu0 %v6912_v25  ;;  %4501 = vmatpush1.bf16.msra.mxu1 %v6887_v63 }
 0x3b9   :  { %v5262_v61 = vpop.eup %5261  ;;  %v1895_v28 = vmul.f32 %v5260_v0, %v5258_v5  ;;  %4471 = vmatprep.subr.bf16.mxu0 %v6888_v23  ;;  %4503 = vmatprep.subr.bf16.mxu1 %v6889_v43  ;;  %v6944_v5 = vld [vmem:[#allocation27_spill] sm:$0xff]  ;;  %v6945_v0 = vld [vmem:[#allocation28_spill] sm:$0xff] }
 0x3ba   :  { %v1894_v36 = vmul.f32 %v5262_v61, %v6244_v15  ;;  %v5264_v15 = vpop.eup %5263  ;;  %v6946_v61 = vld [vmem:[#allocation29_spill] sm:$0xff] }
 0x3bc   :  { %v6333_v51 = vadd.f32 %v1895_v28, %v1894_v36  ;;  %4473 = vmatpush1.bf16.msra.mxu0 %v6890_v62  ;;  %4505 = vmatpush1.bf16.msra.mxu1 %v6891_v17  ;;  %v6947_v28 = vld [vmem:[#allocation30_spill] sm:$0xff]  ;;  %v6949_v36 = vld [vmem:[#allocation32_spill] sm:$0xff] }
 0x3bd   :  { %4475 = vmatprep.subr.bf16.mxu0 %v6014_v59  ;;  %4507 = vmatprep.subr.bf16.mxu1 %v6892_v35 }
 0x3be   :  { %5265 = vtanh.f32 %v6333_v51 }
 0x3c0   :  { %4477 = vmatpush1.bf16.msra.mxu0 %v6020_v37  ;;  %4509 = vmatpush1.bf16.msra.mxu1 %v6024_v1 }
 0x3c1   :  { %4479 = vmatprep.subr.bf16.mxu0 %v6026_v24  ;;  %4511 = vmatprep.subr.bf16.mxu1 %v6029_v45 }
 0x3c4   :  { %4481 = vmatpush1.bf16.msra.mxu0 %v6032_v54  ;;  %4513 = vmatpush1.bf16.msra.mxu1 %v6036_v42 }
 0x3c5   :  { %4483 = vmatprep.subr.bf16.mxu0 %v6038_v57  ;;  %4515 = vmatprep.subr.bf16.mxu1 %v6041_v18 }
 0x3c8   :  { %v5266_v41 = vpop.eup %5265  ;;  %4485 = vmatpush1.bf16.msra.mxu0 %v6044_v29  ;;  %4517 = vmatpush1.bf16.msra.mxu1 %v6048_v27 }
 0x3c9   :  { %v1898_v7 = vmul.f32 %v5266_v41, %v5264_v15  ;;  %4519 = vmatprep.subr.bf16.mxu0 %v5755_v31  ;;  %4551 = vmatprep.subr.bf16.mxu1 %v5757_v33  ;;  %v6950_v15 = vld [vmem:[#allocation33_spill] sm:$0xff]  ;;  %v6951_v41 = vld [vmem:[#allocation34_spill] sm:$0xff] }
 0x3cb   :  { %2124 = vmatmul.mubr.f32.vlgmr.msra.gmra.mrb[24].mxu0 %v1898_v7  ;;  %2195 = vmatmul.mubr.f32.vlgmr.msra.gmra.mrb[24].mxu1 %v1898_v7  ;;  %v3730_v4 = vmul.f32 %v6355_v56, %v1898_v7  ;;  %v6952_v7 = vld [vmem:[#allocation35_spill] sm:$0xff] }
 0x3cc   :  { %4521 = vmatpush1.bf16.msra.mxu0 %v5814_v46  ;;  %4553 = vmatpush1.bf16.msra.mxu1 %v5817_v49 }
 0x3cd   :  { %3743 = vadd.xlane.f32.xlu1 %v3730_v4  ;;  %4523 = vmatprep.subr.bf16.mxu0 %v5819_v52  ;;  %v6953_v4 = vld [vmem:[#allocation36_spill] sm:$0xff] }
 0x3ce   :  { %4555 = vmatprep.subr.bf16.mxu1 %v5823_v55  ;;  %2326 = vmatprep.mubr.f32.mxu0 %v6878_v40 }
 0x3cf   :  { %2397 = vmatprep.mubr.f32.mxu1 %v6878_v40 }
 0x3d0   :  { %4525 = vmatpush1.bf16.msra.mxu0 %v5828_v58  ;;  %4557 = vmatpush1.bf16.msra.mxu1 %v6939_v2 }
 0x3d1   :  { %4527 = vmatprep.subr.bf16.mxu0 %v6940_v26  ;;  %4559 = vmatprep.subr.bf16.mxu1 %v6941_v22 }
 0x3d4   :  { %4529 = vmatpush1.bf16.msra.mxu0 %v6942_v19  ;;  %4561 = vmatpush1.bf16.msra.mxu1 %v6943_v10  ;;  %v6954_v10 = vld [vmem:[#allocation37_spill] sm:$0xff]  ;;  %v6966_v19 = vld [vmem:[#allocation60_spill] sm:$0xff] }
 0x3d5   :  { %4531 = vmatprep.subr.bf16.mxu0 %v6944_v5  ;;  %4563 = vmatprep.subr.bf16.mxu1 %v6945_v0  ;;  %v6955_v5 = vld [vmem:[#allocation38_spill] sm:$0xff]  ;;  %v6956_v0 = vld [vmem:[#allocation39_spill] sm:$0xff] }
 0x3d8   :  { %4533 = vmatpush1.bf16.msra.mxu0 %v6946_v61  ;;  %4565 = vmatpush1.bf16.msra.mxu1 %v6947_v28  ;;  %v6957_v61 = vld [vmem:[#allocation40_spill] sm:$0xff]  ;;  %v6958_v28 = vld [vmem:[#allocation41_spill] sm:$0xff] }
 0x3d9   :  { %4535 = vmatprep.subr.bf16.mxu0 %v6948_v16  ;;  %4567 = vmatprep.subr.bf16.mxu1 %v6949_v36  ;;  %v6959_v16 = vld [vmem:[#allocation42_spill] sm:$0xff]  ;;  %v6960_v36 = vld [vmem:[#allocation43_spill] sm:$0xff] }
 0x3dc   :  { %4537 = vmatpush1.bf16.msra.mxu0 %v6950_v15  ;;  %4569 = vmatpush1.bf16.msra.mxu1 %v6951_v41  ;;  %v6961_v15 = vld [vmem:[#allocation44_spill] sm:$0xff]  ;;  %v6962_v41 = vld [vmem:[#allocation45_spill] sm:$0xff] }
 0x3dd   :  { %4539 = vmatprep.subr.bf16.mxu0 %v6952_v7  ;;  %4571 = vmatprep.subr.bf16.mxu1 %v6953_v4  ;;  %v6963_v7 = vld [vmem:[#allocation46_spill] sm:$0xff]  ;;  %v6964_v4 = vld [vmem:[#allocation47_spill] sm:$0xff] }
 0x3e0   :  { %4541 = vmatpush1.bf16.msra.mxu0 %v6954_v10  ;;  %4573 = vmatpush1.bf16.msra.mxu1 %v6955_v5  ;;  %v6965_v10 = vld [vmem:[#allocation48_spill] sm:$0xff] }
 0x3e1   :  { %4543 = vmatprep.subr.bf16.mxu0 %v6956_v0  ;;  %4575 = vmatprep.subr.bf16.mxu1 %v6957_v61 }
 0x3e4   :  { %4545 = vmatpush1.bf16.msra.mxu0 %v6958_v28  ;;  %4577 = vmatpush1.bf16.msra.mxu1 %v6959_v16 }
 0x3e5   :  { %4547 = vmatprep.subr.bf16.mxu0 %v6960_v36  ;;  %4579 = vmatprep.subr.bf16.mxu1 %v6961_v15 }
 0x3e8   :  { %4549 = vmatpush1.bf16.msra.mxu0 %v6962_v41  ;;  %4581 = vmatpush1.bf16.msra.mxu1 %v6963_v7 }
 0x3e9   :  { %4583 = vmatprep.subr.bf16.mxu0 %v6964_v4  ;;  %4615 = vmatprep.subr.bf16.mxu1 %v6965_v10 }
 0x47e   :  { %v1974_v5 = vpop.f32.mrb[6].mxu0  ;;  %v2045_v0 = vpop.f32.mrb[6].mxu1 }
 0x47f   :  { %v5036_v61 = vadd.f32 %v1974_v5, %v6966_v19  ;;  %v1976_v22 = vpop.f32.mrb[7].mxu0  ;;  %v2047_v28 = vpop.f32.mrb[7].mxu1  ;;  %v5052_v7 = vadd.f32 %v2045_v0, %v6909_v44 }
 0x480   :  { %v5037_v16 = vadd.f32 %v1976_v22, %v6101_v6  ;;  %v5053_v41 = vadd.f32 %v2047_v28, %v6908_v32 }
 0x481   :  { %v3949_v26 = vmul.f32 -1.442695, %v5036_v61 }
 0x482   :  { %v3950_v36 = vmul.f32 -1.442695, %v5037_v16  ;;  %v3951_v15 = vmul.f32 -1.442695, %v5053_v41 }
 0x483   :  { %5267 = vpow2.f32 %v3949_v26 }
 0x484   :  { %5269 = vpow2.f32 %v3950_v36 }
 0x485   :  { %5271 = vpow2.f32 %v3951_v15 }
 0x486   :  { %5273 = vtanh.f32 %v5052_v7 }
 0x48d   :  { %v5268_v4 = vpop.eup %5267 }
 0x48e   :  { %v5270_v2 = vpop.eup %5269  ;;  %v2208_v10 = vadd.f32 1.0, %v5268_v4 }
 0x48f   :  { %v2214_v58 = vadd.f32 1.0, %v5270_v2  ;;  %v5272_v5 = vpop.eup %5271 }
 0x490   :  { %5275 = vrcp.f32 %v2208_v10  ;;  %v5274_v19 = vpop.eup %5273  ;;  %v2221_v26 = vadd.f32 1.0, %v5272_v5 }
 0x491   :  { %5277 = vrcp.f32 %v2214_v58 }
 0x492   :  { %5279 = vrcp.f32 %v2221_v26 }
 0x49a   :  { %v5276_v22 = vpop.eup %5275 }
 0x49b   :  { %v5278_v61 = vpop.eup %5277  ;;  %v2225_v16 = vmul.f32 %v5276_v22, %v5274_v19 }
 0x49c   :  { %v2224_v36 = vmul.f32 %v5278_v61, %v6306_v47  ;;  %v5280_v47 = vpop.eup %5279 }
 0x49e   :  { %v6397_v28 = vadd.f32 %v2225_v16, %v2224_v36  ;;  %v2125_v41 = vpop.f32.mrb[24].mxu0  ;;  %v2196_v0 = vpop.f32.mrb[24].mxu1 }
 0x49f   :  { %v5070_v4 = vadd.f32 %v2125_v41, %v6116_v3  ;;  %v2127_v15 = vpop.f32.mrb[25].mxu0  ;;  %v2198_v7 = vpop.f32.mrb[25].mxu1  ;;  %v5086_v61 = vadd.f32 %v2196_v0, %v6128_v21 }
 0x4a0   :  { %v5071_v2 = vadd.f32 %v2127_v15, %v6118_v60  ;;  %5281 = vtanh.f32 %v6397_v28  ;;  %v5087_v19 = vadd.f32 %v2198_v7, %v6125_v30 }
 0x4a1   :  { %v3952_v58 = vmul.f32 -1.442695, %v5070_v4 }
 0x4a2   :  { %v3953_v10 = vmul.f32 -1.442695, %v5071_v2  ;;  %v3954_v22 = vmul.f32 -1.442695, %v5087_v19 }
 0x4a3   :  { %5283 = vpow2.f32 %v3952_v58 }
 0x4a4   :  { %5285 = vpow2.f32 %v3953_v10 }
 0x4a5   :  { %5287 = vpow2.f32 %v3954_v22 }
 0x4a6   :  { %5289 = vtanh.f32 %v5086_v61 }
 0x4aa   :  { %v5282_v5 = vpop.eup %5281 }
 0x4ab   :  { %v2228_v16 = vmul.f32 %v5282_v5, %v5280_v47 }
 0x4ad   :  { %v5284_v26 = vpop.eup %5283  ;;  %2327 = vmatmul.mubr.f32.vlgmr.msra.gmra.mrb[8].mxu0 %v2228_v16  ;;  %2398 = vmatmul.mubr.f32.vlgmr.msra.gmra.mrb[8].mxu1 %v2228_v16  ;;  %v3697_v36 = vmul.f32 %v6133_v38, %v2228_v16  ;;  %v6967_v16 = vld [vmem:[#allocation21_spill] sm:$0xff] }
 0x4ae   :  { %v5286_v41 = vpop.eup %5285  ;;  %v2232_v15 = vadd.f32 1.0, %v5284_v26  ;;  %4585 = vmatpush1.bf16.msra.mxu0 %v5954_v48  ;;  %4617 = vmatpush1.bf16.msra.mxu1 %v5958_v50  ;;  %v6968_v26 = vld [vmem:[#allocation22_spill] sm:$0xff] }
 0x4af   :  { %v2238_v4 = vadd.f32 1.0, %v5286_v41  ;;  %3708 = vadd.xlane.f32.xlu0 %v3697_v36  ;;  %4587 = vmatprep.subr.bf16.mxu0 %v5960_v53  ;;  %v5288_v38 = vpop.eup %5287  ;;  %v6969_v36 = vld [vmem:[#allocation23_spill] sm:$0xff]  ;;  %v6970_v41 = vld [vmem:[#allocation24_spill] sm:$0xff] }
 0x4b0   :  { %5291 = vrcp.f32 %v2232_v15  ;;  %4619 = vmatprep.subr.bf16.mxu1 %v5964_v39  ;;  %2477 = vmatprep.mubr.f32.mxu0 %v6878_v40  ;;  %v5290_v0 = vpop.eup %5289  ;;  %v2245_v10 = vadd.f32 1.0, %v5288_v38  ;;  %v6971_v15 = vld [vmem:[#allocation25_spill] sm:$0xff]  ;;  %v6973_v38 = vld [vmem:[#allocation27_spill] sm:$0xff] }
 0x4b1   :  { %5293 = vrcp.f32 %v2238_v4  ;;  %2548 = vmatprep.mubr.f32.mxu1 %v6878_v40  ;;  %v6972_v4 = vld [vmem:[#allocation26_spill] sm:$0xff] }
 0x4b2   :  { %4589 = vmatpush1.bf16.msra.mxu0 %v5970_v8  ;;  %4621 = vmatpush1.bf16.msra.mxu1 %v5974_v11  ;;  %5295 = vrcp.f32 %v2245_v10  ;;  %v6978_v10 = vld [vmem:[#allocation32_spill] sm:$0xff] }
 0x4b3   :  { %4591 = vmatprep.subr.bf16.mxu0 %v5976_v12  ;;  %4623 = vmatprep.subr.bf16.mxu1 %v5979_v20 }
 0x4b6   :  { %4593 = vmatpush1.bf16.msra.mxu0 %v5984_v34  ;;  %4625 = vmatpush1.bf16.msra.mxu1 %v6883_v14 }
 0x4b7   :  { %4595 = vmatprep.subr.bf16.mxu0 %v6910_v9  ;;  %4627 = vmatprep.subr.bf16.mxu1 %v6911_v13 }
 0x4ba   :  { %v5292_v7 = vpop.eup %5291  ;;  %4597 = vmatpush1.bf16.msra.mxu0 %v6912_v25  ;;  %4629 = vmatpush1.bf16.msra.mxu1 %v6887_v63 }
 0x4bb   :  { %v5294_v2 = vpop.eup %5293  ;;  %v2249_v58 = vmul.f32 %v5292_v7, %v5290_v0  ;;  %4599 = vmatprep.subr.bf16.mxu0 %v6888_v23  ;;  %4631 = vmatprep.subr.bf16.mxu1 %v6889_v43  ;;  %v6974_v0 = vld [vmem:[#allocation28_spill] sm:$0xff]  ;;  %v6975_v7 = vld [vmem:[#allocation29_spill] sm:$0xff] }
 0x4bc   :  { %v2248_v19 = vmul.f32 %v5294_v2, %v6333_v51  ;;  %v5296_v51 = vpop.eup %5295  ;;  %v6976_v2 = vld [vmem:[#allocation30_spill] sm:$0xff] }
 0x4be   :  { %v6424_v47 = vadd.f32 %v2249_v58, %v2248_v19  ;;  %4601 = vmatpush1.bf16.msra.mxu0 %v6890_v62  ;;  %4633 = vmatpush1.bf16.msra.mxu1 %v6891_v17  ;;  %v6977_v58 = vld [vmem:[#allocation31_spill] sm:$0xff]  ;;  %v6979_v19 = vld [vmem:[#allocation33_spill] sm:$0xff] }
 0x4bf   :  { %4603 = vmatprep.subr.bf16.mxu0 %v6014_v59  ;;  %4635 = vmatprep.subr.bf16.mxu1 %v6892_v35 }
 0x4c0   :  { %5297 = vtanh.f32 %v6424_v47 }
 0x4c2   :  { %4605 = vmatpush1.bf16.msra.mxu0 %v6020_v37  ;;  %4637 = vmatpush1.bf16.msra.mxu1 %v6024_v1 }
 0x4c3   :  { %4607 = vmatprep.subr.bf16.mxu0 %v6026_v24  ;;  %4639 = vmatprep.subr.bf16.mxu1 %v6029_v45 }
 0x4c6   :  { %4609 = vmatpush1.bf16.msra.mxu0 %v6032_v54  ;;  %4641 = vmatpush1.bf16.msra.mxu1 %v6036_v42 }
 0x4c7   :  { %4611 = vmatprep.subr.bf16.mxu0 %v6038_v57  ;;  %4643 = vmatprep.subr.bf16.mxu1 %v6041_v18 }
 0x4ca   :  { %v5298_v5 = vpop.eup %5297  ;;  %4613 = vmatpush1.bf16.msra.mxu0 %v6044_v29  ;;  %4645 = vmatpush1.bf16.msra.mxu1 %v6048_v27 }
 0x4cb   :  { %v2252_v22 = vmul.f32 %v5298_v5, %v5296_v51  ;;  %4647 = vmatprep.subr.bf16.mxu0 %v5755_v31  ;;  %4679 = vmatprep.subr.bf16.mxu1 %v5757_v33  ;;  %v6980_v51 = vld [vmem:[#allocation34_spill] sm:$0xff]  ;;  %v6981_v5 = vld [vmem:[#allocation35_spill] sm:$0xff] }
 0x4cd   :  { %2478 = vmatmul.mubr.f32.vlgmr.msra.gmra.mrb[22].mxu0 %v2252_v22  ;;  %2549 = vmatmul.mubr.f32.vlgmr.msra.gmra.mrb[22].mxu1 %v2252_v22  ;;  %v3729_v61 = vmul.f32 %v6355_v56, %v2252_v22  ;;  %v6982_v22 = vld [vmem:[#allocation36_spill] sm:$0xff] }
 0x4ce   :  { %4649 = vmatpush1.bf16.msra.mxu0 %v5814_v46  ;;  %4681 = vmatpush1.bf16.msra.mxu1 %v5817_v49 }
 0x4cf   :  { %3741 = vadd.xlane.f32.xlu1 %v3729_v61  ;;  %4651 = vmatprep.subr.bf16.mxu0 %v5819_v52  ;;  %v6983_v61 = vld [vmem:[#allocation37_spill] sm:$0xff] }
 0x4d0   :  { %4683 = vmatprep.subr.bf16.mxu1 %v5823_v55  ;;  %2680 = vmatprep.mubr.f32.mxu0 %v6878_v40 }
 0x4d1   :  { %2751 = vmatprep.mubr.f32.mxu1 %v6878_v40 }
 0x4d2   :  { %4653 = vmatpush1.bf16.msra.mxu0 %v6967_v16  ;;  %4685 = vmatpush1.bf16.msra.mxu1 %v6968_v26 }
 0x4d3   :  { %4655 = vmatprep.subr.bf16.mxu0 %v6969_v36  ;;  %4687 = vmatprep.subr.bf16.mxu1 %v6970_v41 }
 0x4d6   :  { %4657 = vmatpush1.bf16.msra.mxu0 %v6971_v15  ;;  %4689 = vmatpush1.bf16.msra.mxu1 %v6972_v4  ;;  %v6995_v4 = vld [vmem:[#allocation60_spill] sm:$0xff] }
 0x4d7   :  { %4659 = vmatprep.subr.bf16.mxu0 %v6973_v38  ;;  %4691 = vmatprep.subr.bf16.mxu1 %v6974_v0  ;;  %v6984_v38 = vld [vmem:[#allocation38_spill] sm:$0xff]  ;;  %v6985_v0 = vld [vmem:[#allocation39_spill] sm:$0xff] }
 0x4da   :  { %4661 = vmatpush1.bf16.msra.mxu0 %v6975_v7  ;;  %4693 = vmatpush1.bf16.msra.mxu1 %v6976_v2  ;;  %v6986_v7 = vld [vmem:[#allocation40_spill] sm:$0xff]  ;;  %v6987_v2 = vld [vmem:[#allocation41_spill] sm:$0xff] }
 0x4db   :  { %4663 = vmatprep.subr.bf16.mxu0 %v6977_v58  ;;  %4695 = vmatprep.subr.bf16.mxu1 %v6978_v10  ;;  %v6988_v58 = vld [vmem:[#allocation42_spill] sm:$0xff]  ;;  %v6989_v10 = vld [vmem:[#allocation43_spill] sm:$0xff] }
 0x4de   :  { %4665 = vmatpush1.bf16.msra.mxu0 %v6979_v19  ;;  %4697 = vmatpush1.bf16.msra.mxu1 %v6980_v51  ;;  %v6990_v19 = vld [vmem:[#allocation44_spill] sm:$0xff]  ;;  %v6991_v51 = vld [vmem:[#allocation45_spill] sm:$0xff] }
 0x4df   :  { %4667 = vmatprep.subr.bf16.mxu0 %v6981_v5  ;;  %4699 = vmatprep.subr.bf16.mxu1 %v6982_v22  ;;  %v6992_v5 = vld [vmem:[#allocation46_spill] sm:$0xff]  ;;  %v6993_v22 = vld [vmem:[#allocation47_spill] sm:$0xff] }
 0x4e2   :  { %4669 = vmatpush1.bf16.msra.mxu0 %v6983_v61  ;;  %4701 = vmatpush1.bf16.msra.mxu1 %v6984_v38  ;;  %v6994_v61 = vld [vmem:[#allocation48_spill] sm:$0xff] }
 0x4e3   :  { %4671 = vmatprep.subr.bf16.mxu0 %v6985_v0  ;;  %4703 = vmatprep.subr.bf16.mxu1 %v6986_v7 }
 0x4e6   :  { %4673 = vmatpush1.bf16.msra.mxu0 %v6987_v2  ;;  %4705 = vmatpush1.bf16.msra.mxu1 %v6988_v58 }
 0x4e7   :  { %4675 = vmatprep.subr.bf16.mxu0 %v6989_v10  ;;  %4707 = vmatprep.subr.bf16.mxu1 %v6990_v19 }
 0x4ea   :  { %4677 = vmatpush1.bf16.msra.mxu0 %v6991_v51  ;;  %4709 = vmatpush1.bf16.msra.mxu1 %v6992_v5 }
 0x4eb   :  { %4711 = vmatprep.subr.bf16.mxu0 %v6993_v22  ;;  %4743 = vmatprep.subr.bf16.mxu1 %v6994_v61 }
 0x580   :  { %v2328_v38 = vpop.f32.mrb[8].mxu0  ;;  %v2399_v0 = vpop.f32.mrb[8].mxu1 }
 0x581   :  { %v5038_v7 = vadd.f32 %v2328_v38, %v6995_v4  ;;  %v2330_v15 = vpop.f32.mrb[9].mxu0  ;;  %v2401_v2 = vpop.f32.mrb[9].mxu1  ;;  %v5054_v5 = vadd.f32 %v2399_v0, %v6909_v44 }
 0x582   :  { %v5039_v58 = vadd.f32 %v2330_v15, %v6101_v6  ;;  %v5055_v51 = vadd.f32 %v2401_v2, %v6908_v32 }
 0x583   :  { %v3955_v41 = vmul.f32 -1.442695, %v5038_v7 }
 0x584   :  { %v3956_v10 = vmul.f32 -1.442695, %v5039_v58  ;;  %v3957_v19 = vmul.f32 -1.442695, %v5055_v51 }
 0x585   :  { %5299 = vpow2.f32 %v3955_v41 }
 0x586   :  { %5301 = vpow2.f32 %v3956_v10 }
 0x587   :  { %5303 = vpow2.f32 %v3957_v19 }
 0x588   :  { %5305 = vtanh.f32 %v5054_v5 }
 0x58f   :  { %v5300_v22 = vpop.eup %5299 }
 0x590   :  { %v5302_v36 = vpop.eup %5301  ;;  %v2562_v61 = vadd.f32 1.0, %v5300_v22 }
 0x591   :  { %v2568_v26 = vadd.f32 1.0, %v5302_v36  ;;  %v5304_v38 = vpop.eup %5303 }
 0x592   :  { %5307 = vrcp.f32 %v2562_v61  ;;  %v5306_v4 = vpop.eup %5305  ;;  %v2575_v41 = vadd.f32 1.0, %v5304_v38 }
 0x593   :  { %5309 = vrcp.f32 %v2568_v26 }
 0x594   :  { %5311 = vrcp.f32 %v2575_v41 }
 0x59c   :  { %v5308_v15 = vpop.eup %5307 }
 0x59d   :  { %v5310_v7 = vpop.eup %5309  ;;  %v2579_v58 = vmul.f32 %v5308_v15, %v5306_v4 }
 0x59e   :  { %v2578_v10 = vmul.f32 %v5310_v7, %v6397_v28  ;;  %v5312_v28 = vpop.eup %5311 }
 0x5a0   :  { %v6483_v2 = vadd.f32 %v2579_v58, %v2578_v10  ;;  %v2479_v51 = vpop.f32.mrb[22].mxu0  ;;  %v2550_v0 = vpop.f32.mrb[22].mxu1  ;;  %v6493_v10 = vld [vmem:[%s6747_s7] ss:$0 sm:$0xff] }
 0x5a1   :  { %v5068_v22 = vadd.f32 %v2479_v51, %v6116_v3  ;;  %v2481_v19 = vpop.f32.mrb[23].mxu0  ;;  %v2552_v5 = vpop.f32.mrb[23].mxu1  ;;  %v5084_v7 = vadd.f32 %v2550_v0, %v6128_v21 }
 0x5a2   :  { %v5069_v36 = vadd.f32 %v2481_v19, %v6118_v60  ;;  %5313 = vtanh.f32 %v6483_v2  ;;  %v5085_v4 = vadd.f32 %v2552_v5, %v6125_v30 }
 0x5a3   :  { %v3958_v26 = vmul.f32 -1.442695, %v5068_v22 }
 0x5a4   :  { %v3959_v61 = vmul.f32 -1.442695, %v5069_v36  ;;  %v3960_v15 = vmul.f32 -1.442695, %v5085_v4 }
 0x5a5   :  { %5315 = vpow2.f32 %v3958_v26 }
 0x5a6   :  { %5317 = vpow2.f32 %v3959_v61 }
 0x5a7   :  { %5319 = vpow2.f32 %v3960_v15 }
 0x5a8   :  { %5321 = vtanh.f32 %v5084_v7 }
 0x5ac   :  { %v5314_v38 = vpop.eup %5313 }
 0x5ad   :  { %v2582_v58 = vmul.f32 %v5314_v38, %v5312_v28 }
 0x5af   :  { %v5316_v41 = vpop.eup %5315  ;;  %2681 = vmatmul.mubr.f32.vlgmr.msra.gmra.mrb[10].mxu0 %v2582_v58  ;;  %2752 = vmatmul.mubr.f32.vlgmr.msra.gmra.mrb[10].mxu1 %v2582_v58  ;;  %v3698_v51 = vmul.f32 %v6493_v10, %v2582_v58 }
 0x5b0   :  { %v5318_v22 = vpop.eup %5317  ;;  %v2586_v19 = vadd.f32 1.0, %v5316_v41  ;;  %4713 = vmatpush1.bf16.msra.mxu0 %v5954_v48  ;;  %4745 = vmatpush1.bf16.msra.mxu1 %v5958_v50 }
 0x5b1   :  { %v2592_v0 = vadd.f32 1.0, %v5318_v22  ;;  %3710 = vadd.xlane.f32.xlu0 %v3698_v51  ;;  %4715 = vmatprep.subr.bf16.mxu0 %v5960_v53  ;;  %v5320_v5 = vpop.eup %5319  ;;  %v6996_v51 = vld [vmem:[#allocation22_spill] sm:$0xff]  ;;  %v6997_v22 = vld [vmem:[#allocation23_spill] sm:$0xff] }
 0x5b2   :  { %5323 = vrcp.f32 %v2586_v19  ;;  %4747 = vmatprep.subr.bf16.mxu1 %v5964_v39  ;;  %2831 = vmatprep.mubr.f32.mxu0 %v6878_v40  ;;  %v5322_v36 = vpop.eup %5321  ;;  %v2599_v28 = vadd.f32 1.0, %v5320_v5  ;;  %v6998_v19 = vld [vmem:[#allocation24_spill] sm:$0xff]  ;;  %v7000_v5 = vld [vmem:[#allocation26_spill] sm:$0xff] }
 0x5b3   :  { %5325 = vrcp.f32 %v2592_v0  ;;  %2902 = vmatprep.mubr.f32.mxu1 %v6878_v40  ;;  %v6999_v0 = vld [vmem:[#allocation25_spill] sm:$0xff] }
 0x5b4   :  { %4717 = vmatpush1.bf16.msra.mxu0 %v5970_v8  ;;  %4749 = vmatpush1.bf16.msra.mxu1 %v5974_v11  ;;  %5327 = vrcp.f32 %v2599_v28  ;;  %v7005_v28 = vld [vmem:[#allocation31_spill] sm:$0xff] }
 0x5b5   :  { %4719 = vmatprep.subr.bf16.mxu0 %v5976_v12  ;;  %4751 = vmatprep.subr.bf16.mxu1 %v5979_v20 }
 0x5b8   :  { %4721 = vmatpush1.bf16.msra.mxu0 %v5984_v34  ;;  %4753 = vmatpush1.bf16.msra.mxu1 %v6883_v14 }
 0x5b9   :  { %4723 = vmatprep.subr.bf16.mxu0 %v6910_v9  ;;  %4755 = vmatprep.subr.bf16.mxu1 %v6911_v13 }
 0x5bc   :  { %v5324_v26 = vpop.eup %5323  ;;  %4725 = vmatpush1.bf16.msra.mxu0 %v6912_v25  ;;  %4757 = vmatpush1.bf16.msra.mxu1 %v6887_v63 }
 0x5bd   :  { %v5326_v61 = vpop.eup %5325  ;;  %v2603_v4 = vmul.f32 %v5324_v26, %v5322_v36  ;;  %4727 = vmatprep.subr.bf16.mxu0 %v6888_v23  ;;  %4759 = vmatprep.subr.bf16.mxu1 %v6889_v43  ;;  %v7001_v36 = vld [vmem:[#allocation27_spill] sm:$0xff]  ;;  %v7002_v26 = vld [vmem:[#allocation28_spill] sm:$0xff] }
 0x5be   :  { %v2602_v38 = vmul.f32 %v5326_v61, %v6424_v47  ;;  %v5328_v47 = vpop.eup %5327  ;;  %v7003_v61 = vld [vmem:[#allocation29_spill] sm:$0xff] }
 0x5c0   :  { %v6515_v15 = vadd.f32 %v2603_v4, %v2602_v38  ;;  %4729 = vmatpush1.bf16.msra.mxu0 %v6890_v62  ;;  %4761 = vmatpush1.bf16.msra.mxu1 %v6891_v17  ;;  %v7004_v4 = vld [vmem:[#allocation30_spill] sm:$0xff]  ;;  %v7006_v38 = vld [vmem:[#allocation32_spill] sm:$0xff] }
 0x5c1   :  { %4731 = vmatprep.subr.bf16.mxu0 %v6014_v59  ;;  %4763 = vmatprep.subr.bf16.mxu1 %v6892_v35 }
 0x5c2   :  { %5329 = vtanh.f32 %v6515_v15 }
 0x5c4   :  { %4733 = vmatpush1.bf16.msra.mxu0 %v6020_v37  ;;  %4765 = vmatpush1.bf16.msra.mxu1 %v6024_v1 }
 0x5c5   :  { %4735 = vmatprep.subr.bf16.mxu0 %v6026_v24  ;;  %4767 = vmatprep.subr.bf16.mxu1 %v6029_v45 }
 0x5c8   :  { %4737 = vmatpush1.bf16.msra.mxu0 %v6032_v54  ;;  %4769 = vmatpush1.bf16.msra.mxu1 %v6036_v42 }
 0x5c9   :  { %4739 = vmatprep.subr.bf16.mxu0 %v6038_v57  ;;  %4771 = vmatprep.subr.bf16.mxu1 %v6041_v18 }
 0x5cc   :  { %v5330_v7 = vpop.eup %5329  ;;  %4741 = vmatpush1.bf16.msra.mxu0 %v6044_v29  ;;  %4773 = vmatpush1.bf16.msra.mxu1 %v6048_v27 }
 0x5cd   :  { %v2606_v58 = vmul.f32 %v5330_v7, %v5328_v47  ;;  %4775 = vmatprep.subr.bf16.mxu0 %v5755_v31  ;;  %4807 = vmatprep.subr.bf16.mxu1 %v5757_v33  ;;  %v7007_v47 = vld [vmem:[#allocation33_spill] sm:$0xff]  ;;  %v7008_v7 = vld [vmem:[#allocation34_spill] sm:$0xff] }
 0x5cf   :  { %2832 = vmatmul.mubr.f32.vlgmr.msra.gmra.mrb[20].mxu0 %v2606_v58  ;;  %2903 = vmatmul.mubr.f32.vlgmr.msra.gmra.mrb[20].mxu1 %v2606_v58  ;;  %v3728_v41 = vmul.f32 %v6355_v56, %v2606_v58  ;;  %v7009_v58 = vld [vmem:[#allocation35_spill] sm:$0xff] }
 0x5d0   :  { %4777 = vmatpush1.bf16.msra.mxu0 %v5814_v46  ;;  %4809 = vmatpush1.bf16.msra.mxu1 %v5817_v49 }
 0x5d1   :  { %3739 = vadd.xlane.f32.xlu1 %v3728_v41  ;;  %4779 = vmatprep.subr.bf16.mxu0 %v5819_v52  ;;  %v7010_v41 = vld [vmem:[#allocation36_spill] sm:$0xff] }
 0x5d2   :  { %4811 = vmatprep.subr.bf16.mxu1 %v5823_v55  ;;  %3034 = vmatprep.mubr.f32.mxu0 %v6878_v40 }
 0x5d3   :  { %3105 = vmatprep.mubr.f32.mxu1 %v6878_v40 }
 0x5d4   :  { %4781 = vmatpush1.bf16.msra.mxu0 %v6967_v16  ;;  %4813 = vmatpush1.bf16.msra.mxu1 %v6996_v51 }
 0x5d5   :  { %4783 = vmatprep.subr.bf16.mxu0 %v6997_v22  ;;  %4815 = vmatprep.subr.bf16.mxu1 %v6998_v19 }
 0x5d8   :  { %4785 = vmatpush1.bf16.msra.mxu0 %v6999_v0  ;;  %4817 = vmatpush1.bf16.msra.mxu1 %v7000_v5  ;;  %v7011_v5 = vld [vmem:[#allocation37_spill] sm:$0xff]  ;;  %v7023_v0 = vld [vmem:[#allocation60_spill] sm:$0xff] }
 0x5d9   :  { %4787 = vmatprep.subr.bf16.mxu0 %v7001_v36  ;;  %4819 = vmatprep.subr.bf16.mxu1 %v7002_v26  ;;  %v7012_v36 = vld [vmem:[#allocation38_spill] sm:$0xff]  ;;  %v7013_v26 = vld [vmem:[#allocation39_spill] sm:$0xff] }
 0x5dc   :  { %4789 = vmatpush1.bf16.msra.mxu0 %v7003_v61  ;;  %4821 = vmatpush1.bf16.msra.mxu1 %v7004_v4  ;;  %v7014_v61 = vld [vmem:[#allocation40_spill] sm:$0xff]  ;;  %v7015_v4 = vld [vmem:[#allocation41_spill] sm:$0xff] }
 0x5dd   :  { %4791 = vmatprep.subr.bf16.mxu0 %v7005_v28  ;;  %4823 = vmatprep.subr.bf16.mxu1 %v7006_v38  ;;  %v7016_v28 = vld [vmem:[#allocation42_spill] sm:$0xff]  ;;  %v7017_v38 = vld [vmem:[#allocation43_spill] sm:$0xff] }
 0x5e0   :  { %4793 = vmatpush1.bf16.msra.mxu0 %v7007_v47  ;;  %4825 = vmatpush1.bf16.msra.mxu1 %v7008_v7  ;;  %v7018_v47 = vld [vmem:[#allocation44_spill] sm:$0xff]  ;;  %v7019_v7 = vld [vmem:[#allocation45_spill] sm:$0xff] }
 0x5e1   :  { %4795 = vmatprep.subr.bf16.mxu0 %v7009_v58  ;;  %4827 = vmatprep.subr.bf16.mxu1 %v7010_v41  ;;  %v7020_v58 = vld [vmem:[#allocation46_spill] sm:$0xff]  ;;  %v7021_v41 = vld [vmem:[#allocation47_spill] sm:$0xff] }
 0x5e4   :  { %4797 = vmatpush1.bf16.msra.mxu0 %v7011_v5  ;;  %4829 = vmatpush1.bf16.msra.mxu1 %v7012_v36  ;;  %v7022_v5 = vld [vmem:[#allocation48_spill] sm:$0xff] }
 0x5e5   :  { %4799 = vmatprep.subr.bf16.mxu0 %v7013_v26  ;;  %4831 = vmatprep.subr.bf16.mxu1 %v7014_v61 }
 0x5e8   :  { %4801 = vmatpush1.bf16.msra.mxu0 %v7015_v4  ;;  %4833 = vmatpush1.bf16.msra.mxu1 %v7016_v28 }
 0x5e9   :  { %4803 = vmatprep.subr.bf16.mxu0 %v7017_v38  ;;  %4835 = vmatprep.subr.bf16.mxu1 %v7018_v47 }
 0x5ec   :  { %4805 = vmatpush1.bf16.msra.mxu0 %v7019_v7  ;;  %4837 = vmatpush1.bf16.msra.mxu1 %v7020_v58 }
 0x5ed   :  { %4839 = vmatprep.subr.bf16.mxu0 %v7021_v41  ;;  %4871 = vmatprep.subr.bf16.mxu1 %v7022_v5 }
 0x682   :  { %v2682_v36 = vpop.f32.mrb[10].mxu0  ;;  %v2753_v26 = vpop.f32.mrb[10].mxu1 }
 0x683   :  { %v5040_v61 = vadd.f32 %v2682_v36, %v7023_v0  ;;  %v2684_v19 = vpop.f32.mrb[11].mxu0  ;;  %v2755_v4 = vpop.f32.mrb[11].mxu1  ;;  %v5056_v58 = vadd.f32 %v2753_v26, %v6909_v44 }
 0x684   :  { %v5041_v28 = vadd.f32 %v2684_v19, %v6101_v6  ;;  %v5057_v7 = vadd.f32 %v2755_v4, %v6908_v32 }
 0x685   :  { %v3961_v22 = vmul.f32 -1.442695, %v5040_v61 }
 0x686   :  { %v3962_v38 = vmul.f32 -1.442695, %v5041_v28  ;;  %v3963_v47 = vmul.f32 -1.442695, %v5057_v7 }
 0x687   :  { %5331 = vpow2.f32 %v3961_v22 }
 0x688   :  { %5333 = vpow2.f32 %v3962_v38 }
 0x689   :  { %5335 = vpow2.f32 %v3963_v47 }
 0x68a   :  { %5337 = vtanh.f32 %v5056_v58 }
 0x691   :  { %v5332_v41 = vpop.eup %5331 }
 0x692   :  { %v5334_v51 = vpop.eup %5333  ;;  %v2916_v5 = vadd.f32 1.0, %v5332_v41 }
 0x693   :  { %v2922_v16 = vadd.f32 1.0, %v5334_v51  ;;  %v5336_v36 = vpop.eup %5335 }
 0x694   :  { %5339 = vrcp.f32 %v2916_v5  ;;  %v5338_v0 = vpop.eup %5337  ;;  %v2929_v22 = vadd.f32 1.0, %v5336_v36 }
 0x695   :  { %5341 = vrcp.f32 %v2922_v16 }
 0x696   :  { %5343 = vrcp.f32 %v2929_v22 }
 0x69e   :  { %v5340_v19 = vpop.eup %5339 }
 0x69f   :  { %v5342_v61 = vpop.eup %5341  ;;  %v2933_v28 = vmul.f32 %v5340_v19, %v5338_v0 }
 0x6a0   :  { %v2932_v38 = vmul.f32 %v5342_v61, %v6483_v2  ;;  %v5344_v2 = vpop.eup %5343 }
 0x6a2   :  { %v6574_v4 = vadd.f32 %v2933_v28, %v2932_v38  ;;  %v2833_v7 = vpop.f32.mrb[20].mxu0  ;;  %v2904_v26 = vpop.f32.mrb[20].mxu1 }
 0x6a3   :  { %v5066_v41 = vadd.f32 %v2833_v7, %v6116_v3  ;;  %v2835_v47 = vpop.f32.mrb[21].mxu0  ;;  %v2906_v58 = vpop.f32.mrb[21].mxu1  ;;  %v5082_v61 = vadd.f32 %v2904_v26, %v6128_v21 }
 0x6a4   :  { %v5067_v51 = vadd.f32 %v2835_v47, %v6118_v60  ;;  %5345 = vtanh.f32 %v6574_v4  ;;  %v5083_v0 = vadd.f32 %v2906_v58, %v6125_v30 }
 0x6a5   :  { %v3964_v16 = vmul.f32 -1.442695, %v5066_v41 }
 0x6a6   :  { %v3965_v5 = vmul.f32 -1.442695, %v5067_v51  ;;  %v3966_v19 = vmul.f32 -1.442695, %v5083_v0 }
 0x6a7   :  { %5347 = vpow2.f32 %v3964_v16 }
 0x6a8   :  { %5349 = vpow2.f32 %v3965_v5 }
 0x6a9   :  { %5351 = vpow2.f32 %v3966_v19 }
 0x6aa   :  { %5353 = vtanh.f32 %v5082_v61 }
 0x6ae   :  { %v5346_v36 = vpop.eup %5345 }
 0x6af   :  { %v2936_v28 = vmul.f32 %v5346_v36, %v5344_v2 }
 0x6b1   :  { %v5348_v22 = vpop.eup %5347  ;;  %3035 = vmatmul.mubr.f32.vlgmr.msra.gmra.mrb[12].mxu0 %v2936_v28  ;;  %3106 = vmatmul.mubr.f32.vlgmr.msra.gmra.mrb[12].mxu1 %v2936_v28  ;;  %v3699_v38 = vmul.f32 %v6493_v10, %v2936_v28 }
 0x6b2   :  { %v5350_v7 = vpop.eup %5349  ;;  %v2940_v47 = vadd.f32 1.0, %v5348_v22  ;;  %4841 = vmatpush1.bf16.msra.mxu0 %v5954_v48  ;;  %4873 = vmatpush1.bf16.msra.mxu1 %v5958_v50  ;;  %v7026_v22 = vld [vmem:[#allocation23_spill] sm:$0xff] }
 0x6b3   :  { %v2946_v41 = vadd.f32 1.0, %v5350_v7  ;;  %3712 = vadd.xlane.f32.xlu0 %v3699_v38  ;;  %4843 = vmatprep.subr.bf16.mxu0 %v5960_v53  ;;  %v5352_v26 = vpop.eup %5351  ;;  %v7030_v38 = vld [vmem:[#allocation27_spill] sm:$0xff]  ;;  %v7033_v7 = vld [vmem:[#allocation30_spill] sm:$0xff] }
 0x6b4   :  { %5355 = vrcp.f32 %v2940_v47  ;;  %4875 = vmatprep.subr.bf16.mxu1 %v5964_v39  ;;  %3185 = vmatprep.mubr.f32.mxu0 %v6878_v40  ;;  %v5354_v58 = vpop.eup %5353  ;;  %v2953_v0 = vadd.f32 1.0, %v5352_v26  ;;  %v7034_v47 = vld [vmem:[#allocation31_spill] sm:$0xff]  ;;  %v7036_v26 = vld [vmem:[#allocation33_spill] sm:$0xff] }
 0x6b5   :  { %5357 = vrcp.f32 %v2946_v41  ;;  %3256 = vmatprep.mubr.f32.mxu1 %v6878_v40  ;;  %v7035_v41 = vld [vmem:[#allocation32_spill] sm:$0xff] }
 0x6b6   :  { %4845 = vmatpush1.bf16.msra.mxu0 %v5970_v8  ;;  %4877 = vmatpush1.bf16.msra.mxu1 %v5974_v11  ;;  %5359 = vrcp.f32 %v2953_v0  ;;  %v7041_v0 = vld [vmem:[#allocation38_spill] sm:$0xff] }
 0x6b7   :  { %4847 = vmatprep.subr.bf16.mxu0 %v5976_v12  ;;  %4879 = vmatprep.subr.bf16.mxu1 %v5979_v20 }
 0x6ba   :  { %4849 = vmatpush1.bf16.msra.mxu0 %v5984_v34  ;;  %4881 = vmatpush1.bf16.msra.mxu1 %v6883_v14 }
 0x6bb   :  { %4851 = vmatprep.subr.bf16.mxu0 %v6910_v9  ;;  %4883 = vmatprep.subr.bf16.mxu1 %v6911_v13 }
 0x6be   :  { %v5356_v51 = vpop.eup %5355  ;;  %4853 = vmatpush1.bf16.msra.mxu0 %v6912_v25  ;;  %4885 = vmatpush1.bf16.msra.mxu1 %v6887_v63 }
 0x6bf   :  { %v5358_v16 = vpop.eup %5357  ;;  %v2957_v5 = vmul.f32 %v5356_v51, %v5354_v58  ;;  %4855 = vmatprep.subr.bf16.mxu0 %v6888_v23  ;;  %4887 = vmatprep.subr.bf16.mxu1 %v6889_v43  ;;  %v7037_v58 = vld [vmem:[#allocation34_spill] sm:$0xff]  ;;  %v7038_v51 = vld [vmem:[#allocation35_spill] sm:$0xff] }
 0x6c0   :  { %v2956_v2 = vmul.f32 %v5358_v16, %v6515_v15  ;;  %v5360_v15 = vpop.eup %5359  ;;  %v7039_v16 = vld [vmem:[#allocation36_spill] sm:$0xff] }
 0x6c2   :  { %v6601_v36 = vadd.f32 %v2957_v5, %v2956_v2  ;;  %4857 = vmatpush1.bf16.msra.mxu0 %v6890_v62  ;;  %4889 = vmatpush1.bf16.msra.mxu1 %v6891_v17  ;;  %v7040_v5 = vld [vmem:[#allocation37_spill] sm:$0xff]  ;;  %v7042_v2 = vld [vmem:[#allocation39_spill] sm:$0xff] }
 0x6c3   :  { %4859 = vmatprep.subr.bf16.mxu0 %v6014_v59  ;;  %4891 = vmatprep.subr.bf16.mxu1 %v6892_v35 }
 0x6c4   :  { %5361 = vtanh.f32 %v6601_v36 }
 0x6c6   :  { %4861 = vmatpush1.bf16.msra.mxu0 %v6020_v37  ;;  %4893 = vmatpush1.bf16.msra.mxu1 %v6024_v1 }
 0x6c7   :  { %4863 = vmatprep.subr.bf16.mxu0 %v6026_v24  ;;  %4895 = vmatprep.subr.bf16.mxu1 %v6029_v45 }
 0x6ca   :  { %4865 = vmatpush1.bf16.msra.mxu0 %v6032_v54  ;;  %4897 = vmatpush1.bf16.msra.mxu1 %v6036_v42 }
 0x6cb   :  { %4867 = vmatprep.subr.bf16.mxu0 %v6038_v57  ;;  %4899 = vmatprep.subr.bf16.mxu1 %v6041_v18 }
 0x6ce   :  { %v5362_v19 = vpop.eup %5361  ;;  %4869 = vmatpush1.bf16.msra.mxu0 %v6044_v29  ;;  %4901 = vmatpush1.bf16.msra.mxu1 %v6048_v27 }
 0x6cf   :  { %v2960_v61 = vmul.f32 %v5362_v19, %v5360_v15  ;;  %4903 = vmatprep.subr.bf16.mxu0 %v5755_v31  ;;  %4935 = vmatprep.subr.bf16.mxu1 %v5757_v33  ;;  %v7024_v31 = vld [vmem:[#allocation21_spill] sm:$0xff]  ;;  %v7025_v33 = vld [vmem:[#allocation22_spill] sm:$0xff]  ;;  %v7043_v15 = vld [vmem:[#allocation40_spill] sm:$0xff] }
 0x6d0   :  { %v7044_v19 = vld [vmem:[#allocation41_spill] sm:$0xff] }
 0x6d1   :  { %3186 = vmatmul.mubr.f32.vlgmr.msra.gmra.mrb[18].mxu0 %v2960_v61  ;;  %3257 = vmatmul.mubr.f32.vlgmr.msra.gmra.mrb[18].mxu1 %v2960_v61  ;;  %v3727_v28 = vmul.f32 %v6355_v56, %v2960_v61  ;;  %v7027_v56 = vld [vmem:[#allocation24_spill] sm:$0xff]  ;;  %v7045_v61 = vld [vmem:[#allocation42_spill] sm:$0xff] }
 0x6d2   :  { %4905 = vmatpush1.bf16.msra.mxu0 %v5814_v46  ;;  %4937 = vmatpush1.bf16.msra.mxu1 %v5817_v49  ;;  %v7028_v46 = vld [vmem:[#allocation25_spill] sm:$0xff]  ;;  %v7029_v49 = vld [vmem:[#allocation26_spill] sm:$0xff] }
 0x6d3   :  { %3737 = vadd.xlane.f32.xlu1 %v3727_v28  ;;  %4907 = vmatprep.subr.bf16.mxu0 %v5819_v52  ;;  %v7031_v52 = vld [vmem:[#allocation28_spill] sm:$0xff]  ;;  %v7046_v28 = vld [vmem:[#allocation43_spill] sm:$0xff] }
 0x6d4   :  { %4939 = vmatprep.subr.bf16.mxu1 %v5823_v55  ;;  %3388 = vmatprep.mubr.f32.mxu0 %v6878_v40  ;;  %v7032_v55 = vld [vmem:[#allocation29_spill] sm:$0xff] }
 0x6d5   :  { %3459 = vmatprep.mubr.f32.mxu1 %v6878_v40 }
 0x6d6   :  { %4909 = vmatpush1.bf16.msra.mxu0 %v7024_v31  ;;  %4941 = vmatpush1.bf16.msra.mxu1 %v7025_v33  ;;  %v7047_v31 = vld [vmem:[#allocation44_spill] sm:$0xff]  ;;  %v7048_v33 = vld [vmem:[#allocation45_spill] sm:$0xff] }
 0x6d7   :  { %4911 = vmatprep.subr.bf16.mxu0 %v7026_v22  ;;  %4943 = vmatprep.subr.bf16.mxu1 %v7027_v56  ;;  %v7049_v22 = vld [vmem:[#allocation46_spill] sm:$0xff]  ;;  %v7050_v56 = vld [vmem:[#allocation47_spill] sm:$0xff] }
 0x6da   :  { %4913 = vmatpush1.bf16.msra.mxu0 %v7028_v46  ;;  %4945 = vmatpush1.bf16.msra.mxu1 %v7029_v49  ;;  %v7051_v46 = vld [vmem:[#allocation48_spill] sm:$0xff] }
 0x6db   :  { %4915 = vmatprep.subr.bf16.mxu0 %v7030_v38  ;;  %4947 = vmatprep.subr.bf16.mxu1 %v7031_v52  ;;  %v7052_v52 = vld [vmem:[#allocation60_spill] sm:$0xff] }
 0x6de   :  { %4917 = vmatpush1.bf16.msra.mxu0 %v7032_v55  ;;  %4949 = vmatpush1.bf16.msra.mxu1 %v7033_v7 }
 0x6df   :  { %4919 = vmatprep.subr.bf16.mxu0 %v7034_v47  ;;  %4951 = vmatprep.subr.bf16.mxu1 %v7035_v41 }
 0x6e2   :  { %4921 = vmatpush1.bf16.msra.mxu0 %v7036_v26  ;;  %4953 = vmatpush1.bf16.msra.mxu1 %v7037_v58 }
 0x6e3   :  { %4923 = vmatprep.subr.bf16.mxu0 %v7038_v51  ;;  %4955 = vmatprep.subr.bf16.mxu1 %v7039_v16 }
 0x6e6   :  { %4925 = vmatpush1.bf16.msra.mxu0 %v7040_v5  ;;  %4957 = vmatpush1.bf16.msra.mxu1 %v7041_v0 }
 0x6e7   :  { %4927 = vmatprep.subr.bf16.mxu0 %v7042_v2  ;;  %4959 = vmatprep.subr.bf16.mxu1 %v7043_v15 }
 0x6ea   :  { %4929 = vmatpush1.bf16.msra.mxu0 %v7044_v19  ;;  %4961 = vmatpush1.bf16.msra.mxu1 %v7045_v61 }
 0x6eb   :  { %4931 = vmatprep.subr.bf16.mxu0 %v7046_v28  ;;  %4963 = vmatprep.subr.bf16.mxu1 %v7047_v31 }
 0x6ee   :  { %4933 = vmatpush1.bf16.msra.mxu0 %v7048_v33  ;;  %4965 = vmatpush1.bf16.msra.mxu1 %v7049_v22 }
 0x6ef   :  { %4967 = vmatprep.subr.bf16.mxu0 %v7050_v56  ;;  %4999 = vmatprep.subr.bf16.mxu1 %v7051_v46 }
 0x784   :  { %v3036_v49 = vpop.f32.mrb[12].mxu0  ;;  %v3107_v38 = vpop.f32.mrb[12].mxu1 }
 0x785   :  { %v5042_v55 = vadd.f32 %v3036_v49, %v7052_v52  ;;  %v3038_v7 = vpop.f32.mrb[13].mxu0  ;;  %v3109_v47 = vpop.f32.mrb[13].mxu1  ;;  %v5058_v5 = vadd.f32 %v3107_v38, %v6909_v44 }
 0x786   :  { %v5043_v41 = vadd.f32 %v3038_v7, %v6101_v6  ;;  %v5059_v51 = vadd.f32 %v3109_v47, %v6908_v32 }
 0x787   :  { %v3967_v26 = vmul.f32 -1.442695, %v5042_v55 }
 0x788   :  { %v3968_v58 = vmul.f32 -1.442695, %v5043_v41  ;;  %v3969_v16 = vmul.f32 -1.442695, %v5059_v51 }
 0x789   :  { %5363 = vpow2.f32 %v3967_v26 }
 0x78a   :  { %5365 = vpow2.f32 %v3968_v58 }
 0x78b   :  { %5367 = vpow2.f32 %v3969_v16 }
 0x78c   :  { %5369 = vtanh.f32 %v5058_v5 }
 0x793   :  { %v5364_v0 = vpop.eup %5363 }
 0x794   :  { %v5366_v2 = vpop.eup %5365  ;;  %v3270_v15 = vadd.f32 1.0, %v5364_v0 }
 0x795   :  { %v3276_v19 = vadd.f32 1.0, %v5366_v2  ;;  %v5368_v61 = vpop.eup %5367 }
 0x796   :  { %5371 = vrcp.f32 %v3270_v15  ;;  %v5370_v28 = vpop.eup %5369  ;;  %v3283_v56 = vadd.f32 1.0, %v5368_v61 }
 0x797   :  { %5373 = vrcp.f32 %v3276_v19 }
 0x798   :  { %5375 = vrcp.f32 %v3283_v56 }
 0x7a0   :  { %v5372_v31 = vpop.eup %5371 }
 0x7a1   :  { %v5374_v33 = vpop.eup %5373  ;;  %v3287_v22 = vmul.f32 %v5372_v31, %v5370_v28 }
 0x7a2   :  { %v3286_v46 = vmul.f32 %v5374_v33, %v6574_v4  ;;  %v5376_v4 = vpop.eup %5375 }
 0x7a4   :  { %v6660_v49 = vadd.f32 %v3287_v22, %v3286_v46  ;;  %v3187_v55 = vpop.f32.mrb[18].mxu0  ;;  %v3258_v38 = vpop.f32.mrb[18].mxu1 }
 0x7a5   :  { %v5064_v7 = vadd.f32 %v3187_v55, %v6116_v3  ;;  %v3189_v47 = vpop.f32.mrb[19].mxu0  ;;  %v3260_v41 = vpop.f32.mrb[19].mxu1  ;;  %v5080_v2 = vadd.f32 %v3258_v38, %v6128_v21 }
 0x7a6   :  { %v5065_v26 = vadd.f32 %v3189_v47, %v6118_v60  ;;  %5377 = vtanh.f32 %v6660_v49  ;;  %v5081_v16 = vadd.f32 %v3260_v41, %v6125_v30 }
 0x7a7   :  { %v3970_v58 = vmul.f32 -1.442695, %v5064_v7 }
 0x7a8   :  { %v3971_v51 = vmul.f32 -1.442695, %v5065_v26  ;;  %v3972_v0 = vmul.f32 -1.442695, %v5081_v16 }
 0x7a9   :  { %5379 = vpow2.f32 %v3970_v58 }
 0x7aa   :  { %5381 = vpow2.f32 %v3971_v51 }
 0x7ab   :  { %5383 = vpow2.f32 %v3972_v0 }
 0x7ac   :  { %5385 = vtanh.f32 %v5080_v2 }
 0x7b0   :  { %v5378_v5 = vpop.eup %5377 }
 0x7b1   :  { %v3290_v15 = vmul.f32 %v5378_v5, %v5376_v4 }
 0x7b3   :  { %v5380_v19 = vpop.eup %5379  ;;  %3389 = vmatmul.mubr.f32.vlgmr.msra.gmra.mrb[14].mxu0 %v3290_v15  ;;  %3460 = vmatmul.mubr.f32.vlgmr.msra.gmra.mrb[14].mxu1 %v3290_v15  ;;  %v3700_v61 = vmul.f32 %v6493_v10, %v3290_v15 }
 0x7b4   :  { %v5382_v28 = vpop.eup %5381  ;;  %v3294_v31 = vadd.f32 1.0, %v5380_v19  ;;  %4969 = vmatpush1.bf16.msra.mxu0 %v5954_v48  ;;  %5001 = vmatpush1.bf16.msra.mxu1 %v5958_v50 }
 0x7b5   :  { %v3300_v33 = vadd.f32 1.0, %v5382_v28  ;;  %3714 = vadd.xlane.f32.xlu0 %v3700_v61  ;;  %4971 = vmatprep.subr.bf16.mxu0 %v5960_v53  ;;  %v5384_v48 = vpop.eup %5383 }
 0x7b6   :  { %5387 = vrcp.f32 %v3294_v31  ;;  %5003 = vmatprep.subr.bf16.mxu1 %v5964_v39  ;;  %3538 = vmatprep.mubr.f32.mxu0 %v6878_v40  ;;  %v5386_v50 = vpop.eup %5385 }
 0x7b7   :  { %5389 = vrcp.f32 %v3300_v33  ;;  %3609 = vmatprep.mubr.f32.mxu1 %v6878_v40 }
 0x7b8   :  { %4973 = vmatpush1.bf16.msra.mxu0 %v5970_v8  ;;  %5005 = vmatpush1.bf16.msra.mxu1 %v5974_v11  ;;  %v3307_v11 = vadd.f32 1.0, %v5384_v48 }
 0x7b9   :  { %4975 = vmatprep.subr.bf16.mxu0 %v5976_v12  ;;  %5007 = vmatprep.subr.bf16.mxu1 %v5979_v20 }
 0x7ba   :  { %5391 = vrcp.f32 %v3307_v11  ;;  %v7053_v11 = vld [vmem:[#allocation53_spill] sm:$0xff] }
 0x7bc   :  { %4977 = vmatpush1.bf16.msra.mxu0 %v5984_v34  ;;  %5009 = vmatpush1.bf16.msra.mxu1 %v6883_v14 }
 0x7bd   :  { %4979 = vmatprep.subr.bf16.mxu0 %v6910_v9  ;;  %5011 = vmatprep.subr.bf16.mxu1 %v6911_v13 }
 0x7c0   :  { %v5388_v53 = vpop.eup %5387  ;;  %4981 = vmatpush1.bf16.msra.mxu0 %v6912_v25  ;;  %5013 = vmatpush1.bf16.msra.mxu1 %v6887_v63 }
 0x7c1   :  { %v5390_v39 = vpop.eup %5389  ;;  %v3311_v8 = vmul.f32 %v5388_v53, %v5386_v50  ;;  %4983 = vmatprep.subr.bf16.mxu0 %v6888_v23  ;;  %5015 = vmatprep.subr.bf16.mxu1 %v6889_v43 }
 0x7c2   :  { %v3310_v12 = vmul.f32 %v5390_v39, %v6601_v36 }
 0x7c4   :  { %v6687_v20 = vadd.f32 %v3311_v8, %v3310_v12  ;;  %4985 = vmatpush1.bf16.msra.mxu0 %v6890_v62  ;;  %5017 = vmatpush1.bf16.msra.mxu1 %v6891_v17  ;;  %v5392_v34 = vpop.eup %5391 }
 0x7c5   :  { %4987 = vmatprep.subr.bf16.mxu0 %v6014_v59  ;;  %5019 = vmatprep.subr.bf16.mxu1 %v6892_v35 }
 0x7c6   :  { %5393 = vtanh.f32 %v6687_v20 }
 0x7c8   :  { %4989 = vmatpush1.bf16.msra.mxu0 %v6020_v37  ;;  %5021 = vmatpush1.bf16.msra.mxu1 %v6024_v1  ;;  %v6707_v1 = vld [vmem:[%s6748_s8] ss:$0 sm:$0xff]  ;;  %s5612_s8 = smov [#allocation16]  }
 0x7c9   :  { %4991 = vmatprep.subr.bf16.mxu0 %v6026_v24  ;;  %5023 = vmatprep.subr.bf16.mxu1 %v6029_v45  ;;  %v5611_v24 = vmov 0   ;;  %v3731_v12 = vmul.f32 %v6707_v1, %v7053_v11  ;;  %v7056_v11 = vld [vmem:[#allocation59_spill] sm:$0xff]  ;;  %s3888_s20 = sshll.u32 %s5612_s8, 4  ;;  %s3889_s20 = int_to_ptr.vmem [resolvable:$true] %s3888_s20 }
 0x7ca   :  { %5170 = vset.pattern.permute.xlu0 %v5611_v24  ;;  %s5571_s21 = scalar_lea.vmem %s3889_s20, 128  ;;  %p5576_p13 = scmp.lt.s32.totalorder %s3889_s20, %s3889_s20 }
 0x7cb   :  { %p5572_p12 = scmp.ne.s32.totalorder %s3889_s20, %s5571_s21  ;;  %p5577_p0 = scmp.lt.s32.totalorder %s5571_s21, %s5571_s21 }
 0x7cc   :  { %4993 = vmatpush1.bf16.msra.mxu0 %v6032_v54  ;;  %5025 = vmatpush1.bf16.msra.mxu1 %v6036_v42 }
 0x7cd   :  { %4995 = vmatprep.subr.bf16.mxu0 %v6038_v57  ;;  %5027 = vmatprep.subr.bf16.mxu1 %v6041_v18  ;;  %p5578_p1 = por %p5577_p0, %p5576_p13 }
 0x7cf   :  { %p5579_p2 = pnand %p5578_p1, %p5572_p12 }
 0x7d0   :  { %v5394_v59 = vpop.eup %5393  ;;  %4997 = vmatpush1.bf16.msra.mxu0 %v6044_v29  ;;  %5029 = vmatpush1.bf16.msra.mxu1 %v6048_v27 }
 0x7d1   :  { %v3314_v37 = vmul.f32 %v5394_v59, %v5392_v34  ;;  %v7054_v34 = vld [vmem:[#allocation49_spill] sm:$0xff] }
 0x7d2   :  { %v3732_v59 = vmul.f32 %v6707_v1, %v7054_v34 }
 0x7d3   :  { %3539 = vmatmul.mubr.f32.vlgmr.msra.gmra.mrb[16].mxu0 %v3314_v37  ;;  %3610 = vmatmul.mubr.f32.vlgmr.msra.gmra.mrb[16].mxu1 %v3314_v37  ;;  %v3726_v54 = vmul.f32 %v6707_v1, %v3314_v37 }
 0x7d5   :  { %3735 = vadd.xlane.f32.xlu1 %v3726_v54 }
 0x886   :  { %v3390_v45 = vpop.f32.mrb[14].mxu0  ;;  %v3461_v42 = vpop.f32.mrb[14].mxu1 }
 0x887   :  { %v5044_v57 = vadd.f32 %v3390_v45, %v7052_v52  ;;  %v3392_v18 = vpop.f32.mrb[15].mxu0  ;;  %v3463_v29 = vpop.f32.mrb[15].mxu1  ;;  %v5060_v35 = vadd.f32 %v3461_v42, %v6909_v44 }
 0x888   :  { %v5045_v27 = vadd.f32 %v3392_v18, %v6101_v6  ;;  %v5061_v62 = vadd.f32 %v3463_v29, %v6908_v32  ;;  %v3744_v45 = vpop.xlane.xlu1 %3743 }
 0x889   :  { %v3973_v40 = vmul.f32 -1.442695, %v5044_v57 }
 0x88a   :  { %v3974_v14 = vmul.f32 -1.442695, %v5045_v27  ;;  %v3975_v17 = vmul.f32 -1.442695, %v5061_v62 }
 0x88b   :  { %5395 = vpow2.f32 %v3973_v40 }
 0x88c   :  { %5397 = vpow2.f32 %v3974_v14  ;;  %v3742_v57 = vpop.xlane.xlu1 %3741 }
 0x88d   :  { %5399 = vpow2.f32 %v3975_v17 }
 0x88e   :  { %5401 = vtanh.f32 %v5060_v35 }
 0x890   :  { %v3740_v29 = vpop.xlane.xlu1 %3739 }
 0x894   :  { %v3738_v40 = vpop.xlane.xlu1 %3737 }
 0x895   :  { %v5396_v63 = vpop.eup %5395 }
 0x896   :  { %v5398_v23 = vpop.eup %5397  ;;  %v3623_v43 = vadd.f32 1.0, %v5396_v63 }
 0x897   :  { %v3629_v9 = vadd.f32 1.0, %v5398_v23  ;;  %v5400_v13 = vpop.eup %5399 }
 0x898   :  { %5403 = vrcp.f32 %v3623_v43  ;;  %v5402_v25 = vpop.eup %5401  ;;  %v3636_v22 = vadd.f32 1.0, %v5400_v13  ;;  %v3736_v62 = vpop.xlane.xlu1 %3735 }
 0x899   :  { %5405 = vrcp.f32 %v3629_v9 }
 0x89a   :  { %5407 = vrcp.f32 %v3636_v22 }
 0x8a2   :  { %v5404_v6 = vpop.eup %5403 }
 0x8a3   :  { %v5406_v36 = vpop.eup %5405  ;;  %v3640_v52 = vmul.f32 %v5404_v6, %v5402_v25 }
 0x8a4   :  { %v3639_v56 = vmul.f32 %v5406_v36, %v6660_v49  ;;  %v5408_v51 = vpop.eup %5407 }
 0x8a6   :  { %v3540_v32 = vpop.f32.mrb[16].mxu0  ;;  %v3611_v46 = vpop.f32.mrb[16].mxu1  ;;  %v3641_v55 = vadd.f32 %v3640_v52, %v3639_v56 }
 0x8a7   :  { %v5062_v44 = vadd.f32 %v3540_v32, %v6116_v3  ;;  %v3542_v38 = vpop.f32.mrb[17].mxu0  ;;  %v3613_v7 = vpop.f32.mrb[17].mxu1  ;;  %v5078_v4 = vadd.f32 %v3611_v46, %v6128_v21 }
 0x8a8   :  { %v5063_v47 = vadd.f32 %v3542_v38, %v6118_v60  ;;  %5409 = vtanh.f32 %v3641_v55  ;;  %v5079_v58 = vadd.f32 %v3613_v7, %v6125_v30 }
 0x8a9   :  { %v3976_v41 = vmul.f32 -1.442695, %v5062_v44 }
 0x8aa   :  { %v3977_v26 = vmul.f32 -1.442695, %v5063_v47  ;;  %v3978_v49 = vmul.f32 -1.442695, %v5079_v58 }
 0x8ab   :  { %5411 = vpow2.f32 %v3976_v41 }
 0x8ac   :  { %5413 = vpow2.f32 %v3977_v26 }
 0x8ad   :  { %5415 = vpow2.f32 %v3978_v49 }
 0x8ae   :  { %5417 = vtanh.f32 %v5078_v4 }
 0x8b2   :  { %v5410_v16 = vpop.eup %5409 }
 0x8b3   :  { %v3643_v5 = vmul.f32 %v5410_v16, %v5408_v51 }
 0x8b5   :  { %v5412_v0 = vpop.eup %5411  ;;  %v3701_v3 = vmul.f32 %v6493_v10, %v3643_v5  ;;  %v3981_v10 = vld [vmem:[#allocation6] ss:$0 sm:$0xff] }
 0x8b6   :  { %v5414_v2 = vpop.eup %5413  ;;  %v3647_v15 = vadd.f32 1.0, %v5412_v0 }
 0x8b7   :  { %v3653_v60 = vadd.f32 1.0, %v5414_v2  ;;  %3716 = vadd.xlane.f32.xlu0 %v3701_v3  ;;  %v5416_v19 = vpop.eup %5415 }
 0x8b8   :  { %5419 = vrcp.f32 %v3647_v15  ;;  %v5418_v61 = vpop.eup %5417  ;;  %v3660_v33 = vadd.f32 1.0, %v5416_v19 }
 0x8b9   :  { %5421 = vrcp.f32 %v3653_v60 }
 0x8ba   :  { %5423 = vrcp.f32 %v3660_v33 }
 0x8c2   :  { %v5420_v30 = vpop.eup %5419 }
 0x8c3   :  { %v5422_v28 = vpop.eup %5421  ;;  %v3664_v31 = vmul.f32 %v5420_v30, %v5418_v61 }
 0x8c4   :  { %v3663_v21 = vmul.f32 %v5422_v28, %v6687_v20  ;;  %v5424_v50 = vpop.eup %5423  ;;  %v3703_v20 = vpop.xlane.xlu0 %3702 }
 0x8c6   :  { %v3665_v48 = vadd.f32 %v3664_v31, %v3663_v21 }
 0x8c8   :  { %5425 = vtanh.f32 %v3665_v48  ;;  %v3705_v37 = vpop.xlane.xlu0 %3704 }
 0x8c9   :  { %v3750_v35 = vadd.f32 %v3736_v62, %v3705_v37 }
 0x8cc   :  { %v3707_v54 = vpop.xlane.xlu0 %3706 }
 0x8cd   :  { %3764 = vperm.xlu0 %5170, %v3981_v10   ;;  %v3751_v63 = vadd.f32 %v3738_v40, %v3707_v54  ;;  %v7055_v10 = vlaneseq }
 0x8d0   :  { %v3709_v24 = vpop.xlane.xlu0 %3708 }
 0x8d1   :  { %v3752_v23 = vadd.f32 %v3740_v29, %v3709_v24 }
 0x8d2   :  { %v5426_v53 = vpop.eup %5425 }
 0x8d3   :  { %v3667_v39 = vmul.f32 %v5426_v53, %v5424_v50  ;;  %v3832_v50 = vand.u32 127, %v7055_v10 }
 0x8d4   :  { %v3711_v42 = vpop.xlane.xlu0 %3710 }
 0x8d5   :  { %v3725_v8 = vmul.f32 %v6707_v1, %v3667_v39  ;;  %v3753_v9 = vadd.f32 %v3742_v57, %v3711_v42 }
 0x8d7   :  { %3733 = vadd.xlane.f32.xlu1 %v3725_v8 }
 0x8d8   :  { %v3713_v18 = vpop.xlane.xlu0 %3712 }
 0x8d9   :  { %v3754_v25 = vadd.f32 %v3744_v45, %v3713_v18 }
 0x8db   :  { %3745 = vadd.xlane.f32.xlu1 %v3731_v12  ;;  %v3835_v12 = vsub.s32 %v3832_v50, %v7056_v11 }
 0x8dc   :  { %v3715_v27 = vpop.xlane.xlu0 %3714 }
 0x8df   :  { %3747 = vadd.xlane.f32.xlu1 %v3732_v59 }
 0x944   :  { %v3717_v14 = vpop.xlane.xlu0 %3716 }
 0x94c   :  { %v3765_v17 = vpop.permute.xlu0 %3764 }
 0x94d   :  { %v3768_v43 = vadd.f32 %v3765_v17, %v3750_v35  ;;  %v3769_v1 = vadd.f32 %v3765_v17, %v3751_v63  ;;  %v3770_v13 = vadd.f32 %v3765_v17, %v3752_v23  ;;  %v3771_v6 = vadd.f32 %v3765_v17, %v3753_v9 }
 0x94e   :  { %v3772_v52 = vadd.f32 %v3765_v17, %v3754_v25 }
 0x94f   :  { %v3983_v36 = vmul.f32 -1.442695, %v3768_v43  ;;  %v3984_v22 = vmul.f32 -1.442695, %v3769_v1  ;;  %v3985_v56 = vmul.f32 -1.442695, %v3770_v13 }
 0x950   :  { %v3986_v32 = vmul.f32 -1.442695, %v3771_v6  ;;  %v3987_v55 = vmul.f32 -1.442695, %v3772_v52 }
 0x951   :  { %5427 = vpow2.f32 %v3983_v36 }
 0x952   :  { %5429 = vpow2.f32 %v3984_v22 }
 0x953   :  { %5431 = vpow2.f32 %v3985_v56 }
 0x954   :  { %5433 = vpow2.f32 %v3986_v32 }
 0x955   :  { %5435 = vpow2.f32 %v3987_v55 }
 0x95b   :  { %v5428_v49 = vpop.eup %5427 }
 0x95c   :  { %v5430_v4 = vpop.eup %5429  ;;  %v3800_v3 = vadd.f32 1.0, %v5428_v49 }
 0x95d   :  { %v5432_v0 = vpop.eup %5431  ;;  %v3801_v60 = vadd.f32 1.0, %v5430_v4 }
 0x95e   :  { %v5434_v15 = vpop.eup %5433  ;;  %v3802_v61 = vadd.f32 1.0, %v5432_v0 }
 0x95f   :  { %v5436_v19 = vpop.eup %5435  ;;  %v3803_v28 = vadd.f32 1.0, %v5434_v15 }
 0x960   :  { %v3804_v31 = vadd.f32 1.0, %v5436_v19 }
 0x964   :  { %v3734_v46 = vpop.xlane.xlu1 %3733 }
 0x965   :  { %v3749_v44 = vadd.f32 %v3734_v46, %v3703_v20 }
 0x967   :  { %v3767_v38 = vadd.f32 %v3765_v17, %v3749_v44 }
 0x968   :  { %v3746_v7 = vpop.xlane.xlu1 %3745 }
 0x969   :  { %v3982_v47 = vmul.f32 -1.442695, %v3767_v38  ;;  %v3755_v41 = vadd.f32 %v3746_v7, %v3715_v27 }
 0x96b   :  { %5437 = vpow2.f32 %v3982_v47  ;;  %v3773_v26 = vadd.f32 %v3765_v17, %v3755_v41 }
 0x96c   :  { %v3748_v58 = vpop.xlane.xlu1 %3747 }
 0x96d   :  { %v3988_v51 = vmul.f32 -1.442695, %v3773_v26  ;;  %v3756_v16 = vadd.f32 %v3748_v58, %v3717_v14 }
 0x96f   :  { %5439 = vpow2.f32 %v3988_v51  ;;  %v3774_v5 = vadd.f32 %v3765_v17, %v3756_v16 }
 0x971   :  { %v3989_v2 = vmul.f32 -1.442695, %v3774_v5 }
 0x973   :  { %5441 = vpow2.f32 %v3989_v2 }
 0x974   :  { %5443 = vrcp.f32 %v3800_v3 }
 0x975   :  { %v5438_v30 = vpop.eup %5437  ;;  %5445 = vrcp.f32 %v3801_v60 }
 0x976   :  { %v3799_v33 = vadd.f32 1.0, %v5438_v30  ;;  %5447 = vrcp.f32 %v3802_v61 }
 0x978   :  { %5449 = vrcp.f32 %v3799_v33 }
 0x979   :  { %v5440_v21 = vpop.eup %5439  ;;  %5451 = vrcp.f32 %v3803_v28 }
 0x97a   :  { %5453 = vrcp.f32 %v3804_v31  ;;  %v3805_v48 = vadd.f32 1.0, %v5440_v21 }
 0x97c   :  { %5455 = vrcp.f32 %v3805_v48 }
 0x97d   :  { %v5442_v53 = vpop.eup %5441 }
 0x97e   :  { %v3806_v39 = vadd.f32 1.0, %v5442_v53  ;;  %v5444_v8 = vpop.eup %5443 }
 0x97f   :  { %v5446_v34 = vpop.eup %5445  ;;  %v3840_v24 = vrot.slane %v5444_v8, %v3835_v12 }
 0x980   :  { %5457 = vrcp.f32 %v3806_v39  ;;  %v5448_v59 = vpop.eup %5447  ;;  %v3844_v42 = vrot.slane %v5446_v34, %v3835_v12 }
 0x981   :  { %v3848_v57 = vrot.slane %v5448_v59, %v3835_v12 }
 0x982   :  { %v5450_v20 = vpop.eup %5449 }
 0x983   :  { %v5452_v37 = vpop.eup %5451  ;;  %v3836_v54 = vrot.slane %v5450_v20, %v3835_v12 }
 0x984   :  { %v5454_v45 = vpop.eup %5453  ;;  %v3852_v27 = vrot.slane %v5452_v37, %v3835_v12 }
 0x985   :  { %v3866_v18 = vsel %vm3865_vm1, %v3840_v24, %v3836_v54  ;;  %v3856_v14 = vrot.slane %v5454_v45, %v3835_v12 }
 0x986   :  { %v5456_v29 = vpop.eup %5455  ;;  %v3868_v40 = vsel %vm3867_vm2, %v3844_v42, %v3866_v18 }
 0x987   :  { %v3870_v62 = vsel %vm3869_vm3, %v3848_v57, %v3868_v40  ;;  %v3860_v17 = vrot.slane %v5456_v29, %v3835_v12 }
 0x988   :  { %v3872_v35 = vsel %vm3871_vm4, %v3852_v27, %v3870_v62 }
 0x989   :  { %v3874_v63 = vsel %vm3873_vm5, %v3856_v14, %v3872_v35 }
 0x98a   :  { %v5458_v23 = vpop.eup %5457  ;;  %v3876_v1 = vsel %vm3875_vm6, %v3860_v17, %v3874_v63 }
 0x98b   :  { %v3864_v43 = vrot.slane %v5458_v23, %v3835_v12 }
 0x98d   :  { %v3878_v9 = vsel %vm3877_vm7, %v3864_v43, %v3876_v1 }
 0x98e   :  { %3881 = vst.msk [vmem:[#allocation16] sm:$0xff] %vm3880_vm8, %v3878_v9 }
 0x98f   :  { %5582 = shalt.err (!%p5579_p2)
}
 0x990   :  { %s5583_s0 = scalar_lea.hbm %s6750_s10, 128 }
 0x991   :  { %p5584_p3 = scmp.ne.s32.totalorder %s6750_s10, %s5583_s0  ;;  %p5587_p4 = scmp.lt.u32.totalorder %s5583_s0, %s6750_s10 }
 0x993   :  { %p5589_p5 = pnand %p5587_p4, %p5584_p3 }
 0x995   :  { %5592 = shalt.err (!%p5589_p5)
}
 0x996   :  { %3891 = dma.vmem_to_hbm [thread:$0]  %s3889_s20, 128, %s6750_s10, [#allocation9]  }
 0x997   :  { %5599 = dma.done.wait [#allocation9], 128  }
 0x998   :  { %5600 = vsyncadd [#allocation9], 4294967168 }
 0x999   :  { %3895 = vsyncpa [#allocation8], 1 }
 0x99a   :  { %3896 = vsyncpa [#allocation11], 1 }
 0x99b   :  { %3897 = vsyncpa [#allocation14], 1 }
 0x99c   :  { %3898 = vsyncpa [#allocation9], 1 }

</bundles_post_ra>
